<compile_context>
chip_gen: v5e
topology: v5e:2x2
jax: 0.10.0
libtpu: 0.0.40
codegen_flags: <defaults>
</compile_context>

<pallas_src>
import functools

import jax
import jax.numpy as jnp
from jax.experimental import pallas as pl
from jax.experimental.pallas import tpu as pltpu


def _round_up(v, m):
    return ((v + m - 1) // m) * m


# ----------------------------------------------------------------------------
# Kernel: whole MLP fused, activations kept as [feat, tm] (batch on lanes).
# ----------------------------------------------------------------------------
def _siren_kernel(*refs, n_hidden, has_prev):
    if has_prev:
        (xT_ref, pT_ref, wfx_ref, wfp_ref, bf_ref, wh_ref, bh_ref,
         wo_ref, bo_ref, penT_ref, outT_ref) = refs
    else:
        (xT_ref, wfx_ref, bf_ref, wh_ref, bh_ref,
         wo_ref, bo_ref, penT_ref, outT_ref) = refs

    # First SIREN layer; w0 is already folded into wfx/wfp/bf:
    #   h^T = sin(Wx @ x^T [+ Wp @ pen_prev^T] + b)
    h = jnp.dot(wfx_ref[...], xT_ref[...], preferred_element_type=jnp.float32)
    if has_prev:
        h = h + jnp.dot(wfp_ref[...], pT_ref[...].astype(jnp.float32),
                        preferred_element_type=jnp.float32)
    h = jnp.sin(h + bf_ref[...])

    # Hidden SIREN layers (tiny, static count -> static unroll).
    for l in range(n_hidden):
        h = jnp.sin(jnp.dot(wh_ref[l], h, preferred_element_type=jnp.float32)
                    + bh_ref[l])

    # Penultimate output: lane-dense [H, tm] slab -> unmasked full-width vst.
    penT_ref[...] = h.astype(penT_ref.dtype)

    # Final linear head (is_last=True -> no sine, no w0).
    outT_ref[...] = (jnp.dot(wo_ref[...], h, preferred_element_type=jnp.float32)
                     + bo_ref[...]).astype(outT_ref.dtype)


# ----------------------------------------------------------------------------
# Tiling / VMEM helpers.
# ----------------------------------------------------------------------------
def _choose_tiling(n, tm_max, min_steps=2):
    """Pick (tm, n_pad, steps): tm is a multiple of 128, tm * steps == n_pad >= n.

    Targets >=2 grid steps (so the 'parallel' axis can shard across v7x's two
    TensorCores) while keeping tiles as large as possible up to tm_max.
    """
    n128 = _round_up(max(int(n), 1), 128)
    tm_cap = max(128, (int(tm_max) // 128) * 128)
    steps = -(-n128 // tm_cap)                    # steps needed at the cap
    if n128 >= min_steps * 128:
        steps = max(steps, min_steps)             # give every core some work
    steps = max(1, min(steps, n128 // 128))
    tm = _round_up(-(-n128 // steps), 128)
    return tm, tm * steps, steps


def _vmem_limit_bytes(tm, in_rows, has_prev, H, L, out_dim):
    """f32 footprint: double-buffered pipelined tiles + weights + the per-layer
    h intermediates Mosaic materializes.  Clamped to <=32 MiB (safe on v7x)."""
    def tile(r, c):
        return _round_up(r, 8) * _round_up(c, 128) * 4

    buffered = tile(in_rows, tm) + tile(H, tm) + tile(out_dim, tm)
    if has_prev:
        buffered += tile(H, tm)
    buffered *= 2                                  # double-buffered pipeline copies
    weights = 2 * (tile(H, in_rows) + (tile(H, H) if has_prev else 0)
                   + tile(H, 1) + L * (tile(H, H) + tile(H, 1))
                   + tile(out_dim, H) + tile(out_dim, 1))
    intermediates = (L + 2) * tile(H, tm)          # live h slabs inside the body
    est = buffered + weights + intermediates
    return int(min(32 * 1024 * 1024, max(16 * 1024 * 1024, int(1.5 * est))))


# ----------------------------------------------------------------------------
# Transpose-free (batch-on-lanes) forward -- the hot-path API.
# ----------------------------------------------------------------------------
def siren_grownet_forward_T(xT, params, *, w0, prev_penT=None,
                            tm_max=8192, pen_dtype=jnp.float32):
    """SIREN_grownet forward in batch-on-lanes orientation.

    xT:        [input_size, N]   coordinates (transposed once at the boundary)
    prev_penT: [H, N] penultimate of the previous grownet stage, or None.
    Returns (penT [H, N], outT [3, N]); feed penT directly into the next stage.
    """
    w_first, b_first, w_hid, b_hid, w_out, b_out = params   # PyTorch layout
    in_rows, N = xT.shape
    H = w_first.shape[0]
    L = int(w_hid.shape[0])
    out_dim = w_out.shape[0]
    has_prev = prev_penT is not None
    dim_in = in_rows + (H if has_prev else 0)
    assert w_first.shape[1] == dim_in, "weight / input dim mismatch"

    # Fold w0 into the non-last layers once: sin(w0*(Wx+b)) == sin((w0 W)x + w0 b).
    w_first_s = (w0 * w_first).astype(jnp.float32)
    bf = (w0 * b_first).astype(jnp.float32)
    if L > 0:
        wh = (w0 * w_hid).astype(jnp.float32)
        bh = (w0 * b_hid).astype(jnp.float32)
    else:  # keep BlockSpecs non-degenerate; never read when n_hidden == 0
        wh = jnp.zeros((1, H, H), jnp.float32)
        bh = jnp.zeros((1, H, 1), jnp.float32)
    wo = w_out.astype(jnp.float32)
    bo = b_out.astype(jnp.float32)

    # Split first-layer weight by input source so prev_penT is consumed directly
    # (no [x ; pen] concat copy in the wrapper).
    wfx = w_first_s[:, :in_rows]
    wfp = w_first_s[:, in_rows:] if has_prev else None

    tm, n_pad, _ = _choose_tiling(N, tm_max)
    xT = xT.astype(jnp.float32)
    pT = prev_penT
    if n_pad != N:                                 # lane padding (sliced off below)
        xT = jnp.pad(xT, ((0, 0), (0, n_pad - N)))
        if has_prev:
            pT = jnp.pad(pT, ((0, 0), (0, n_pad - N)))

    kernel = functools.partial(_siren_kernel, n_hidden=L, has_prev=has_prev)

    inputs = [xT]
    in_specs = [pl.BlockSpec((in_rows, tm), lambda i: (0, i))]
    if has_prev:
        inputs.append(pT)
        in_specs.append(pl.BlockSpec((H, tm), lambda i: (0, i)))
    inputs.append(wfx)
    in_specs.append(pl.BlockSpec((H, in_rows), lambda i: (0, 0)))
    if has_prev:
        inputs.append(wfp)
        in_specs.append(pl.BlockSpec((H, H), lambda i: (0, 0)))
    inputs += [bf, wh, bh, wo, bo]
    in_specs += [
        pl.BlockSpec((H, 1), lambda i: (0, 0)),
        pl.BlockSpec(tuple(wh.shape), lambda i: (0, 0, 0)),
        pl.BlockSpec(tuple(bh.shape), lambda i: (0, 0, 0)),
        pl.BlockSpec((out_dim, H), lambda i: (0, 0)),
        pl.BlockSpec((out_dim, 1), lambda i: (0, 0)),
    ]

    vmem_limit = _vmem_limit_bytes(tm, in_rows, has_prev, H, max(L, 1), out_dim)

    penT, outT = pl.pallas_call(
        kernel,
        out_shape=(jax.ShapeDtypeStruct((H, n_pad), pen_dtype),
                   jax.ShapeDtypeStruct((out_dim, n_pad), jnp.float32)),
        grid_spec=pltpu.PrefetchScalarGridSpec(
            num_scalar_prefetch=0,
            grid=(n_pad // tm,),
            in_specs=in_specs,
            out_specs=[
                pl.BlockSpec((H, tm), lambda i: (0, i)),        # pen^T
                pl.BlockSpec((out_dim, tm), lambda i: (0, i)),  # out^T
            ],
        ),
        compiler_params=pltpu.CompilerParams(
            dimension_semantics=("parallel",),
            vmem_limit_bytes=vmem_limit),
    )(*inputs)

    if n_pad != N:
        penT = penT[:, :N]
        outT = outT[:, :N]
    return penT, outT


# ----------------------------------------------------------------------------
# PyTorch-orientation compatibility wrapper ([N, feat] in / out).
# ----------------------------------------------------------------------------
def siren_grownet_forward(x, params, *, w0, prev_penultimate=None, **kwargs):
    """Compatibility wrapper matching the PyTorch module's orientation.

    Prefer siren_grownet_forward_T for stage-to-stage chaining: it avoids the
    extra HBM transpose passes over pen / out entirely.
    """
    ppT = None if prev_penultimate is None else prev_penultimate.T
    penT, outT = siren_grownet_forward_T(x.T, params, w0=w0, prev_penT=ppT,
                                         **kwargs)
    return penT.T, outT.T


# ----------------------------------------------------------------------------
# Parameter init (mirrors SIREN_grownet.__init__) and pure-JAX reference.
# ----------------------------------------------------------------------------
def init_siren_grownet_params(key, dim_in, hidden_size, hidden_layers, w0):
    """Weights in native PyTorch [out_f, in_f] layout; biases as [out_f, 1]."""
    keys = jax.random.split(key, 2 * (hidden_layers + 2))
    ki = iter(keys)

    bw = 1.0 / dim_in                       # first layer: U(-1/dim_in, 1/dim_in)
    bb = 1.0 / float(dim_in) ** 0.5
    w_first = jax.random.uniform(next(ki), (hidden_size, dim_in),
                                 minval=-bw, maxval=bw, dtype=jnp.float32)
    b_first = jax.random.uniform(next(ki), (hidden_size, 1),
                                 minval=-bb, maxval=bb, dtype=jnp.float32)

    bh = (6.0 / hidden_size) ** 0.5 / w0    # hidden: U(-sqrt(6/H)/w0, ...)
    bbh = 1.0 / float(hidden_size) ** 0.5
    w_hid_l, b_hid_l = [], []
    for _ in range(hidden_layers):
        w_hid_l.append(jax.random.uniform(next(ki), (hidden_size, hidden_size),
                                          minval=-bh, maxval=bh,
                                          dtype=jnp.float32))
        b_hid_l.append(jax.random.uniform(next(ki), (hidden_size, 1),
                                          minval=-bbh, maxval=bbh,
                                          dtype=jnp.float32))
    w_hid = jnp.stack(w_hid_l, axis=0)      # [L, H, H]
    b_hid = jnp.stack(b_hid_l, axis=0)      # [L, H, 1]

    w_out = jax.random.uniform(next(ki), (3, hidden_size),
                               minval=-bh, maxval=bh, dtype=jnp.float32)
    b_out = jax.random.uniform(next(ki), (3, 1),
                               minval=-bbh, maxval=bbh, dtype=jnp.float32)
    return (w_first, b_first, w_hid, b_hid, w_out, b_out)


def siren_grownet_reference(x, params, *, w0, prev_penultimate=None):
    """Pure-JAX reference faithful to the PyTorch module."""
    if prev_penultimate is not None:
        x = jnp.concatenate([x, prev_penultimate], axis=1)
    w_first, b_first, w_hid, b_hid, w_out, b_out = params
    h = jnp.sin(w0 * (x @ w_first.T + b_first.T))
    for l in range(w_hid.shape[0]):
        h = jnp.sin(w0 * (h @ w_hid[l].T + b_hid[l].T))
    out = h @ w_out.T + b_out.T
    return h, out


if __name__ == "__main__":
    # SIREN_grownet.get_model(stage, input_size=2, penultimate_size=32,
    #                         num_layers=2, w0=30.0)
    input_size = 2
    hidden_size = 32
    hidden_layers = 2
    w0 = 30.0
    N = 512  # batch of coordinate samples

    key = jax.random.PRNGKey(0)
    kp0, kp1, kx = jax.random.split(key, 3)

    params0 = init_siren_grownet_params(kp0, input_size, hidden_size,
                                        hidden_layers, w0)
    params1 = init_siren_grownet_params(kp1, input_size + hidden_size,
                                        hidden_size, hidden_layers, w0)

    x = jax.random.uniform(kx, (N, input_size), minval=-1.0, maxval=1.0,
                           dtype=jnp.float32)
    xT = x.T  # single layout change at the boundary; hot path stays lane-dense

    # ---- stage 0 ----
    penT0, outT0 = siren_grownet_forward_T(xT, params0, w0=w0)
    penT0 = jax.block_until_ready(penT0)
    outT0 = jax.block_until_ready(outT0)
    pen0_ref, out0_ref = siren_grownet_reference(x, params0, w0=w0)
    assert penT0.shape == (hidden_size, N) and outT0.shape == (3, N)
    assert jnp.allclose(penT0.T, pen0_ref, atol=1e-4, rtol=1e-4)
    assert jnp.allclose(outT0.T, out0_ref, atol=1e-4, rtol=1e-4)

    # ---- stage 1 (grownet boosting): pen^T chained with zero transposes ----
    penT1, outT1 = siren_grownet_forward_T(xT, params1, w0=w0,
                                           prev_penT=penT0)
    penT1 = jax.block_until_ready(penT1)
    outT1 = jax.block_until_ready(outT1)
    pen1_ref, out1_ref = siren_grownet_reference(x, params1, w0=w0,
                                                 prev_penultimate=penT0.T)
    assert penT1.shape == (hidden_size, N) and outT1.shape == (3, N)
    assert jnp.allclose(penT1.T, pen1_ref, atol=1e-4, rtol=1e-4)
    assert jnp.allclose(outT1.T, out1_ref, atol=1e-4, rtol=1e-4)

    # ---- PyTorch-orientation compatibility wrapper ----
    pen_c, out_c = siren_grownet_forward(x, params0, w0=w0)
    pen_c = jax.block_until_ready(pen_c)
    assert pen_c.shape == (N, hidden_size) and out_c.shape == (N, 3)
    assert jnp.allclose(pen_c, pen0_ref, atol=1e-4, rtol=1e-4)

    # ---- awkward batch (not a multiple of 128) exercises the padding path ----
    xo = x[: N - 3]
    penT_o, outT_o = siren_grownet_forward_T(xo.T, params0, w0=w0)
    penT_o = jax.block_until_ready(penT_o)
    pen_o_ref, out_o_ref = siren_grownet_reference(xo, params0, w0=w0)
    assert penT_o.shape == (hidden_size, N - 3) and outT_o.shape == (3, N - 3)
    assert jnp.allclose(penT_o.T, pen_o_ref, atol=1e-4, rtol=1e-4)
    assert jnp.allclose(outT_o.T, out_o_ref, atol=1e-4, rtol=1e-4)

    print("KERNEL_OK")
</pallas_src>

<mosaic_0001>
module attributes {stable_mosaic.version = 11 : i64} {
  func.func @_siren_kernel(%arg0: i32, %arg1: memref<2x256xf32, #tpu.memory_space<vmem>>, %arg2: memref<32x2xf32, #tpu.memory_space<vmem>>, %arg3: memref<32x1xf32, #tpu.memory_space<vmem>>, %arg4: memref<2x32x32xf32, #tpu.memory_space<vmem>>, %arg5: memref<2x32x1xf32, #tpu.memory_space<vmem>>, %arg6: memref<3x32xf32, #tpu.memory_space<vmem>>, %arg7: memref<3x1xf32, #tpu.memory_space<vmem>>, %arg8: memref<32x256xf32, #tpu.memory_space<vmem>>, %arg9: memref<3x256xf32, #tpu.memory_space<vmem>>) attributes {dimension_semantics = [#tpu.dimension_semantics<parallel>], iteration_bounds = array<i64: 2>, scalar_prefetch = 0 : i64, scratch_operands = 0 : i64, tpu.core_type = #tpu.core_type<tc>, window_params = [{transform_indices = @transform_0, window_bounds = array<i64: 2, 256>}, {pipeline_mode = #tpu.pipeline_mode<synchronous>, transform_indices = @transform_1, window_bounds = array<i64: 32, 2>}, {pipeline_mode = #tpu.pipeline_mode<synchronous>, transform_indices = @transform_2, window_bounds = array<i64: 32, 1>}, {pipeline_mode = #tpu.pipeline_mode<synchronous>, transform_indices = @transform_3, window_bounds = array<i64: 2, 32, 32>}, {pipeline_mode = #tpu.pipeline_mode<synchronous>, transform_indices = @transform_4, window_bounds = array<i64: 2, 32, 1>}, {pipeline_mode = #tpu.pipeline_mode<synchronous>, transform_indices = @transform_5, window_bounds = array<i64: 3, 32>}, {pipeline_mode = #tpu.pipeline_mode<synchronous>, transform_indices = @transform_6, window_bounds = array<i64: 3, 1>}, {transform_indices = @transform_7, window_bounds = array<i64: 32, 256>}, {transform_indices = @transform_8, window_bounds = array<i64: 3, 256>}]} {
    %c0 = arith.constant 0 : index
    %c0_0 = arith.constant 0 : index
    %0 = vector.load %arg2[%c0, %c0_0] : memref<32x2xf32, #tpu.memory_space<vmem>>, vector<32x2xf32>
    %c0_1 = arith.constant 0 : index
    %c0_2 = arith.constant 0 : index
    %1 = vector.load %arg1[%c0_1, %c0_2] : memref<2x256xf32, #tpu.memory_space<vmem>>, vector<2x256xf32>
    %cst = arith.constant dense<0.000000e+00> : vector<32x256xf32>
    %2 = tpu.matmul %0, %1, %cst {dimension_numbers = #tpu.dot_dimension_numbers<[1], [0], [0], [1], [0, 0, 1, 1], [], []>} : vector<32x2xf32>, vector<2x256xf32>, vector<32x256xf32> -> vector<32x256xf32>
    %c0_3 = arith.constant 0 : index
    %c0_4 = arith.constant 0 : index
    %3 = vector.load %arg3[%c0_3, %c0_4] : memref<32x1xf32, #tpu.memory_space<vmem>>, vector<32x1xf32>
    %4 = vector.broadcast %3 : vector<32x1xf32> to vector<32x256xf32>
    %5 = arith.addf %2, %4 : vector<32x256xf32>
    %6 = math.sin %5 : vector<32x256xf32>
    %c0_5 = arith.constant 0 : index
    %c0_6 = arith.constant 0 : index
    %c0_7 = arith.constant 0 : index
    %7 = vector.load %arg4[%c0_5, %c0_6, %c0_7] : memref<2x32x32xf32, #tpu.memory_space<vmem>>, vector<1x32x32xf32>
    %8 = vector.shape_cast %7 : vector<1x32x32xf32> to vector<32x32xf32>
    %cst_8 = arith.constant dense<0.000000e+00> : vector<32x256xf32>
    %9 = tpu.matmul %8, %6, %cst_8 {dimension_numbers = #tpu.dot_dimension_numbers<[1], [0], [0], [1], [0, 0, 1, 1], [], []>} : vector<32x32xf32>, vector<32x256xf32>, vector<32x256xf32> -> vector<32x256xf32>
    %c0_9 = arith.constant 0 : index
    %c0_10 = arith.constant 0 : index
    %c0_11 = arith.constant 0 : index
    %10 = vector.load %arg5[%c0_9, %c0_10, %c0_11] : memref<2x32x1xf32, #tpu.memory_space<vmem>>, vector<1x32x1xf32>
    %11 = vector.shape_cast %10 : vector<1x32x1xf32> to vector<32x1xf32>
    %12 = vector.broadcast %11 : vector<32x1xf32> to vector<32x256xf32>
    %13 = arith.addf %9, %12 : vector<32x256xf32>
    %14 = math.sin %13 : vector<32x256xf32>
    %c1 = arith.constant 1 : index
    %c0_12 = arith.constant 0 : index
    %c0_13 = arith.constant 0 : index
    %15 = vector.load %arg4[%c1, %c0_12, %c0_13] : memref<2x32x32xf32, #tpu.memory_space<vmem>>, vector<1x32x32xf32>
    %16 = vector.shape_cast %15 : vector<1x32x32xf32> to vector<32x32xf32>
    %cst_14 = arith.constant dense<0.000000e+00> : vector<32x256xf32>
    %17 = tpu.matmul %16, %14, %cst_14 {dimension_numbers = #tpu.dot_dimension_numbers<[1], [0], [0], [1], [0, 0, 1, 1], [], []>} : vector<32x32xf32>, vector<32x256xf32>, vector<32x256xf32> -> vector<32x256xf32>
    %c1_15 = arith.constant 1 : index
    %c0_16 = arith.constant 0 : index
    %c0_17 = arith.constant 0 : index
    %18 = vector.load %arg5[%c1_15, %c0_16, %c0_17] : memref<2x32x1xf32, #tpu.memory_space<vmem>>, vector<1x32x1xf32>
    %19 = vector.shape_cast %18 : vector<1x32x1xf32> to vector<32x1xf32>
    %20 = vector.broadcast %19 : vector<32x1xf32> to vector<32x256xf32>
    %21 = arith.addf %17, %20 : vector<32x256xf32>
    %22 = math.sin %21 : vector<32x256xf32>
    %c0_18 = arith.constant 0 : index
    %c0_19 = arith.constant 0 : index
    %23 = vector.load %arg8[%c0_18, %c0_19] : memref<32x256xf32, #tpu.memory_space<vmem>>, vector<32x256xf32>
    tpu.vector_store %arg8[%c0_18, %c0_19], %22 {strides = array<i32>} : memref<32x256xf32, #tpu.memory_space<vmem>>, vector<32x256xf32>,
    %c0_20 = arith.constant 0 : index
    %c0_21 = arith.constant 0 : index
    %24 = vector.load %arg6[%c0_20, %c0_21] : memref<3x32xf32, #tpu.memory_space<vmem>>, vector<3x32xf32>
    %cst_22 = arith.constant dense<0.000000e+00> : vector<3x256xf32>
    %25 = tpu.matmul %24, %22, %cst_22 {dimension_numbers = #tpu.dot_dimension_numbers<[1], [0], [0], [1], [0, 0, 1, 1], [], []>} : vector<3x32xf32>, vector<32x256xf32>, vector<3x256xf32> -> vector<3x256xf32>
    %c0_23 = arith.constant 0 : index
    %c0_24 = arith.constant 0 : index
    %26 = vector.load %arg7[%c0_23, %c0_24] : memref<3x1xf32, #tpu.memory_space<vmem>>, vector<3x1xf32>
    %27 = vector.broadcast %26 : vector<3x1xf32> to vector<3x256xf32>
    %28 = arith.addf %25, %27 : vector<3x256xf32>
    %c0_25 = arith.constant 0 : index
    %c0_26 = arith.constant 0 : index
    %29 = vector.load %arg9[%c0_25, %c0_26] : memref<3x256xf32, #tpu.memory_space<vmem>>, vector<3x256xf32>
    tpu.vector_store %arg9[%c0_25, %c0_26], %28 {strides = array<i32>} : memref<3x256xf32, #tpu.memory_space<vmem>>, vector<3x256xf32>,
    return
  }
  func.func @transform_0(%arg0: i32) -> (i32, i32) {
    %c0_i32 = arith.constant 0 : i32
    %c0_i32_0 = arith.constant 0 : i32
    return %c0_i32, %arg0 : i32, i32
  }
  func.func @transform_1(%arg0: i32) -> (i32, i32) {
    %c0_i32 = arith.constant 0 : i32
    %c0_i32_0 = arith.constant 0 : i32
    %c0_i32_1 = arith.constant 0 : i32
    return %c0_i32, %c0_i32_0 : i32, i32
  }
  func.func @transform_2(%arg0: i32) -> (i32, i32) {
    %c0_i32 = arith.constant 0 : i32
    %c0_i32_0 = arith.constant 0 : i32
    %c0_i32_1 = arith.constant 0 : i32
    return %c0_i32, %c0_i32_0 : i32, i32
  }
  func.func @transform_3(%arg0: i32) -> (i32, i32, i32) {
    %c0_i32 = arith.constant 0 : i32
    %c0_i32_0 = arith.constant 0 : i32
    %c0_i32_1 = arith.constant 0 : i32
    %c0_i32_2 = arith.constant 0 : i32
    return %c0_i32, %c0_i32_0, %c0_i32_1 : i32, i32, i32
  }
  func.func @transform_4(%arg0: i32) -> (i32, i32, i32) {
    %c0_i32 = arith.constant 0 : i32
    %c0_i32_0 = arith.constant 0 : i32
    %c0_i32_1 = arith.constant 0 : i32
    %c0_i32_2 = arith.constant 0 : i32
    return %c0_i32, %c0_i32_0, %c0_i32_1 : i32, i32, i32
  }
  func.func @transform_5(%arg0: i32) -> (i32, i32) {
    %c0_i32 = arith.constant 0 : i32
    %c0_i32_0 = arith.constant 0 : i32
    %c0_i32_1 = arith.constant 0 : i32
    return %c0_i32, %c0_i32_0 : i32, i32
  }
  func.func @transform_6(%arg0: i32) -> (i32, i32) {
    %c0_i32 = arith.constant 0 : i32
    %c0_i32_0 = arith.constant 0 : i32
    %c0_i32_1 = arith.constant 0 : i32
    return %c0_i32, %c0_i32_0 : i32, i32
  }
  func.func @transform_7(%arg0: i32) -> (i32, i32) {
    %c0_i32 = arith.constant 0 : i32
    %c0_i32_0 = arith.constant 0 : i32
    return %c0_i32, %arg0 : i32, i32
  }
  func.func @transform_8(%arg0: i32) -> (i32, i32) {
    %c0_i32 = arith.constant 0 : i32
    %c0_i32_0 = arith.constant 0 : i32
    return %c0_i32, %arg0 : i32, i32
  }
}

</mosaic_0001>

<bundles_post_ra>
// kernel: tpu_custom_call.1
= control target key start
LH: loop header
LB: loop body
LE: loop exit
PB: predicated region body
PF: predicated region fallthrough
CT: control target
= control target key end

     0   :  { %s8474_s0 = inlined_call_operand.vmem [shape: f32[2,512], index: 0, kind: input, shape index: {}]   ;;  %s8475_s1 = inlined_call_operand.vmem [shape: f32[32,2], index: 1, kind: input, shape index: {}]   ;;  %s8476_s2 = inlined_call_operand.vmem [shape: f32[32,1], index: 2, kind: input, shape index: {}]   ;;  %s8477_s3 = inlined_call_operand.vmem [shape: f32[2,32,32], index: 3, kind: input, shape index: {}]   ;;  %s8478_s4 = inlined_call_operand.vmem [shape: f32[2,32,1], index: 4, kind: input, shape index: {}]   ;;  %s8479_s5 = inlined_call_operand.vmem [shape: f32[3,32], index: 5, kind: input, shape index: {}]   ;;  %s8480_s6 = inlined_call_operand.vmem [shape: f32[3,1], index: 6, kind: input, shape index: {}]   ;;  %s8481_s7 = inlined_call_operand.hbm [shape: f32[32,512], index: 7, kind: output, shape index: {0}]   ;;  %s8482_s8 = inlined_call_operand.hbm [shape: f32[3,512], index: 8, kind: output, shape index: {1}]  }
   0x1   :  { %8631 = sst [smem:[#allocation70_spill]] %s8474_s0 }
   0x2   :  { %8632 = sst [smem:[#allocation71_spill]] %s8475_s1 }
   0x3   :  { %8633 = sst [smem:[#allocation72_spill]] %s8476_s2 }
   0x4   :  { %14 = vsyncpa [#allocation3], 0 }
   0x5   :  { %16 = vsyncpa [#allocation3 + $0x1], 0 }
   0x6   :  { %17 = vsyncpa [#allocation5], 0 }
   0x7   :  { %19 = vsyncpa [#allocation5 + $0x1], 0  ;;  %s4879_s27 = smov 0   ;;  %s4881_s28 = smov 0  }
   0x8   :  { %s4883_s29 = smov 0   ;;  %s4885_s30 = smov 0  }
   0x9 LB: > { %s4900_s9 = sadd.s32 4294967295, %s4822_s30   ;;  %s4543_s10 = sadd.s32 4294967294, %s4822_s30   ;;  %s4822_s30 = sphi %s4885_s30, %s8938_s30   ;;  %s4818_s29 = sphi %s4883_s29, %s8937_s29   ;;  %s4814_s28 = sphi %s4881_s28, %s8936_s28   ;;  %s4810_s27 = sphi %s4879_s27, %s8935_s27  }
   0xa   : > { %s4904_s11 = sadd.s32 1, %s4822_s30   ;;  %s184_s12 = sadd.s32 1, %s4818_s29 }
   0xb   : > { %s181_s13 = ssub.s32 %s4822_s30, %s4904_s11  ;;  %p194_p0 = scmp.ne.s32.totalorder %s4818_s29, %s4814_s28 }
   0xc   : > { %p182_p1 = scmp.eq.s32.totalorder %s181_s13, 0  ;;  %p195_p2 = scmp.eq.s32.totalorder %s4900_s9, 1 }
   0xd   : > { %p200_p3 = scmp.ne.s32.totalorder %s4814_s28, %s4810_s27  ;;  %p201_p4 = scmp.eq.s32.totalorder %s4543_s10, 1 }
   0xe   : > { %s4915_s14 = scalar_select %p182_p1, %s4818_s29, %s184_s12  }
   0xf   : > { %p4917_p5 = por %p195_p2, %p194_p0  ;;  %p4921_p6 = por %p201_p4, %p200_p3 }
  0x10   : > { %p4546_p7 = scmp.ge.s32.totalorder %s4822_s30, 1  ;;  %p272_p8 = scmp.lt.s32.totalorder %s4822_s30, 3 }
  0x12   : > { %p273_p9 = pnand %p4546_p7, %p272_p8 }
  0x14   : > { %276 = sbr.rel (%p273_p9) target bundleno = 1575 (0x627), region = 48 }
  0x19   : > { %s8636_s2 = sld [smem:[#allocation72_spill]]  ;;  %s4549_s21 = sshll.u32 %s4900_s9, 1  ;;  %v8492_v2 = vmov 0   ;;  %vm365_vm0 = vcmask 1041408   ;;  %vm352_vm1 = vcmask 15360   ;;  %v1673_v10 = vld [vmem:[%s8478_s4 + $0x8] sm:$0xff] }
  0x1a   : > { %4725 = vset.pattern.permute.xlu0 %v8492_v2  ;;  %4726 = vset.pattern.permute.xlu1 %v8492_v2  ;;  %p312_p10 = scmp.lt.s32.totalorder %s4549_s21, 3  ;;  %s8637_s0 = sld [smem:[#allocation70_spill]]  ;;  %v1672_v11 = vld [vmem:[%s8478_s4] sm:$0xff]  ;;  %v4623_v13 = vld [vmem:[%s8478_s4 + $0x30] sm:$0xff]  ;;  %v4622_v14 = vld [vmem:[%s8478_s4 + $0x28] sm:$0xff] }
  0x1b   : > { %4727 = vset.pattern.permute.xlu2 %v8492_v2  ;;  %s8638_s1 = sld [smem:[#allocation71_spill]]  ;;  %v4356_v16 = vld [vmem:[%s8480_s6] sm:$0x7]  ;;  %s8000_s20 = sand.u32 1, %s4814_s28  }
  0x1c   : > { %s8940_s21 = smov (!%p312_p10, %s4549_s21), 3  ;;  %s4667_s26 = sshll.u32 %s4900_s9, 4 }
  0x1d   : > { %s4550_s22 = sshll.u32 %s8940_s21, 1  ;;  %s4547_s21 = sshll.u32 %s8000_s20, 6 }
  0x1e   : > { %s4429_s13 = scalar_lea.hbm %s8481_s7, %s4667_s26  ;;  %s4413_s18 = scalar_lea.sflag [#allocation3], %s8000_s20 }
  0x1f   : > { %v327_v0 = vld [vmem:[%s8636_s2 + $0x18] sm:$0xff]  ;;  %v325_v1 = vld [vmem:[%s8636_s2 + $0x8] sm:$0xff]  ;;  %v326_v3 = vld [vmem:[%s8636_s2 + $0x10] sm:$0xff]  ;;  %s4432_s17 = sshll.u32 %s4429_s13, 4  ;;  %s4433_s17 = int_to_ptr.hbm [resolvable:$true] %s4432_s17 }
  0x20   : > { %345 = vperm.xlu0 %4725, %v327_v0   ;;  %335 = vperm.xlu1 %4726, %v325_v1   ;;  %s315_s25 = scalar_lea.vmem %s8637_s0, %s4550_s22  ;;  %v324_v5 = vld [vmem:[%s8636_s2] sm:$0xff]  ;;  %s8029_s22 = scalar_lea.vmem [#allocation2], %s4547_s21 }
  0x21   : > { %v323_v4 = vld [vmem:[%s315_s25] sm:$0xf]  ;;  %v322_v7 = vld [vmem:[%s8638_s1 + $0x18] sm:$0xff]  ;;  %v320_v12 = vld [vmem:[%s8638_s1 + $0x8] sm:$0xff]  ;;  %s4430_s25 = sshll.u32 %s8029_s22, 4  ;;  %s4742_s19 = sshra.s32 %s4433_s17, 4  ;;  %s4431_s25 = int_to_ptr.vmem [resolvable:$true] %s4430_s25  ;;  %s4743_s19 = int_to_ptr.hbm [resolvable:$true] %s4742_s19 }
  0x22   : > { %349 = vst [vmem:[#allocation1] ss:$4 sm:$0xff] %v323_v4  ;;  %v319_v6 = vld [vmem:[%s8638_s1] sm:$0xff]  ;;  %v321_v15 = vld [vmem:[%s8638_s1 + $0x10] sm:$0xff]  ;;  %s4744_s21 = scalar_lea.hbm %s4743_s19, 64  ;;  %p4749_p0 = scmp.lt.s32.totalorder %s4743_s19, %s8481_s7 }
  0x23   : > { %p4745_p11 = scmp.ne.s32.totalorder %s4743_s19, %s4744_s21 }
  0x25   : > { %p4746_p12 = pnand %p4745_p11, %p4917_p5 }
  0x27   : > { %p4747_p13 = pneg %p4746_p12 }
  0x28   : > { %340 = vperm.xlu0 %4725, %v326_v3   ;;  %330 = vperm.xlu1 %4726, %v324_v5  }
  0x29   : > { %v350_v8 = vld.sshfl [vmem:[#allocation1] sm:$0xff pattern:$0x73625140]  ;;  %v351_v9 = vld.sshfl [vmem:[#allocation1 + $0x8] sm:$0xff pattern:$0x73625140] }
  0x2a   : > { %4551 = vmatpush.msk.msra.mxu0 %vm365_vm0, %v350_v8  ;;  %4669 = vmatpush.msk.msra.mxu2 %vm365_vm0, %v350_v8 }
  0x2b   : > { %4556 = vmatpush.msk.msra.mxu1 %vm365_vm0, %v351_v9  ;;  %4670 = vmatpush.msk.msra.mxu3 %vm365_vm0, %v351_v9 }
  0x2c   : > { %4552 = vmatmul.msk.f32.vlgmr.msra.gmra.mxu0 %vm352_vm1, %v319_v6  ;;  %4555 = vmatmul.msk.f32.vlgmr.msra.gmra.mxu2 %vm352_vm1, %v322_v7 }
  0x2d   : > { %4557 = vmatmul.msk.f32.vlgmr.msra.gmra.mxu1 %vm352_vm1, %v319_v6  ;;  %4560 = vmatmul.msk.f32.vlgmr.msra.gmra.mxu3 %vm352_vm1, %v322_v7 }
  0x30   : > { %1683 = vperm.xlu0 %4725, %v1673_v10   ;;  %1678 = vperm.xlu1 %4726, %v1672_v11  }
  0x34   : > { %4553 = vmatmul.msk.f32.gmra.mxu0 %vm352_vm1, %v320_v12 }
  0x35   : > { %4558 = vmatmul.msk.f32.gmra.mxu1 %vm352_vm1, %v320_v12  ;;  %v8486_v12 = vmov 2102212464  }
  0x38   : > { %3029 = vperm.xlu0 %4725, %v4623_v13   ;;  %3024 = vperm.xlu1 %4726, %v4622_v14   ;;  %v8497_v14 = vmov 920167782  }
  0x3c   : > { %4554 = vmatmul.msk.f32.gmra.mxu0 %vm352_vm1, %v321_v15 }
  0x3d   : > { %4559 = vmatmul.msk.f32.gmra.mxu1 %vm352_vm1, %v321_v15 }
  0x40   : > { %4359 = vperm.xlu0 %4725, %v4356_v16  }
  0x92   : > { %v336_v17 = vpop.permute.xlu1 %335  ;;  %v346_v24 = vpop.permute.xlu0 %345 }
  0x9a   : > { %v331_v18 = vpop.permute.xlu1 %330  ;;  %v341_v59 = vpop.permute.xlu0 %340 }
  0xa9   : > { %v387_v19 = vpop.f32.mrf.mxu0 }
  0xaa   : > { %v4981_v20 = vadd.f32 %v387_v19, %v331_v18  ;;  %v416_v21 = vpop.f32.mrf.mxu1 }
  0xab   : > { %v4984_v23 = vadd.f32 %v416_v21, %v331_v18 }
  0xac   : > { %8639 = vst [vmem:[#allocation8_spill] sm:$0xff] %v4981_v20  ;;  %v431_v22 = vand.u32 2139095040, %v4981_v20 }
  0xad   : > { %8640 = vst [vmem:[#allocation9_spill] sm:$0xff] %v4984_v23  ;;  %v586_v29 = vand.u32 2139095040, %v4984_v23 }
  0xae   : > { %v432_v25 = vshrl.u32 %v431_v22, 23 }
  0xaf   : > { %v396_v26 = vpop.f32.mrf.mxu2  ;;  %v587_v37 = vshrl.u32 %v586_v29, 23  ;;  %v8503_v29 = vmov 1326507024  }
  0xb0   : > { %v4986_v27 = vadd.f32 %v396_v26, %v346_v24  ;;  %v425_v28 = vpop.f32.mrf.mxu3  ;;  %v4561_v34 = vadd.s32 4294967169, %v432_v25 }
  0xb1   : > { %v4989_v30 = vadd.f32 %v425_v28, %v346_v24  ;;  %v390_v31 = vpop.f32.mrf.mxu0  ;;  %v4564_v45 = vadd.s32 4294967169, %v587_v37 }
  0xb2   : > { %v1361_v32 = vand.u32 2139095040, %v4986_v27  ;;  %v4992_v33 = vadd.f32 %v390_v31, %v336_v17  ;;  %v419_v39 = vpop.f32.mrf.mxu1  ;;  %v438_v42 = vadd.s32 1, %v4561_v34  ;;  %v8483_v10 = vand.u32 2147483647, %v4986_v27 }
  0xb3   : > { %v1516_v35 = vand.u32 2139095040, %v4989_v30  ;;  %v4996_v44 = vadd.f32 %v419_v39, %v336_v17  ;;  %v593_v50 = vadd.s32 1, %v4564_v45 }
  0xb4   : > { %8641 = vst [vmem:[#allocation10_spill] sm:$0xff] %v4992_v33  ;;  %v1362_v36 = vshrl.u32 %v1361_v32, 23  ;;  %v741_v41 = vand.u32 2139095040, %v4992_v33  ;;  %vm439_vm2 = vcmp.gt.s32.totalorder %v438_v42, 0 }
  0xb5   : > { %v1517_v38 = vshrl.u32 %v1516_v35, 23  ;;  %8642 = vst [vmem:[#allocation11_spill] sm:$0xff] %v4996_v44  ;;  %v896_v49 = vand.u32 2139095040, %v4996_v44  ;;  %v440_v52 = vsel %vm439_vm2, %v438_v42, 0  ;;  %vm594_vm5 = vcmp.gt.s32.totalorder %v593_v50, 0 }
  0xb6   : > { %v4579_v40 = vadd.s32 4294967169, %v1362_v36  ;;  %v742_v48 = vshrl.u32 %v741_v41, 23  ;;  %v5001_v58 = vand.u32 31, %v440_v52  ;;  %v595_v1 = vsel %vm594_vm5, %v593_v50, 0 }
  0xb7   : > { %v4582_v43 = vadd.s32 4294967169, %v1517_v38  ;;  %v897_v56 = vshrl.u32 %v896_v49, 23  ;;  %v5016_v8 = vshrl.u32 %v440_v52, 5  ;;  %v5022_v11 = vshrl.u32 %v595_v1, 5 }
  0xb8   : > { %v1368_v46 = vadd.s32 1, %v4579_v40  ;;  %v4567_v53 = vadd.s32 4294967169, %v742_v48  ;;  %8643 = vst [vmem:[#allocation12_spill] sm:$0xff] %v5001_v58  ;;  %v5011_v4 = vsub.s32 32, %v5001_v58  ;;  %v454_v17 = vshll.u32 %v8486_v12, %v5001_v58 }
  0xb9   : > { %v1523_v47 = vadd.s32 1, %v4582_v43  ;;  %v393_v57 = vpop.f32.mrf.mxu0  ;;  %v4570_v3 = vadd.s32 4294967169, %v897_v56  ;;  %8645 = vst [vmem:[#allocation14_spill] sm:$0xff] %v5016_v8  ;;  %v5030_v18 = vand.u32 31, %v595_v1  ;;  %v5049_v35 = vshll.u32 %v8497_v14, %v5001_v58 }
  0xba   : > { %vm1369_vm3 = vcmp.gt.s32.totalorder %v1368_v46, 0  ;;  %v748_v61 = vadd.s32 1, %v4567_v53  ;;  %v422_v62 = vpop.f32.mrf.mxu1  ;;  %v5008_v0 = vadd.f32 %v393_v57, %v341_v59  ;;  %8644 = vst [vmem:[#allocation13_spill] sm:$0xff] %v5011_v4  ;;  %v455_v22 = vshrl.u32 %v8497_v14, %v5011_v4 }
  0xbb   : > { %vm1524_vm4 = vcmp.gt.s32.totalorder %v1523_v47, 0  ;;  %v1370_v51 = vsel %vm1369_vm3, %v1368_v46, 0  ;;  %v5014_v7 = vadd.f32 %v422_v62, %v341_v59  ;;  %8646 = vst [vmem:[#allocation15_spill] sm:$0xff] %v5022_v11  ;;  %v903_v21 = vadd.s32 1, %v4570_v3 }
  0xbc   : > { %v4999_v54 = vand.u32 31, %v1370_v51  ;;  %v1525_v55 = vsel %vm1524_vm4, %v1523_v47, 0  ;;  %vm749_vm6 = vcmp.gt.s32.totalorder %v748_v61, 0  ;;  %v1051_v6 = vand.u32 2139095040, %v5008_v0  ;;  %8647 = vst [vmem:[#allocation16_spill] sm:$0xff] %v5030_v18 }
  0xbd   : > { %v5003_v60 = vand.u32 31, %v1525_v55  ;;  %v750_v5 = vsel %vm749_vm6, %v748_v61, 0  ;;  %v5036_v24 = vshrl.u32 %v1370_v51, 5  ;;  %v1206_v26 = vand.u32 2139095040, %v5014_v7  ;;  %8649 = vst [vmem:[#allocation18_spill] sm:$0xff] %v5049_v35 }
  0xbe   : > { %v5006_v63 = vsub.s32 32, %v4999_v54  ;;  %v1384_v13 = vshll.u32 %v8486_v12, %v4999_v54  ;;  %v1052_v16 = vshrl.u32 %v1051_v6, 23  ;;  %v5032_v19 = vand.u32 31, %v750_v5 }
  0xbf   : > { %v5019_v9 = vsub.s32 32, %v5003_v60  ;;  %v1387_v28 = vshll.u32 %v8497_v14, %v4999_v54  ;;  %v1539_v32 = vshll.u32 %v8486_v12, %v5003_v60  ;;  %v1542_v37 = vshll.u32 %v8497_v14, %v5003_v60 }
  0xc0   : > { %v1385_v15 = vshrl.u32 %v8497_v14, %v5006_v63  ;;  %8648 = vst [vmem:[#allocation17_spill] sm:$0xff] %v5032_v19  ;;  %v4573_v25 = vadd.s32 4294967169, %v1052_v16  ;;  %v1388_v31 = vshrl.u32 %v8503_v29, %v5006_v63  ;;  %v5058_v39 = vsub.s32 32, %v5032_v19 }
  0xc1   : > { %v1540_v34 = vshrl.u32 %v8497_v14, %v5019_v9  ;;  %v1543_v38 = vshrl.u32 %v8503_v29, %v5019_v9  ;;  %vm904_vm7 = vcmp.gt.s32.totalorder %v903_v21, 0  ;;  %v1207_v41 = vshrl.u32 %v1206_v26, 23 }
  0xc2   : > { %v5051_v36 = vor.u32 %v1385_v15, %v1384_v13  ;;  %8650 = vst [vmem:[#allocation19_spill] sm:$0xff] %v5058_v39  ;;  %v1058_v40 = vadd.s32 1, %v4573_v25  ;;  %v5060_v42 = vor.u32 %v455_v22, %v454_v17  ;;  %v5064_v43 = vshrl.u32 %v8503_v29, %v5011_v4 }
  0xc3   : > { %v5067_v45 = vsub.s32 32, %v5030_v18  ;;  %v5071_v46 = vshll.u32 %v8486_v12, %v5030_v18  ;;  %v1389_v47 = vor.u32 %v1388_v31, %v1387_v28  ;;  %vm1393_vm8 = vcmp.lt.s32.totalorder %v5036_v24, 4 }
  0xc4   : > { %8651 = vst [vmem:[#allocation20_spill] sm:$0xff] %v5060_v42  ;;  %v5074_v48 = vshrl.u32 %v1525_v55, 5  ;;  %v5076_v49 = vor.u32 %v1540_v34, %v1539_v32  ;;  %v1399_v50 = vsel %vm1393_vm8, %v5051_v36, 920167782  ;;  %v1544_v51 = vor.u32 %v1543_v38, %v1542_v37 }
  0xc5   : > { %8652 = vst [vmem:[#allocation21_spill] sm:$0xff] %v5064_v43  ;;  %v5081_v52 = vshrl.u32 %v750_v5, 5  ;;  %v905_v53 = vsel %vm904_vm7, %v903_v21, 0  ;;  %v764_v56 = vshll.u32 %v8486_v12, %v5032_v19  ;;  %v765_v57 = vshrl.u32 %v8497_v14, %v5058_v39 }
  0xc6   : > { %8653 = vst [vmem:[#allocation22_spill] sm:$0xff] %v5067_v45  ;;  %vm1059_vm9 = vcmp.gt.s32.totalorder %v1058_v40, 0  ;;  %v4576_v59 = vadd.s32 4294967169, %v1207_v41  ;;  %v8490_v55 = vmov 683565275   ;;  %vm1548_vm10 = vcmp.lt.s32.totalorder %v5074_v48, 4 }
  0xc7   : > { %8654 = vst [vmem:[#allocation23_spill] sm:$0xff] %v5071_v46  ;;  %v1375_v61 = vshll.u32 %v8490_v55, %v4999_v54  ;;  %v8488_v62 = vmov 2475754826   ;;  %v8484_v5 = vmov 2131351028   ;;  %v5098_v15 = vand.u32 31, %v905_v53 }
  0xc8   : > { %v1376_v1 = vshrl.u32 %v8488_v62, %v5006_v63  ;;  %v1378_v3 = vshll.u32 %v8488_v62, %v4999_v54  ;;  %v1379_v6 = vshrl.u32 %v8484_v5, %v5006_v63  ;;  %v1403_v13 = vsel %vm1393_vm8, %v1389_v47, 1326507024 }
  0xc9   : > { %8655 = vst [vmem:[#allocation24_spill] sm:$0xff] %v5098_v15  ;;  %v1365_v16 = vand.u32 8388607, %v8483_v10  ;;  %v5105_v17 = vsel %vm1548_vm10, %v5076_v49, 920167782  ;;  %v5109_v21 = vshll.u32 %v8497_v14, %v5032_v19  ;;  %v5113_v22 = vshrl.u32 %v8503_v29, %v5058_v39 }
  0xca   : > { %v1060_v25 = vsel %vm1059_vm9, %v1058_v40, 0  ;;  %v5118_v26 = vsel %vm1548_vm10, %v1544_v51, 1326507024  ;;  %v5120_v28 = vor.u32 %v765_v57, %v764_v56  ;;  %vm773_vm11 = vcmp.lt.s32.totalorder %v5081_v52, 4 }
  0xcb   : > { %v1213_v31 = vadd.s32 1, %v4576_v59  ;;  %v1377_v32 = vor.u32 %v1376_v1, %v1375_v61  ;;  %v1380_v34 = vor.u32 %v1379_v6, %v1378_v3  ;;  %v1381_v37 = vshll.u32 %v8484_v5, %v4999_v54 }
  0xcc   : > { %8656 = vst [vmem:[#allocation25_spill] sm:$0xff] %v5120_v28  ;;  %v1382_v38 = vshrl.u32 %v8486_v12, %v5006_v63  ;;  %v5127_v41 = vshrl.u32 %v905_v53, 5  ;;  %v5130_v40 = vsub.s32 32, %v5098_v15  ;;  %v5132_v47 = vand.u32 31, %v1060_v25 }
  0xcd   : > { %v1366_v51 = vor.u32 8388608, %v1365_v16  ;;  %v5138_v57 = vshll.u32 %v8486_v12, %v5098_v15  ;;  %v1374_v54 = vshrl.u32 %v8490_v55, %v5006_v63  ;;  %v5145_v53 = vsel %vm773_vm11, %v5120_v28, 920167782 }
  0xce   : > { %8657 = vst [vmem:[#allocation26_spill] sm:$0xff] %v5127_v41  ;;  %v1383_v59 = vor.u32 %v1382_v38, %v1381_v37  ;;  %v5149_v61 = vshll.u32 %v8497_v14, %v5098_v15  ;;  %vm1390_vm12 = vcmp.lt.s32.totalorder %v5036_v24, 1  ;;  %vm1392_vm13 = vcmp.lt.s32.totalorder %v5036_v24, 3 }
  0xcf   : > { %8658 = vst [vmem:[#allocation27_spill] sm:$0xff] %v5145_v53  ;;  %vm1214_vm14 = vcmp.gt.s32.totalorder %v1213_v31, 0  ;;  %vm1391_vm15 = vcmp.lt.s32.totalorder %v5036_v24, 2  ;;  %v1398_v63 = vsel %vm1390_vm12, %v1377_v32, %v1380_v34  ;;  %v5160_v3 = vshrl.u32 %v8497_v14, %v5130_v40 }
  0xd0   : > { %v1400_v1 = vsel %vm1392_vm13, %v1383_v59, %v1399_v50  ;;  %v5162_v6 = vshrl.u32 %v1060_v25, 5  ;;  %v5165_v16 = vsub.s32 32, %v5132_v47  ;;  %v5171_v38 = vshll.u32 %v8486_v12, %v5132_v47 }
  0xd1   : > { %v1401_v37 = vsel %vm1391_vm15, %v1398_v63, %v1400_v1  ;;  %v1402_v56 = vsel %vm1390_vm12, %v1380_v34, %v1383_v59  ;;  %v1404_v50 = vsel %vm1392_vm13, %v5051_v36, %v1403_v13  ;;  %v5178_v10 = vshll.u32 %v1366_v51, 8 }
  0xd2   : > { %v5180_v25 = vsel %vm1214_vm14, %v1213_v31, 0  ;;  %v1395_v5 = vsel %vm1393_vm8, %v1383_v59, 2102212464  ;;  %v1405_v63 = vsel %vm1391_vm15, %v1402_v56, %v1404_v50  ;;  %v1431_v1 = vand.u32 65535, %v1401_v37 }
  0xd3   : > { %v1407_v12 = vand.u32 65535, %v5178_v10  ;;  %v1408_v62 = vshrl.u32 %v5178_v10, 16  ;;  %v1409_v55 = vand.u32 65535, %v1405_v63  ;;  %v1410_v2 = vshrl.u32 %v1405_v63, 16 }
  0xd4   : > { %v5190_v36 = vshrl.u32 %v8497_v14, %v5165_v16  ;;  %v5194_v13 = vshll.u32 %v8497_v14, %v5132_v47  ;;  %v5198_v31 = vshrl.u32 %v8503_v29, %v5165_v16  ;;  %v1432_v51 = vshrl.u32 %v1401_v37, 16 }
  0xd5   : > { %v5201_v56 = vand.u32 31, %v5180_v25  ;;  %v1394_v59 = vsel %vm1390_vm12, %v1374_v54, %v1377_v32  ;;  %v1412_v50 = vmul.u32 %v1410_v2, %v1407_v12  ;;  %v1413_v63 = vmul.u32 %v1409_v55, %v1408_v62 }
  0xd6   : > { %v1396_v23 = vsel %vm1392_vm13, %v1380_v34, %v1395_v5  ;;  %v1434_v46 = vmul.u32 %v1432_v51, %v1407_v12  ;;  %v1435_v11 = vmul.u32 %v1431_v1, %v1408_v62  ;;  %v8514_v14 = vand.u32 2147483647, %v4989_v30 }
  0xd7   : > { %v1411_v4 = vmul.u32 %v1409_v55, %v1407_v12  ;;  %v1414_v58 = vmul.u32 %v1410_v2, %v1408_v62  ;;  %v1415_v29 = vshll.u32 %v1412_v50, 16  ;;  %v1433_v20 = vmul.u32 %v1431_v1, %v1407_v12 }
  0xd8   : > { %v1416_v37 = vshrl.u32 %v1412_v50, 16  ;;  %v1417_v42 = vshll.u32 %v1413_v63, 16  ;;  %v1436_v18 = vmul.u32 %v1432_v51, %v1408_v62  ;;  %v1437_v45 = vshll.u32 %v1434_v46, 16 }
  0xd9   : > { %v1418_v43 = vshrl.u32 %v1413_v63, 16  ;;  %vm1419_vm0 = vc.u32 %v1411_v4, %v1415_v29  ;;  %v1421_v32 = vadd.s32 %v1415_v29, %v1411_v4  ;;  %v1439_v54 = vshll.u32 %v1435_v11, 16 }
  0xda   : > { %v8659_v35 = vmov 0   ;;  %vm1441_vm1 = vc.u32 %v1433_v20, %v1437_v45  ;;  %v1443_v5 = vadd.s32 %v1437_v45, %v1433_v20  ;;  %v1520_v34 = vand.u32 8388607, %v8514_v14 }
  0xdb   : > { %v1420_v8 = vsel %vm1419_vm0, 1, %v8659_v35  ;;  %vm1423_vm2 = vc.u32 %v1421_v32, %v1417_v42  ;;  %v1438_v2 = vshrl.u32 %v1434_v46, 16  ;;  %v1442_v12 = vsel %vm1441_vm1, 1, %v8659_v35 }
  0xdc   : > { %v1422_v15 = vadd.s32 %v1420_v8, %v1414_v58  ;;  %v1424_v55 = vsel %vm1423_vm2, 1, %v8659_v35  ;;  %v1440_v62 = vshrl.u32 %v1435_v11, 16  ;;  %v1444_v1 = vadd.s32 %v1442_v12, %v1436_v18 }
  0xdd   : > { %vm1445_vm3 = vc.u32 %v1443_v5, %v1439_v54  ;;  %v1521_v29 = vor.u32 8388608, %v1520_v34  ;;  %v8660_v50 = vmov 683565275   ;;  %v8661_v63 = vmov 2475754826  }
  0xde   : > { %v1426_v51 = vadd.s32 %v1424_v55, %v1422_v15  ;;  %v1446_v4 = vsel %vm1445_vm3, 1, %v8659_v35  ;;  %v1530_v20 = vshll.u32 %v8660_v50, %v5003_v60  ;;  %v1531_v58 = vshrl.u32 %v8661_v63, %v5019_v9 }
  0xdf   : > { %v1448_v45 = vadd.s32 %v1446_v4, %v1444_v1  ;;  %v1533_v8 = vshll.u32 %v8661_v63, %v5003_v60  ;;  %v8662_v42 = vmov 2131351028   ;;  %v5222_v18 = vadd.s32 %v1443_v5, %v1439_v54 }
  0xe0   : > { %v1534_v46 = vshrl.u32 %v8662_v42, %v5019_v9  ;;  %v1427_v11 = vadd.s32 %v1426_v51, %v1416_v37  ;;  %v1536_v15 = vshll.u32 %v8662_v42, %v5003_v60  ;;  %v8663_v32 = vmov 2102212464  }
  0xe1   : > { %v1537_v34 = vshrl.u32 %v8663_v32, %v5019_v9  ;;  %v1449_v12 = vadd.s32 %v1448_v45, %v1438_v2  ;;  %v5228_v55 = vor.u32 %v1531_v58, %v1530_v20  ;;  %vm1545_vm4 = vcmp.lt.s32.totalorder %v5074_v48, 1 }
  0xe2   : > { %v5230_v1 = vor.u32 %v1534_v46, %v1533_v8  ;;  %v5233_v4 = vadd.s32 %v1427_v11, %v1418_v43  ;;  %vm1547_vm5 = vcmp.lt.s32.totalorder %v5074_v48, 3  ;;  %v5236_v37 = vshll.u32 %v1521_v29, 8 }
  0xe3   : > { %v1538_v14 = vor.u32 %v1537_v34, %v1536_v15  ;;  %v1397_v60 = vsel %vm1391_vm15, %v1394_v59, %v1396_v23  ;;  %v1450_v54 = vadd.s32 %v1449_v12, %v1440_v62  ;;  %v1559_v43 = vsel %vm1547_vm5, %v5076_v49, %v5118_v26 }
  0xe4   : > { %v1553_v5 = vsel %vm1545_vm4, %v5228_v55, %v5230_v1  ;;  %v5249_v2 = vshrl.u32 %v5180_v25, 5  ;;  %vm1453_vm6 = vc.u32 %v5233_v4, %v5222_v18  ;;  %vm1546_vm7 = vcmp.lt.s32.totalorder %v5074_v48, 2 }
  0xe5   : > { %v1555_v23 = vsel %vm1547_vm5, %v1538_v14, %v5105_v17  ;;  %v5258_v24 = vsub.s32 32, %v5201_v56  ;;  %v1454_v59 = vadd.s32 1, %v1450_v54  ;;  %v1557_v49 = vsel %vm1545_vm4, %v5230_v1, %v1538_v14 }
  0xe6   : > { %v1556_v62 = vsel %vm1546_vm7, %v1553_v5, %v1555_v23  ;;  %v1451_v26 = vmul.u32 %v5178_v10, %v1397_v60  ;;  %v1560_v25 = vsel %vm1546_vm7, %v1557_v49, %v1559_v43  ;;  %v1562_v51 = vand.u32 65535, %v5236_v37 }
  0xe7   : > { %v1563_v17 = vshrl.u32 %v5236_v37, 16  ;;  %v1455_v29 = vsel %vm1453_vm6, %v1454_v59, %v1450_v54  ;;  %v1564_v20 = vand.u32 65535, %v1560_v25  ;;  %v1565_v45 = vshrl.u32 %v1560_v25, 16 }
  0xe8   : > { %v1586_v58 = vand.u32 65535, %v1556_v62  ;;  %v5272_v8 = vor.u32 %v5190_v36, %v5171_v38  ;;  %v1079_v46 = vor.u32 %v5198_v31, %v5194_v13  ;;  %v1456_v11 = vadd.s32 %v1455_v29, %v1451_v26 }
  0xe9   : > { %v1587_v10 = vshrl.u32 %v1556_v62, 16  ;;  %v1229_v15 = vshll.u32 %v8663_v32, %v5201_v56  ;;  %v8664_v34 = vmov 920167782   ;;  %v1567_v60 = vmul.u32 %v1565_v45, %v1562_v51 }
  0xea   : > { %v5280_v12 = vshll.u32 %v8664_v34, %v5201_v56  ;;  %v1568_v54 = vmul.u32 %v1564_v20, %v1563_v17  ;;  %v1230_v5 = vshrl.u32 %v8664_v34, %v5258_v24  ;;  %v1457_v43 = vadd.s32 536870912, %v1456_v11 }
  0xeb   : > { %v1589_v38 = vmul.u32 %v1587_v10, %v1562_v51  ;;  %v1590_v36 = vmul.u32 %v1586_v58, %v1563_v17  ;;  %vm1083_vm8 = vcmp.lt.s32.totalorder %v5162_v6, 4  ;;  %v1529_v13 = vshrl.u32 %v8660_v50, %v5019_v9 }
  0xec   : > { %v1550_v31 = vsel %vm1548_vm10, %v1538_v14, 2102212464  ;;  %v1566_v23 = vmul.u32 %v1564_v20, %v1562_v51  ;;  %v1570_v59 = vshll.u32 %v1567_v60, 16  ;;  %v1458_v62 = vshrl.u32 %v1457_v43, 30 }
  0xed   : > { %v1569_v49 = vmul.u32 %v1565_v45, %v1563_v17  ;;  %v1588_v26 = vmul.u32 %v1586_v58, %v1562_v51  ;;  %v1592_v25 = vshll.u32 %v1589_v38, 16  ;;  %v1572_v29 = vshll.u32 %v1568_v54, 16 }
  0xee   : > { %vm1574_vm9 = vc.u32 %v1566_v23, %v1570_v59  ;;  %v1576_v34 = vadd.s32 %v1570_v59, %v1566_v23  ;;  %v1591_v44 = vmul.u32 %v1587_v10, %v1563_v17  ;;  %vm1360_vm12 = vcmp.lt.s32.totalorder %v4986_v27, 0 }
  0xef   : > { %v1459_v53 = vshll.u32 %v1458_v62, 30  ;;  %v1575_v28 = vsel %vm1574_vm9, 1, %v8659_v35  ;;  %v1594_v39 = vshll.u32 %v1590_v36, 16  ;;  %vm1596_vm13 = vc.u32 %v1588_v26, %v1592_v25 }
  0xf0   : > { %v1577_v9 = vadd.s32 %v1575_v28, %v1569_v49  ;;  %vm1578_vm14 = vc.u32 %v1576_v34, %v1572_v29  ;;  %v1597_v14 = vsel %vm1596_vm13, 1, %v8659_v35  ;;  %v1598_v20 = vadd.s32 %v1592_v25, %v1588_v26 }
  0xf1   : > { %v1460_v43 = vsub.s32 %v1456_v11, %v1459_v53  ;;  %v1549_v51 = vsel %vm1545_vm4, %v1529_v13, %v5228_v55  ;;  %v1579_v45 = vsel %vm1578_vm14, 1, %v8659_v35  ;;  %v1599_v17 = vadd.s32 %v1597_v14, %v1591_v44 }
  0xf2   : > { %v1551_v58 = vsel %vm1547_vm5, %v5230_v1, %v1550_v31  ;;  %v1571_v10 = vshrl.u32 %v1567_v60, 16  ;;  %v1581_v23 = vadd.s32 %v1579_v45, %v1577_v9  ;;  %vm1600_vm10 = vc.u32 %v1598_v20, %v1594_v39 }
  0xf3   : > { %v8665_v28 = vand.u32 2147483647, %v4986_v27  ;;  %vm1461_vm0 = vcmp.lt.s32.totalorder %v1460_v43, 0  ;;  %v1462_v53 = vsub.s32 0, %v1460_v43  ;;  %v1573_v11 = vshrl.u32 %v1568_v54, 16 }
  0xf4   : > { %v1601_v55 = vsel %vm1600_vm10, 1, %v8659_v35  ;;  %v1482_v13 = vsub.s32 4, %v1458_v62  ;;  %v1582_v44 = vadd.s32 %v1581_v23, %v1571_v10  ;;  %v1593_v59 = vshrl.u32 %v1589_v38, 16 }
  0xf5   : > { %vm5301_vm15 = vcmp.le.f32.partialorder %v8665_v28, 0.7853982  ;;  %v1603_v49 = vadd.s32 %v1601_v55, %v1599_v17  ;;  %v1089_v1 = vsel %vm1083_vm8, %v5272_v8, 920167782  ;;  %v1093_v60 = vsel %vm1083_vm8, %v1079_v46, 1326507024 }
  0xf6   : > { %v1463_v31 = vsel %vm1461_vm0, %v1462_v53, %v1460_v43  ;;  %v8521_v26 = vand.u32 2147483647, %v5008_v0  ;;  %v1583_v29 = vadd.s32 %v1582_v44, %v1573_v11  ;;  %v1595_v9 = vshrl.u32 %v1590_v36, 16 }
  0xf7   : > { %v1464_v25 = vclz %v1463_v31  ;;  %v1604_v54 = vadd.s32 %v1603_v49, %v1593_v59  ;;  %v5312_v14 = vor.u32 %v1230_v5, %v1229_v15  ;;  %v8668_v45 = vmov 1326507024  }
  0xf8   : > { %v5316_v38 = vshrl.u32 %v8668_v45, %v5258_v24  ;;  %v1552_v17 = vsel %vm1546_vm7, %v1549_v51, %v1551_v58  ;;  %v1602_v10 = vadd.s32 %v1598_v20, %v1594_v39  ;;  %v1452_v46 = vadd.s32 %v5222_v18, %v5233_v4 }
  0xf9   : > { %v4580_v23 = vadd.s32 4294967294, %v1464_v25  ;;  %v1483_v28 = vsel %vm1360_vm12, %v1482_v13, %v1458_v62  ;;  %v1605_v53 = vadd.s32 %v1604_v54, %v1595_v9  ;;  %v1055_v15 = vand.u32 8388607, %v8521_v26 }
  0xfa   : > { %vm1608_vm1 = vc.u32 %v1583_v29, %v1602_v10  ;;  %v1068_v5 = vshll.u32 %v8661_v63, %v5132_v47  ;;  %v1069_v48 = vshrl.u32 %v8662_v42, %v5165_v16  ;;  %v1606_v39 = vmul.u32 %v5236_v37, %v1552_v17 }
  0xfb   : > { %vm4581_vm2 = vcmp.lt.s32.totalorder %v4580_v23, 0  ;;  %v1609_v36 = vadd.s32 1, %v1605_v53  ;;  %v1072_v18 = vshrl.u32 %v8663_v32, %v5165_v16  ;;  %v1066_v62 = vshrl.u32 %v8661_v63, %v5165_v16 }
  0xfc   : > { %v1467_v4 = vsel %vm4581_vm2, 0, %v4580_v23  ;;  %v5335_v20 = vor.u32 %v1069_v48, %v1068_v5  ;;  %v1071_v51 = vshll.u32 %v8662_v42, %v5132_v47  ;;  %v1485_v55 = vsel %vm5301_vm15, 0, %v1483_v28 }
  0xfd   : > { %v1468_v58 = vsub.s32 32, %v1467_v4  ;;  %v1472_v11 = vsub.s32 4294967266, %v1467_v4  ;;  %v1610_v13 = vsel %vm1608_vm1, %v1609_v36, %v1605_v53  ;;  %v1056_v44 = vor.u32 8388608, %v1055_v15 }
  0xfe   : > { %v1611_v37 = vadd.s32 %v1610_v13, %v1606_v39  ;;  %v1065_v59 = vshll.u32 %v8660_v50, %v5132_v47  ;;  %v1073_v49 = vor.u32 %v1072_v18, %v1071_v51  ;;  %v1469_v31 = vshll.u32 %v1460_v43, %v1467_v4 }
  0xff   : > { %v1470_v25 = vshrl.u32 %v1452_v46, %v1468_v58  ;;  %v1473_v9 = vadd.s32 127, %v1472_v11  ;;  %vm1080_vm3 = vcmp.lt.s32.totalorder %v5162_v6, 1  ;;  %v1502_v5 = vadd.s32 3, %v1485_v55 }
 0x100   : > { %v1612_v17 = vadd.s32 536870912, %v1611_v37  ;;  %v1067_v23 = vor.u32 %v1066_v62, %v1065_v59  ;;  %v1092_v28 = vsel %vm1080_vm3, %v5335_v20, %v1073_v49  ;;  %vm1082_vm4 = vcmp.lt.s32.totalorder %v5162_v6, 3 }
 0x101   : > { %v1471_v53 = vor.u32 %v1470_v25, %v1469_v31  ;;  %v1474_v15 = vshll.u32 %v1473_v9, 23  ;;  %vm1081_vm5 = vcmp.lt.s32.totalorder %v5162_v6, 2  ;;  %v1094_v43 = vsel %vm1082_vm4, %v5272_v8, %v1093_v60 }
 0x102   : > { %v1613_v47 = vshrl.u32 %v1612_v17, 30  ;;  %v5354_v46 = vshll.u32 %v1056_v44, 8  ;;  %vm1515_vm6 = vcmp.lt.s32.totalorder %v4989_v30, 0  ;;  %v1064_v39 = vshrl.u32 %v8660_v50, %v5165_v16 }
 0x103   : > { %v1475_v48 = vor.u32 4788187, %v1474_v15  ;;  %v1095_v36 = vsel %vm1081_vm5, %v1092_v28, %v1094_v43  ;;  %v1478_v18 = vcvt.s32.f32 %v1471_v53  ;;  %v1088_v62 = vsel %vm1080_vm3, %v1067_v23, %v5335_v20 }
 0x104   : > { %v1614_v4 = vshll.u32 %v1613_v47, 30  ;;  %v1090_v8 = vsel %vm1082_vm4, %v1073_v49, %v1089_v1  ;;  %v1097_v51 = vand.u32 65535, %v5354_v46  ;;  %v1099_v58 = vand.u32 65535, %v1095_v36 }
 0x105   : > { %v1476_v60 = vand.u32 2147483647, %v1475_v48  ;;  %v1100_v11 = vshrl.u32 %v1095_v36, 16  ;;  %v5367_v55 = vand.u32 3, %v1502_v5  ;;  %v1607_v16 = vadd.s32 %v1602_v10, %v1583_v29 }
 0x106   : > { %v5369_v13 = vsub.s32 %v1611_v37, %v1614_v4  ;;  %v1098_v44 = vshrl.u32 %v5354_v46, 16  ;;  %v1084_v31 = vsel %vm1080_vm3, %v1064_v39, %v1067_v23  ;;  %v1091_v25 = vsel %vm1081_vm5, %v1088_v62, %v1090_v8 }
 0x107   : > { %v1479_v59 = vmul.f32 %v1478_v18, %v1476_v60  ;;  %v1102_v1 = vmul.u32 %v1100_v11, %v1097_v51  ;;  %v1637_v17 = vsub.s32 4, %v1613_v47  ;;  %v1085_v10 = vsel %vm1083_vm8, %v1073_v49, 2102212464 }
 0x108   : > { %vm1616_vm7 = vcmp.lt.s32.totalorder %v5369_v13, 0  ;;  %v1617_v9 = vsub.s32 0, %v5369_v13  ;;  %v5378_v28 = vmul.u32 %v1099_v58, %v1098_v44  ;;  %v1101_v37 = vmul.u32 %v1099_v58, %v1097_v51 }
 0x109   : > { %v1480_v29 = vxor.u32 2147483648, %v1479_v59  ;;  %v1105_v53 = vshll.u32 %v1102_v1, 16  ;;  %v1121_v5 = vand.u32 65535, %v1091_v25  ;;  %v1122_v43 = vshrl.u32 %v1091_v25, 16 }
 0x10a   : > { %v1618_v15 = vsel %vm1616_vm7, %v1617_v9, %v5369_v13  ;;  %v1107_v23 = vshll.u32 %v5378_v28, 16  ;;  %v5393_v49 = vsel %vm1515_vm6, %v1637_v17, %v1613_v47  ;;  %v1086_v4 = vsel %vm1082_vm4, %v5335_v20, %v1085_v10 }
 0x10b   : > { %v1481_v48 = vsel %vm1360_vm12, %v1480_v29, %v1479_v59  ;;  %v1619_v39 = vclz %v1618_v15  ;;  %vm1109_vm9 = vc.u32 %v1101_v37, %v1105_v53  ;;  %v1111_v36 = vadd.s32 %v1105_v53, %v1101_v37 }
 0x10c   : > { %v5389_v18 = vsel %vm5301_vm15, %v4986_v27, %v1481_v48  ;;  %v1104_v62 = vmul.u32 %v1100_v11, %v1098_v44  ;;  %v1110_v58 = vsel %vm1109_vm9, 1, %v8659_v35  ;;  %v8669_v34 = vand.u32 2147483647, %v4989_v30 }
 0x10d   : > { %v1486_v8 = vmul.f32 %v5389_v18, %v5389_v18  ;;  %v4583_v60 = vadd.s32 4294967294, %v1619_v39  ;;  %vm1113_vm8 = vc.u32 %v1111_v36, %v1107_v23  ;;  %v1124_v9 = vmul.u32 %v1122_v43, %v1097_v51 }
 0x10e   : > { %vm5403_vm12 = vcmp.le.f32.partialorder %v8669_v34, 0.7853982  ;;  %v1112_v47 = vadd.s32 %v1110_v58, %v1104_v62  ;;  %v1114_v25 = vsel %vm1113_vm8, 1, %v8659_v35  ;;  %v1125_v17 = vmul.u32 %v1121_v5, %v1098_v44 }
 0x10f   : > { %v1487_v20 = vmul.f32 -0.001358992, %v1486_v8  ;;  %v1494_v11 = vmul.f32 -0.00019511016, %v1486_v8  ;;  %vm4584_vm13 = vcmp.lt.s32.totalorder %v4583_v60, 0  ;;  %v1123_v29 = vmul.u32 %v1121_v5, %v1097_v51 }
 0x110   : > { %v1622_v10 = vsel %vm4584_vm13, 0, %v4583_v60  ;;  %v1106_v37 = vshrl.u32 %v1102_v1, 16  ;;  %v1116_v53 = vadd.s32 %v1114_v25, %v1112_v47  ;;  %v1127_v15 = vshll.u32 %v1124_v9, 16 }
 0x111   : > { %v1488_v23 = vadd.f32 0.041655596, %v1487_v20  ;;  %v1495_v48 = vadd.f32 0.008332121, %v1494_v11  ;;  %v1623_v39 = vsub.s32 32, %v1622_v10  ;;  %v1126_v36 = vmul.u32 %v1122_v43, %v1098_v44 }
 0x112   : > { %v1624_v34 = vshll.u32 %v5369_v13, %v1622_v10  ;;  %v1627_v26 = vsub.s32 4294967266, %v1622_v10  ;;  %v1129_v62 = vshll.u32 %v1125_v17, 16  ;;  %vm1131_vm14 = vc.u32 %v1123_v29, %v1127_v15 }
 0x113   : > { %v1489_v58 = vmul.f32 %v1488_v23, %v1486_v8  ;;  %v1496_v54 = vmul.f32 %v1495_v48, %v1486_v8  ;;  %v1625_v19 = vshrl.u32 %v1607_v16, %v1623_v39  ;;  %v1132_v33 = vsel %vm1131_vm14, 1, %v8659_v35 }
 0x114   : > { %v1628_v41 = vadd.s32 127, %v1627_v26  ;;  %v1117_v51 = vadd.s32 %v1116_v53, %v1106_v37  ;;  %v1133_v5 = vadd.s32 %v1127_v15, %v1123_v29  ;;  %v1134_v1 = vadd.s32 %v1132_v33, %v1126_v36 }
 0x115   : > { %v1490_v60 = vadd.f32 -0.4999988, %v1489_v58  ;;  %v1497_v47 = vadd.f32 -0.16666654, %v1496_v54  ;;  %vm1508_vm10 = vcmp.eq.s32.totalorder %v5367_v55, 2  ;;  %v1087_v44 = vsel %vm1081_vm5, %v1084_v31, %v1086_v4 }
 0x116   : > { %vm1505_vm15 = vcmp.eq.s32.totalorder %v5367_v55, 0  ;;  %v1626_v13 = vor.u32 %v1625_v19, %v1624_v34  ;;  %v1629_v43 = vshll.u32 %v1628_v41, 23  ;;  %v1108_v25 = vshrl.u32 %v5378_v28, 16 }
 0x117   : > { %vm1135_vm0 = vc.u32 %v1133_v5, %v1129_v62  ;;  %v1491_v16 = vmul.f32 %v1490_v60, %v1486_v8  ;;  %v1498_v20 = vmul.f32 %v1497_v47, %v1486_v8  ;;  %vm1504_vm1 = vcmp.lt.s32.totalorder %v5367_v55, 2 }
 0x118   : > { %v1640_v33 = vsel %vm5403_vm12, 0, %v5393_v49  ;;  %v1136_v26 = vsel %vm1135_vm0, 1, %v8659_v35  ;;  %vm1501_vm2 = vweird.f32 %v4986_v27  ;;  %v1630_v6 = vor.u32 4788187, %v1629_v43 }
 0x119   : > { %v5421_v54 = vadd.s32 %v1117_v51, %v1108_v25  ;;  %v1128_v19 = vshrl.u32 %v1124_v9, 16  ;;  %v1138_v41 = vadd.s32 %v1136_v26, %v1134_v1  ;;  %vm1238_vm3 = vcmp.lt.s32.totalorder %v5249_v2, 4 }
 0x11a   : > { %v1492_v31 = vadd.f32 1.0, %v1491_v16  ;;  %v1499_v28 = vadd.f32 1.0, %v1498_v20  ;;  %v1130_v4 = vshrl.u32 %v1125_v17, 16  ;;  %v1203_v8 = vand.u32 2147483647, %v5014_v7 }
 0x11b   : > { %v1631_v11 = vand.u32 2147483647, %v1630_v6  ;;  %v1633_v29 = vcvt.s32.f32 %v1626_v13  ;;  %v5425_v10 = vadd.s32 %v1133_v5, %v1129_v62  ;;  %v1139_v49 = vadd.s32 %v1138_v41, %v1128_v19 }
 0x11c   : > { %v1500_v37 = vmul.f32 %v1499_v28, %v5389_v18  ;;  %v1509_v53 = vxor.u32 2147483648, %v1492_v31  ;;  %v1141_v15 = vmul.u32 %v5354_v46, %v1087_v44  ;;  %v1210_v9 = vand.u32 8388607, %v1203_v8 }
 0x11d   : > { %v1634_v23 = vmul.f32 %v1633_v29, %v1631_v11  ;;  %v1140_v48 = vadd.s32 %v1139_v49, %v1130_v4  ;;  %vm1143_vm4 = vc.u32 %v5421_v54, %v5425_v10  ;;  %v1221_v17 = vshrl.u32 %v8661_v63, %v5258_v24 }
 0x11e   : > { %v1506_v39 = vxor.u32 2147483648, %v1500_v37  ;;  %v1220_v36 = vshll.u32 %v8660_v50, %v5201_v56  ;;  %v1223_v18 = vshll.u32 %v8661_v63, %v5201_v56  ;;  %v1224_v46 = vshrl.u32 %v8662_v42, %v5258_v24 }
 0x11f   : > { %v1510_v34 = vsel %vm1508_vm10, %v1509_v53, %v1500_v37  ;;  %v1635_v62 = vxor.u32 2147483648, %v1634_v23  ;;  %v1144_v58 = vadd.s32 1, %v1140_v48  ;;  %v1211_v51 = vor.u32 8388608, %v1210_v9 }
 0x120   : > { %v1507_v5 = vsel %vm1505_vm15, %v1492_v31, %v1506_v39  ;;  %v5445_v1 = vor.u32 %v1224_v46, %v1223_v18  ;;  %v1226_v60 = vshll.u32 %v8662_v42, %v5201_v56  ;;  %v1227_v47 = vshrl.u32 %v8663_v32, %v5258_v24 }
 0x121   : > { %v1511_v44 = vsel %vm1504_vm1, %v1507_v5, %v1510_v34  ;;  %v1636_v13 = vsel %vm1515_vm6, %v1635_v62, %v1634_v23  ;;  %v1145_v43 = vsel %vm1143_vm4, %v1144_v58, %v1140_v48  ;;  %v5458_v25 = vor.u32 %v1221_v17, %v1220_v36 }
 0x122   : > { %v1512_v16 = vsel %vm1501_vm2, nan, %v1511_v44  ;;  %v5465_v56 = vsel %vm5403_vm12, %v4989_v30, %v1636_v13  ;;  %v1146_v20 = vadd.s32 %v1145_v43, %v1141_v15  ;;  %v1228_v55 = vor.u32 %v1227_v47, %v1226_v60 }
 0x123   : > { %v5469_v26 = vshrl.u32 %v8668_v45, %v5130_v40  ;;  %v8672_v6 = vor.u32 %v5316_v38, %v5280_v12  ;;  %1721 = vmatpush.msrb.mxu2 %v1512_v16  ;;  %v1641_v27 = vmul.f32 %v5465_v56, %v5465_v56  ;;  %vm1235_vm5 = vcmp.lt.s32.totalorder %v5249_v2, 1 }
 0x124   : > { %v1244_v59 = vsel %vm1238_vm3, %v5312_v14, 920167782  ;;  %v1657_v41 = vadd.s32 3, %v1640_v33  ;;  %v1147_v31 = vadd.s32 536870912, %v1146_v20  ;;  %v1247_v28 = vsel %vm1235_vm5, %v5445_v1, %v1228_v55 }
 0x125   : > { %v1248_v19 = vsel %vm1238_vm3, %v8672_v6, 1326507024  ;;  %v1642_v12 = vmul.f32 -0.001358992, %v1641_v27  ;;  %v1649_v38 = vmul.f32 -0.00019511016, %v1641_v27  ;;  %v1243_v11 = vsel %vm1235_vm5, %v5458_v25, %v5445_v1 }
 0x126   : > { %vm1236_vm6 = vcmp.lt.s32.totalorder %v5249_v2, 2  ;;  %vm1237_vm7 = vcmp.lt.s32.totalorder %v5249_v2, 3  ;;  %v1148_v4 = vshrl.u32 %v1147_v31, 30  ;;  %v5494_v29 = vshll.u32 %v1211_v51, 8 }
 0x127   : > { %v1249_v33 = vsel %vm1237_vm7, %v5312_v14, %v1248_v19  ;;  %v1643_v49 = vadd.f32 0.041655596, %v1642_v12  ;;  %v1650_v37 = vadd.f32 0.008332121, %v1649_v38  ;;  %v1245_v53 = vsel %vm1237_vm7, %v1228_v55, %v1244_v59 }
 0x128   : > { %v1250_v15 = vsel %vm1236_vm6, %v1247_v28, %v1249_v33  ;;  %v8673_v9 = vor.u32 %v5113_v22, %v5109_v21  ;;  %v5509_v14 = vor.u32 %v5160_v3, %v5138_v57  ;;  %v1658_v48 = vand.u32 3, %v1657_v41 }
 0x129   : > { %v1149_v17 = vshll.u32 %v1148_v4, 30  ;;  %v924_v39 = vor.u32 %v5469_v26, %v5149_v61  ;;  %v1644_v36 = vmul.f32 %v1643_v49, %v1641_v27  ;;  %v1651_v18 = vmul.f32 %v1650_v37, %v1641_v27 }
 0x12a   : > { %v5505_v23 = vsel %vm773_vm11, %v8673_v9, 1326507024  ;;  %v1255_v46 = vshrl.u32 %v1250_v15, 16  ;;  %v5517_v21 = vsel %vm1236_vm6, %v1243_v11, %v1245_v53  ;;  %v1252_v22 = vand.u32 65535, %v5494_v29 }
 0x12b   : > { %v5513_v34 = vsub.s32 %v1146_v20, %v1149_v17  ;;  %v1254_v62 = vand.u32 65535, %v1250_v15  ;;  %v1645_v58 = vadd.f32 -0.4999988, %v1644_v36  ;;  %v1652_v57 = vadd.f32 -0.16666654, %v1651_v18 }
 0x12c   : > { %vm1050_vm9 = vcmp.lt.s32.totalorder %v5008_v0, 0  ;;  %v1172_v3 = vsub.s32 4, %v1148_v4  ;;  %vm1660_vm8 = vcmp.eq.s32.totalorder %v1658_v48, 0  ;;  %vm1663_vm12 = vcmp.eq.s32.totalorder %v1658_v48, 2 }
 0x12d   : > { %vm1151_vm13 = vcmp.lt.s32.totalorder %v5513_v34, 0  ;;  %v1152_v51 = vsub.s32 0, %v5513_v34  ;;  %v1253_v5 = vshrl.u32 %v5494_v29, 16  ;;  %v1257_v60 = vmul.u32 %v1255_v46, %v1252_v22 }
 0x12e   : > { %v1646_v47 = vmul.f32 %v1645_v58, %v1641_v27  ;;  %v1653_v44 = vmul.f32 %v1652_v57, %v1641_v27  ;;  %vm1659_vm14 = vcmp.lt.s32.totalorder %v1658_v48, 2  ;;  %v1142_v13 = vadd.s32 %v5425_v10, %v5421_v54 }
 0x12f   : > { %v1276_v43 = vand.u32 65535, %v5517_v21  ;;  %vm1656_vm10 = vweird.f32 %v4989_v30  ;;  %v1153_v16 = vsel %vm1151_vm13, %v1152_v51, %v5513_v34  ;;  %v5529_v20 = vmul.u32 %v1254_v62, %v1253_v5 }
 0x130   : > { %v1260_v6 = vshll.u32 %v1257_v60, 16  ;;  %v1277_v19 = vshrl.u32 %v5517_v21, 16  ;;  %v1647_v59 = vadd.f32 1.0, %v1646_v47  ;;  %v1654_v41 = vadd.f32 1.0, %v1653_v44 }
 0x131   : > { %v1154_v31 = vclz %v1153_v16  ;;  %v1256_v28 = vmul.u32 %v1254_v62, %v1252_v22  ;;  %v5534_v27 = vsel %vm1050_vm9, %v1172_v3, %v1148_v4  ;;  %v1219_v54 = vshrl.u32 %v8660_v50, %v5258_v24 }
 0x132   : > { %v1240_v10 = vsel %vm1238_vm3, %v1228_v55, 2102212464  ;;  %v1259_v12 = vmul.u32 %v1255_v46, %v1253_v5  ;;  %v1655_v38 = vmul.f32 %v1654_v41, %v5465_v56  ;;  %v1664_v11 = vxor.u32 2147483648, %v1647_v59 }
 0x133   : > { %v4574_v33 = vadd.s32 4294967294, %v1154_v31  ;;  %vm1264_vm15 = vc.u32 %v1256_v28, %v1260_v6  ;;  %v8674_v49 = vand.u32 2147483647, %v5008_v0  ;;  %v1262_v4 = vshll.u32 %v5529_v20, 16 }
 0x134   : > { %v1265_v53 = vsel %vm1264_vm15, 1, %v8659_v35  ;;  %v1266_v24 = vadd.s32 %v1260_v6, %v1256_v28  ;;  %v1279_v15 = vmul.u32 %v1277_v19, %v1252_v22  ;;  %v1661_v9 = vxor.u32 2147483648, %v1655_v38  ;;  %v8677_v6 = vld [vmem:[#allocation26_spill] sm:$0xff] }
 0x135   : > { %vm5543_vm0 = vcmp.le.f32.partialorder %v8674_v49, 0.7853982  ;;  %vm4575_vm1 = vcmp.lt.s32.totalorder %v4574_v33, 0  ;;  %v1267_v55 = vadd.s32 %v1265_v53, %v1259_v12  ;;  %v1278_v17 = vmul.u32 %v1276_v43, %v1252_v22  ;;  %v8678_v53 = vld [vmem:[#allocation10_spill] sm:$0xff] }
 0x136   : > { %v1157_v56 = vsel %vm4575_vm1, 0, %v4574_v33  ;;  %vm1268_vm2 = vc.u32 %v1266_v24, %v1262_v4  ;;  %v1280_v36 = vmul.u32 %v1276_v43, %v1253_v5  ;;  %v1282_v18 = vshll.u32 %v1279_v15, 16 }
 0x137   : > { %v1662_v46 = vsel %vm1660_vm8, %v1647_v59, %v1661_v9  ;;  %v1665_v21 = vsel %vm1663_vm12, %v1664_v11, %v1655_v38  ;;  %v1158_v62 = vsub.s32 32, %v1157_v56  ;;  %v1162_v58 = vsub.s32 4294967266, %v1157_v56 }
 0x138   : > { %v1666_v57 = vsel %vm1659_vm14, %v1662_v46, %v1665_v21  ;;  %v1159_v3 = vshll.u32 %v5513_v34, %v1157_v56  ;;  %v1261_v51 = vshrl.u32 %v1257_v60, 16  ;;  %v1269_v47 = vsel %vm1268_vm2, 1, %v8659_v35 }
 0x139   : > { %v1667_v22 = vsel %vm1656_vm10, nan, %v1666_v57  ;;  %v1160_v44 = vshrl.u32 %v1142_v13, %v1158_v62  ;;  %v1163_v16 = vadd.s32 127, %v1162_v58  ;;  %v1271_v43 = vadd.s32 %v1269_v47, %v1267_v55 }
 0x13a   : > { %vm928_vm3 = vcmp.lt.s32.totalorder %v8677_v6, 4  ;;  %1750 = vmatpush.msrb.mxu3 %v1667_v22  ;;  %v1281_v59 = vmul.u32 %v1277_v19, %v1253_v5  ;;  %v1284_v41 = vshll.u32 %v1280_v36, 16  ;;  %vm1286_vm4 = vc.u32 %v1278_v17, %v1282_v18 }
 0x13b   : > { %v1288_v31 = vadd.s32 %v1282_v18, %v1278_v17  ;;  %v1161_v48 = vor.u32 %v1160_v44, %v1159_v3  ;;  %v1164_v28 = vshll.u32 %v1163_v16, 23  ;;  %v1272_v12 = vadd.s32 %v1271_v43, %v1261_v51  ;;  %v8680_v17 = vld [vmem:[#allocation19_spill] sm:$0xff] }
 0x13c   : > { %v1287_v34 = vsel %vm1286_vm4, 1, %v8659_v35  ;;  %v1239_v30 = vsel %vm1235_vm5, %v1219_v54, %v5458_v25  ;;  %v1241_v60 = vsel %vm1237_vm7, %v5445_v1, %v1240_v10  ;;  %v1175_v5 = vsel %vm5543_vm0, 0, %v5534_v27  ;;  %v8679_v27 = vld [vmem:[#allocation17_spill] sm:$0xff] }
 0x13d   : > { %v1289_v13 = vadd.s32 %v1287_v34, %v1281_v59  ;;  %vm1290_vm8 = vc.u32 %v1288_v31, %v1284_v41  ;;  %v1165_v38 = vor.u32 4788187, %v1164_v28  ;;  %v1263_v19 = vshrl.u32 %v5529_v20, 16  ;;  %v8681_v28 = vld [vmem:[#allocation25_spill] sm:$0xff] }
 0x13e   : > { %v1291_v11 = vsel %vm1290_vm8, 1, %v8659_v35  ;;  %v1283_v33 = vshrl.u32 %v1279_v15, 16  ;;  %v1285_v49 = vshrl.u32 %v1280_v36, 16  ;;  %v738_v25 = vand.u32 2147483647, %v8678_v53 }
 0x13f   : > { %v1293_v4 = vadd.s32 %v1291_v11, %v1289_v13  ;;  %v1166_v54 = vand.u32 2147483647, %v1165_v38  ;;  %v1168_v24 = vcvt.s32.f32 %v1161_v48  ;;  %v5570_v9 = vadd.s32 %v1272_v12, %v1263_v19  ;;  %v8682_v13 = vld [vmem:[#allocation27_spill] sm:$0xff] }
 0x140   : > { %v5572_v1 = vadd.s32 %v1288_v31, %v1284_v41  ;;  %v745_v55 = vand.u32 8388607, %v738_v25  ;;  %v755_v20 = vshll.u32 %v8660_v50, %v8679_v27  ;;  %v756_v15 = vshrl.u32 %v8661_v63, %v8680_v17 }
 0x141   : > { %v1294_v10 = vadd.s32 %v1293_v4, %v1283_v33  ;;  %v1169_v56 = vmul.f32 %v1168_v24, %v1166_v54  ;;  %v758_v36 = vshll.u32 %v8661_v63, %v8679_v27  ;;  %v759_v18 = vshrl.u32 %v8662_v42, %v8680_v17 }
 0x142   : > { %v761_v46 = vshll.u32 %v8662_v42, %v8679_v27  ;;  %v1242_v21 = vsel %vm1236_vm6, %v1239_v30, %v1241_v60  ;;  %v746_v58 = vor.u32 8388608, %v745_v55  ;;  %v762_v57 = vshrl.u32 %v8663_v32, %v8680_v17 }
 0x143   : > { %v1295_v62 = vadd.s32 %v1294_v10, %v1285_v49  ;;  %v5593_v3 = vsel %vm928_vm3, %v5509_v14, 920167782  ;;  %v1170_v51 = vxor.u32 2147483648, %v1169_v56  ;;  %v1192_v47 = vadd.s32 3, %v1175_v5 }
 0x144   : > { %vm1298_vm5 = vc.u32 %v5570_v9, %v5572_v1  ;;  %v757_v44 = vor.u32 %v756_v15, %v755_v20  ;;  %v760_v16 = vor.u32 %v759_v18, %v758_v36  ;;  %v763_v2 = vor.u32 %v762_v57, %v761_v46 }
 0x145   : > { %v1299_v22 = vadd.s32 1, %v1295_v62  ;;  %v1171_v43 = vsel %vm1050_vm9, %v1170_v51, %v1169_v56  ;;  %v1296_v59 = vmul.u32 %v5494_v29, %v1242_v21  ;;  %v754_v41 = vshrl.u32 %v8660_v50, %v8680_v17 }
 0x146   : > { %vm772_vm6 = vcmp.lt.s32.totalorder %v5081_v52, 3  ;;  %v1174_v31 = vsel %vm5543_vm0, %v5008_v0, %v1171_v43  ;;  %v5610_v34 = vshll.u32 %v746_v58, 8  ;;  %vm770_vm7 = vcmp.lt.s32.totalorder %v5081_v52, 1 }
 0x147   : > { %v1300_v48 = vsel %vm1298_vm5, %v1299_v22, %v1295_v62  ;;  %v784_v12 = vsel %vm772_vm6, %v8681_v28, %v5505_v23  ;;  %v1176_v30 = vmul.f32 %v1174_v31, %v1174_v31  ;;  %vm771_vm9 = vcmp.lt.s32.totalorder %v5081_v52, 2 }
 0x148   : > { %v1301_v60 = vadd.s32 %v1300_v48, %v1296_v59  ;;  %v775_v29 = vsel %vm773_vm11, %v763_v2, 2102212464  ;;  %v778_v37 = vsel %vm770_vm7, %v757_v44, %v760_v16  ;;  %v780_v38 = vsel %vm772_vm6, %v763_v2, %v8682_v13 }
 0x149   : > { %v782_v23 = vsel %vm770_vm7, %v760_v16, %v763_v2  ;;  %v1177_v5 = vmul.f32 -0.001358992, %v1176_v30  ;;  %v1184_v19 = vmul.f32 -0.00019511016, %v1176_v30  ;;  %v787_v49 = vand.u32 65535, %v5610_v34 }
 0x14a   : > { %v1302_v11 = vadd.s32 536870912, %v1301_v60  ;;  %v785_v33 = vsel %vm771_vm9, %v782_v23, %v784_v12  ;;  %v788_v4 = vshrl.u32 %v5610_v34, 16  ;;  %v781_v20 = vsel %vm771_vm9, %v778_v37, %v780_v38 }
 0x14b   : > { %v789_v54 = vand.u32 65535, %v785_v33  ;;  %v790_v24 = vshrl.u32 %v785_v33, 16  ;;  %v1178_v10 = vadd.f32 0.041655596, %v1177_v5  ;;  %v1185_v55 = vadd.f32 0.008332121, %v1184_v19 }
 0x14c   : > { %v5627_v27 = vshrl.u32 %v1302_v11, 30  ;;  %v774_v17 = vsel %vm770_vm7, %v754_v41, %v757_v44  ;;  %v776_v15 = vsel %vm772_vm6, %v760_v16, %v775_v29  ;;  %v5642_v18 = vsel %vm928_vm3, %v924_v39, 1326507024 }
 0x14d   : > { %v792_v56 = vmul.u32 %v790_v24, %v787_v49  ;;  %v5635_v36 = vmul.u32 %v789_v54, %v788_v4  ;;  %v1179_v46 = vmul.f32 %v1178_v10, %v1176_v30  ;;  %v1186_v21 = vmul.f32 %v1185_v55, %v1176_v30 }
 0x14e   : > { %v1304_v62 = vshll.u32 %v5627_v27, 30  ;;  %v1193_v58 = vand.u32 3, %v1192_v47  ;;  %v791_v57 = vmul.u32 %v789_v54, %v787_v49  ;;  %v812_v22 = vshrl.u32 %v781_v20, 16 }
 0x14f   : > { %v795_v51 = vshll.u32 %v792_v56, 16  ;;  %v1180_v44 = vadd.f32 -0.4999988, %v1179_v46  ;;  %v1187_v16 = vadd.f32 -0.16666654, %v1186_v21  ;;  %v5649_v43 = vsel %vm771_vm9, %v774_v17, %v776_v15 }
 0x150   : > { %v5645_v2 = vsub.s32 %v1301_v60, %v1304_v62  ;;  %v794_v61 = vmul.u32 %v790_v24, %v788_v4  ;;  %v797_v26 = vshll.u32 %v5635_v36, 16  ;;  %vm1191_vm13 = vweird.f32 %v5008_v0 }
 0x151   : > { %vm799_vm11 = vc.u32 %v791_v57, %v795_v51  ;;  %v801_v39 = vadd.s32 %v795_v51, %v791_v57  ;;  %v1181_v59 = vmul.f32 %v1180_v44, %v1176_v30  ;;  %v1188_v41 = vmul.f32 %v1187_v16, %v1176_v30 }
 0x152   : > { %vm1306_vm12 = vcmp.lt.s32.totalorder %v5645_v2, 0  ;;  %v1307_v47 = vsub.s32 0, %v5645_v2  ;;  %v800_v48 = vsel %vm799_vm11, 1, %v8659_v35  ;;  %v811_v28 = vand.u32 65535, %v781_v20 }
 0x153   : > { %vm803_vm14 = vc.u32 %v801_v39, %v797_v26  ;;  %v814_v52 = vmul.u32 %v812_v22, %v787_v49  ;;  %v1182_v12 = vadd.f32 1.0, %v1181_v59  ;;  %v1189_v60 = vadd.f32 1.0, %v1188_v41  ;;  %v8685_v26 = vld [vmem:[#allocation11_spill] sm:$0xff] }
 0x154   : > { %v1308_v29 = vsel %vm1306_vm12, %v1307_v47, %v5645_v2  ;;  %v802_v37 = vadd.s32 %v800_v48, %v794_v61  ;;  %vm1194_vm10 = vcmp.lt.s32.totalorder %v1193_v58, 2  ;;  %vm1195_vm15 = vcmp.eq.s32.totalorder %v1193_v58, 0 }
 0x155   : > { %vm1205_vm0 = vcmp.lt.s32.totalorder %v5014_v7, 0  ;;  %v1309_v30 = vclz %v1308_v29  ;;  %v804_v13 = vsel %vm803_vm14, 1, %v8659_v35  ;;  %v1190_v38 = vmul.f32 %v1189_v60, %v1174_v31 }
 0x156   : > { %vm1198_vm1 = vcmp.eq.s32.totalorder %v1193_v58, 2  ;;  %v1199_v23 = vxor.u32 2147483648, %v1182_v12  ;;  %v806_v5 = vadd.s32 %v804_v13, %v802_v37  ;;  %v1297_v19 = vadd.s32 %v5572_v1, %v5570_v9  ;;  %v8693_v1 = vld [vmem:[#allocation20_spill] sm:$0xff] }
 0x157   : > { %v4577_v11 = vadd.s32 4294967294, %v1309_v30  ;;  %v815_v33 = vmul.u32 %v811_v28, %v788_v4  ;;  %v831_v54 = vmul.u32 %v5610_v34, %v5649_v43  ;;  %v1196_v24 = vxor.u32 2147483648, %v1190_v38  ;;  %v8692_v43 = vld [vmem:[#allocation16_spill] sm:$0xff] }
 0x158   : > { %v796_v10 = vshrl.u32 %v792_v56, 16  ;;  %v813_v55 = vmul.u32 %v811_v28, %v787_v49  ;;  %v817_v20 = vshll.u32 %v814_v52, 16  ;;  %v1200_v17 = vsel %vm1198_vm1, %v1199_v23, %v1190_v38 }
 0x159   : > { %vm4578_vm2 = vcmp.lt.s32.totalorder %v4577_v11, 0  ;;  %v1327_v15 = vsub.s32 4, %v5627_v27  ;;  %v816_v31 = vmul.u32 %v812_v22, %v788_v4  ;;  %v1197_v46 = vsel %vm1195_vm15, %v1182_v12, %v1196_v24 }
 0x15a   : > { %v1312_v21 = vsel %vm4578_vm2, 0, %v4577_v11  ;;  %v807_v62 = vadd.s32 %v806_v5, %v796_v10  ;;  %vm821_vm4 = vc.u32 %v813_v55, %v817_v20  ;;  %v1201_v9 = vsel %vm1194_vm10, %v1197_v46, %v1200_v17 }
 0x15b   : > { %vm5668_vm8 = vcmp.le.f32.partialorder %v1203_v8, 0.7853982  ;;  %v1313_v49 = vsub.s32 32, %v1312_v21  ;;  %v1317_v56 = vsub.s32 4294967266, %v1312_v21  ;;  %v819_v57 = vshll.u32 %v815_v33, 16 }
 0x15c   : > { %v1202_v51 = vsel %vm1191_vm13, nan, %v1201_v9  ;;  %v1314_v4 = vshll.u32 %v5645_v2, %v1312_v21  ;;  %v822_v22 = vsel %vm821_vm4, 1, %v8659_v35  ;;  %v823_v44 = vadd.s32 %v817_v20, %v813_v55 }
 0x15d   : > { %1722 = vmatpush.msrb.mxu2 %v1202_v51  ;;  %v1315_v58 = vshrl.u32 %v1297_v19, %v1313_v49  ;;  %v1318_v16 = vadd.s32 127, %v1317_v56  ;;  %v824_v61 = vadd.s32 %v822_v22, %v816_v31  ;;  %v893_v8 = vand.u32 2147483647, %v8685_v26  ;;  %v8687_v19 = vld [vmem:[#allocation14_spill] sm:$0xff] }
 0x15e   : > { %v1328_v39 = vsel %vm1205_vm0, %v1327_v15, %v5627_v27  ;;  %v798_v59 = vshrl.u32 %v5635_v36, 16  ;;  %v818_v41 = vshrl.u32 %v814_v52, 16  ;;  %vm825_vm5 = vc.u32 %v823_v44, %v819_v57  ;;  %v8686_v27 = vld [vmem:[#allocation24_spill] sm:$0xff]  ;;  %v8688_v51 = vld [vmem:[#allocation18_spill] sm:$0xff] }
 0x15f   : > { %v1316_v0 = vor.u32 %v1315_v58, %v1314_v4  ;;  %v1319_v47 = vshll.u32 %v1318_v16, 23  ;;  %v820_v2 = vshrl.u32 %v815_v33, 16  ;;  %v826_v48 = vsel %vm825_vm5, 1, %v8659_v35  ;;  %v8689_v4 = vld [vmem:[#allocation21_spill] sm:$0xff] }
 0x160   : > { %v5682_v28 = vadd.s32 %v807_v62, %v798_v59  ;;  %v5684_v12 = vadd.s32 %v823_v44, %v819_v57  ;;  %v828_v60 = vadd.s32 %v826_v48, %v824_v61  ;;  %v900_v29 = vand.u32 8388607, %v893_v8 }
 0x161   : > { %v1320_v37 = vor.u32 4788187, %v1319_v47  ;;  %v1323_v30 = vcvt.s32.f32 %v1316_v0  ;;  %v910_v36 = vshll.u32 %v8660_v50, %v8686_v27  ;;  %v911_v52 = vshrl.u32 %v8661_v63, %v5130_v40  ;;  %v8690_v47 = vld [vmem:[#allocation22_spill] sm:$0xff] }
 0x162   : > { %v829_v13 = vadd.s32 %v828_v60, %v818_v41  ;;  %v901_v38 = vor.u32 8388608, %v900_v29  ;;  %v913_v23 = vshll.u32 %v8661_v63, %v8686_v27  ;;  %v914_v5 = vshrl.u32 %v8662_v42, %v5130_v40 }
 0x163   : > { %vm463_vm6 = vcmp.lt.s32.totalorder %v8687_v19, 4  ;;  %v1321_v11 = vand.u32 2147483647, %v1320_v37  ;;  %v5697_v33 = vor.u32 %v911_v52, %v910_v36  ;;  %v916_v24 = vshll.u32 %v8662_v42, %v8686_v27 }
 0x164   : > { %v917_v10 = vshrl.u32 %v8663_v32, %v5130_v40  ;;  %v1330_v55 = vsel %vm5668_vm8, 0, %v1328_v39  ;;  %v830_v20 = vadd.s32 %v829_v13, %v820_v2  ;;  %vm833_vm7 = vc.u32 %v5682_v28, %v5684_v12 }
 0x165   : > { %v5707_v17 = vor.u32 %v914_v5, %v913_v23  ;;  %v1324_v15 = vmul.f32 %v1323_v30, %v1321_v11  ;;  %vm925_vm9 = vcmp.lt.s32.totalorder %v8677_v6, 1  ;;  %vm927_vm11 = vcmp.lt.s32.totalorder %v8677_v6, 3 }
 0x166   : > { %v918_v31 = vor.u32 %v917_v10, %v916_v24  ;;  %v834_v46 = vadd.s32 1, %v830_v20  ;;  %v939_v62 = vsel %vm927_vm11, %v5509_v14, %v5642_v18  ;;  %v5719_v9 = vshll.u32 %v901_v38, 8 }
 0x167   : > { %v933_v21 = vsel %vm925_vm9, %v5697_v33, %v5707_v17  ;;  %v1325_v49 = vxor.u32 2147483648, %v1324_v15  ;;  %vm926_vm12 = vcmp.lt.s32.totalorder %v8677_v6, 2  ;;  %v459_v22 = vor.u32 %v8689_v4, %v8688_v51 }
 0x168   : > { %v935_v56 = vsel %vm927_vm11, %v918_v31, %v5593_v3  ;;  %v937_v57 = vsel %vm925_vm9, %v5707_v17, %v918_v31  ;;  %v1347_v44 = vadd.s32 3, %v1330_v55  ;;  %v835_v14 = vsel %vm833_vm7, %v834_v46, %v830_v20 }
 0x169   : > { %v940_v18 = vsel %vm926_vm12, %v937_v57, %v939_v62  ;;  %v1326_v58 = vsel %vm1205_vm0, %v1325_v49, %v1324_v15  ;;  %v836_v3 = vadd.s32 %v835_v14, %v831_v54  ;;  %v5742_v16 = vsel %vm926_vm12, %v933_v21, %v935_v56 }
 0x16a   : > { %v942_v61 = vand.u32 65535, %v5719_v9  ;;  %v5748_v39 = vsel %vm5668_vm8, %v5014_v7, %v1326_v58  ;;  %v5751_v59 = vshrl.u32 %v5719_v9, 16  ;;  %v944_v41 = vand.u32 65535, %v940_v18 }
 0x16b   : > { %v945_v0 = vshrl.u32 %v940_v18, 16  ;;  %v8691_v2 = vmov 920167782   ;;  %v1331_v48 = vmul.f32 %v5748_v39, %v5748_v39  ;;  %v837_v60 = vadd.s32 536870912, %v836_v3 }
 0x16c   : > { %v5755_v34 = vshrl.u32 %v8691_v2, %v8690_v47  ;;  %v5759_v54 = vshll.u32 %v8691_v2, %v8692_v43  ;;  %v5766_v29 = vsel %vm463_vm6, %v8693_v1, 920167782  ;;  %v5769_v30 = vmul.u32 %v944_v41, %v5751_v59 }
 0x16d   : > { %v947_v37 = vmul.u32 %v945_v0, %v942_v61  ;;  %v967_v27 = vshrl.u32 %v5742_v16, 16  ;;  %v5774_v36 = vshrl.u32 %v8668_v45, %v8690_v47  ;;  %v1332_v52 = vmul.f32 -0.001358992, %v1331_v48 }
 0x16e   : > { %v1339_v13 = vmul.f32 -0.00019511016, %v1331_v48  ;;  %v5776_v38 = vshrl.u32 %v837_v60, 30  ;;  %v5780_v23 = vsel %vm463_vm6, %v459_v22, 1326507024  ;;  %v5782_v5 = vand.u32 3, %v1347_v44 }
 0x16f   : > { %v946_v11 = vmul.u32 %v944_v41, %v942_v61  ;;  %v950_v24 = vshll.u32 %v947_v37, 16  ;;  %v1333_v10 = vadd.f32 0.041655596, %v1332_v52  ;;  %v909_v15 = vshrl.u32 %v8660_v50, %v5130_v40 }
 0x170   : > { %v1340_v55 = vadd.f32 0.008332121, %v1339_v13  ;;  %v839_v20 = vshll.u32 %v5776_v38, 30  ;;  %v952_v46 = vshll.u32 %v5769_v30, 16  ;;  %v5788_v62 = vmul.u32 %v967_v27, %v942_v61 }
 0x171   : > { %vm954_vm13 = vc.u32 %v946_v11, %v950_v24  ;;  %v956_v21 = vadd.s32 %v950_v24, %v946_v11  ;;  %v1334_v49 = vmul.f32 %v1333_v10, %v1331_v48  ;;  %v966_v51 = vand.u32 65535, %v5742_v16 }
 0x172   : > { %v1341_v56 = vmul.f32 %v1340_v55, %v1331_v48  ;;  %v5790_v57 = vsub.s32 %v836_v3, %v839_v20  ;;  %v832_v4 = vadd.s32 %v5684_v12, %v5682_v28  ;;  %v949_v22 = vmul.u32 %v945_v0, %v5751_v59 }
 0x173   : > { %v955_v44 = vsel %vm954_vm13, 1, %v8659_v35  ;;  %vm958_vm14 = vc.u32 %v956_v21, %v952_v46  ;;  %v1335_v40 = vadd.f32 -0.4999988, %v1334_v49  ;;  %vm1353_vm10 = vcmp.eq.s32.totalorder %v5782_v5, 2 }
 0x174   : > { %v1342_v14 = vadd.f32 -0.16666654, %v1341_v56  ;;  %vm841_vm15 = vcmp.lt.s32.totalorder %v5790_v57, 0  ;;  %v842_v18 = vsub.s32 0, %v5790_v57  ;;  %vm1350_vm0 = vcmp.eq.s32.totalorder %v5782_v5, 0 }
 0x175   : > { %v930_v58 = vsel %vm928_vm3, %v918_v31, 2102212464  ;;  %v957_v3 = vadd.s32 %v955_v44, %v949_v22  ;;  %v959_v28 = vsel %vm958_vm14, 1, %v8659_v35  ;;  %v972_v12 = vshll.u32 %v5788_v62, 16 }
 0x176   : > { %v1336_v16 = vmul.f32 %v1335_v40, %v1331_v48  ;;  %v1343_v41 = vmul.f32 %v1342_v14, %v1331_v48  ;;  %vm1349_vm1 = vcmp.lt.s32.totalorder %v5782_v5, 2  ;;  %v843_v0 = vsel %vm841_vm15, %v842_v18, %v5790_v57 }
 0x177   : > { %v968_v60 = vmul.u32 %v966_v51, %v942_v61  ;;  %vm1346_vm2 = vweird.f32 %v5014_v7  ;;  %v844_v52 = vclz %v843_v0  ;;  %v929_v13 = vsel %vm925_vm9, %v909_v15, %v5697_v33  ;;  %v8696_v0 = vld [vmem:[#allocation8_spill] sm:$0xff] }
 0x178   : > { %v961_v31 = vadd.s32 %v959_v28, %v957_v3  ;;  %v970_v11 = vmul.u32 %v966_v51, %v5751_v59  ;;  %v1337_v24 = vadd.f32 1.0, %v1336_v16  ;;  %v1344_v10 = vadd.f32 1.0, %v1343_v41 }
 0x179   : > { %v951_v55 = vshrl.u32 %v947_v37, 16  ;;  %vm976_vm3 = vc.u32 %v968_v60, %v972_v12  ;;  %vm740_vm4 = vcmp.lt.s32.totalorder %v8678_v53, 0  ;;  %v4568_v48 = vadd.s32 4294967294, %v844_v52 }
 0x17a   : > { %v931_v61 = vsel %vm927_vm11, %v5707_v17, %v930_v58  ;;  %v953_v20 = vshrl.u32 %v5769_v30, 16  ;;  %v971_v46 = vmul.u32 %v967_v27, %v5751_v59  ;;  %v1345_v33 = vmul.f32 %v1344_v10, %v5748_v39  ;;  %v8697_v10 = vld [vmem:[#allocation12_spill] sm:$0xff] }
 0x17b   : > { %v1354_v15 = vxor.u32 2147483648, %v1337_v24  ;;  %v962_v21 = vadd.s32 %v961_v31, %v951_v55  ;;  %v977_v49 = vsel %vm976_vm3, 1, %v8659_v35  ;;  %vm4569_vm8 = vcmp.lt.s32.totalorder %v4568_v48, 0 }
 0x17c   : > { %v974_v37 = vshll.u32 %v970_v11, 16  ;;  %v978_v56 = vadd.s32 %v972_v12, %v968_v60  ;;  %v979_v51 = vadd.s32 %v977_v49, %v971_v46  ;;  %v1351_v22 = vxor.u32 2147483648, %v1345_v33 }
 0x17d   : > { %v847_v44 = vsel %vm4569_vm8, 0, %v4568_v48  ;;  %v862_v40 = vsub.s32 4, %v5776_v38  ;;  %v973_v17 = vshrl.u32 %v5788_v62, 16  ;;  %v1355_v30 = vsel %vm1353_vm10, %v1354_v15, %v1345_v33  ;;  %v8699_v33 = vld [vmem:[#allocation15_spill] sm:$0xff] }
 0x17e   : > { %v848_v59 = vsub.s32 32, %v847_v44  ;;  %v852_v27 = vsub.s32 4294967266, %v847_v44  ;;  %vm980_vm5 = vc.u32 %v978_v56, %v974_v37  ;;  %v1352_v39 = vsel %vm1350_vm0, %v1337_v24, %v1351_v22 }
 0x17f   : > { %v849_v14 = vshll.u32 %v5790_v57, %v847_v44  ;;  %v5827_v18 = vadd.s32 %v962_v21, %v953_v20  ;;  %v981_v58 = vsel %vm980_vm5, 1, %v8659_v35  ;;  %v1356_v3 = vsel %vm1349_vm1, %v1352_v39, %v1355_v30  ;;  %v8698_v20 = vld [vmem:[#allocation13_spill] sm:$0xff] }
 0x180   : > { %v850_v28 = vshrl.u32 %v832_v4, %v848_v59  ;;  %v853_v62 = vadd.s32 127, %v852_v27  ;;  %v983_v12 = vadd.s32 %v981_v58, %v979_v51  ;;  %v1357_v16 = vsel %vm1346_vm2, nan, %v1356_v3 }
 0x181   : > { %vm5836_vm7 = vcmp.le.f32.partialorder %v738_v25, 0.7853982  ;;  %v975_v57 = vshrl.u32 %v970_v11, 16  ;;  %v428_v60 = vand.u32 2147483647, %v8696_v0  ;;  %1751 = vmatpush.msrb.mxu3 %v1357_v16  ;;  %v5841_v5 = vadd.s32 %v978_v56, %v974_v37 }
 0x182   : > { %v851_v52 = vor.u32 %v850_v28, %v849_v14  ;;  %v854_v31 = vshll.u32 %v853_v62, 23  ;;  %v984_v4 = vadd.s32 %v983_v12, %v973_v17  ;;  %v863_v7 = vsel %vm740_vm4, %v862_v40, %v5776_v38 }
 0x183   : > { %v932_v24 = vsel %vm926_vm12, %v929_v13, %v931_v61  ;;  %v435_v25 = vand.u32 8388607, %v428_v60  ;;  %v445_v11 = vshll.u32 %v8660_v50, %v8697_v10  ;;  %vm988_vm9 = vc.u32 %v5827_v18, %v5841_v5 }
 0x184   : > { %v855_v55 = vor.u32 4788187, %v854_v31  ;;  %v985_v48 = vadd.s32 %v984_v4, %v975_v57  ;;  %v446_v46 = vshrl.u32 %v8661_v63, %v8698_v20  ;;  %vm618_vm11 = vcmp.lt.s32.totalorder %v8699_v33, 4 }
 0x185   : > { %v436_v38 = vor.u32 8388608, %v435_v25  ;;  %v448_v6 = vshll.u32 %v8661_v63, %v8697_v10  ;;  %v449_v13 = vshrl.u32 %v8662_v42, %v8698_v20  ;;  %v451_v61 = vshll.u32 %v8662_v42, %v8697_v10 }
 0x186   : > { %v856_v15 = vand.u32 2147483647, %v855_v55  ;;  %v858_v21 = vcvt.s32.f32 %v851_v52  ;;  %v989_v49 = vadd.s32 1, %v985_v48  ;;  %v452_v37 = vshrl.u32 %v8663_v32, %v8698_v20 }
 0x187   : > { %v865_v56 = vsel %vm5836_vm7, 0, %v863_v7  ;;  %v986_v51 = vmul.u32 %v5719_v9, %v932_v24  ;;  %v447_v22 = vor.u32 %v446_v46, %v445_v11  ;;  %v450_v44 = vor.u32 %v449_v13, %v448_v6  ;;  %v8700_v9 = vld [vmem:[#allocation23_spill] sm:$0xff] }
 0x188   : > { %v859_v40 = vmul.f32 %v858_v21, %v856_v15  ;;  %v990_v17 = vsel %vm988_vm9, %v989_v49, %v985_v48  ;;  %v453_v30 = vor.u32 %v452_v37, %v451_v61  ;;  %vm462_vm12 = vcmp.lt.s32.totalorder %v8687_v19, 3 }
 0x189   : > { %v991_v59 = vadd.s32 %v990_v17, %v986_v51  ;;  %vm460_vm13 = vcmp.lt.s32.totalorder %v8687_v19, 1  ;;  %v474_v27 = vsel %vm462_vm12, %v8693_v1, %v5780_v23  ;;  %v5877_v39 = vshll.u32 %v436_v38, 8 }
 0x18a   : > { %v5881_v14 = vor.u32 %v5755_v34, %v8700_v9  ;;  %v860_v58 = vxor.u32 2147483648, %v859_v40  ;;  %vm461_vm14 = vcmp.lt.s32.totalorder %v8687_v19, 2  ;;  %v472_v3 = vsel %vm460_vm13, %v450_v44, %v453_v30 }
 0x18b   : > { %v882_v28 = vadd.s32 3, %v865_v56  ;;  %v992_v62 = vadd.s32 536870912, %v991_v59  ;;  %v444_v12 = vshrl.u32 %v8660_v50, %v8698_v20  ;;  %v475_v1 = vsel %vm461_vm14, %v472_v3, %v474_v27 }
 0x18c   : > { %v861_v23 = vsel %vm740_vm4, %v860_v58, %v859_v40  ;;  %v468_v34 = vsel %vm460_vm13, %v447_v22, %v450_v44  ;;  %v470_v16 = vsel %vm462_vm12, %v453_v30, %v5766_v29  ;;  %v5898_v57 = vand.u32 65535, %v5877_v39 }
 0x18d   : > { %v864_v52 = vsel %vm5836_vm7, %v8678_v53, %v861_v23  ;;  %v5903_v31 = vshrl.u32 %v992_v62, 30  ;;  %v479_v4 = vand.u32 65535, %v475_v1  ;;  %v480_v7 = vshrl.u32 %v475_v1, 16 }
 0x18e   : > { %v614_v24 = vor.u32 %v5774_v36, %v5759_v54  ;;  %v5910_v25 = vsel %vm618_vm11, %v5881_v14, 920167782  ;;  %v866_v29 = vmul.f32 %v864_v52, %v864_v52  ;;  %v465_v11 = vsel %vm463_vm6, %v453_v30, 2102212464 }
 0x18f   : > { %v994_v10 = vshll.u32 %v5903_v31, 30  ;;  %v478_v41 = vshrl.u32 %v5877_v39, 16  ;;  %v482_v55 = vmul.u32 %v480_v7, %v5898_v57  ;;  %v5917_v46 = vand.u32 3, %v882_v28 }
 0x190   : > { %v867_v48 = vmul.f32 -0.001358992, %v866_v29  ;;  %v874_v20 = vmul.f32 -0.00019511016, %v866_v29  ;;  %v471_v54 = vsel %vm461_vm14, %v468_v34, %v470_v16  ;;  %v464_v38 = vsel %vm460_vm13, %v444_v12, %v447_v22 }
 0x191   : > { %v5921_v36 = vsub.s32 %v991_v59, %v994_v10  ;;  %v5925_v6 = vmul.u32 %v479_v4, %v478_v41  ;;  %v485_v13 = vshll.u32 %v482_v55, 16  ;;  %v466_v21 = vsel %vm462_vm12, %v450_v44, %v465_v11 }
 0x192   : > { %v868_v61 = vadd.f32 0.041655596, %v867_v48  ;;  %v875_v15 = vadd.f32 0.008332121, %v874_v20  ;;  %v481_v49 = vmul.u32 %v479_v4, %v5898_v57  ;;  %v484_v56 = vmul.u32 %v480_v7, %v478_v41 }
 0x193   : > { %vm996_vm6 = vcmp.lt.s32.totalorder %v5921_v36, 0  ;;  %v997_v37 = vsub.s32 0, %v5921_v36  ;;  %v501_v51 = vand.u32 65535, %v471_v54  ;;  %v487_v59 = vshll.u32 %v5925_v6, 16 }
 0x194   : > { %v869_v40 = vmul.f32 %v868_v61, %v866_v29  ;;  %v876_v17 = vmul.f32 %v875_v15, %v866_v29  ;;  %vm489_vm10 = vc.u32 %v481_v49, %v485_v13  ;;  %v491_v22 = vadd.s32 %v485_v13, %v481_v49 }
 0x195   : > { %v998_v30 = vsel %vm996_vm6, %v997_v37, %v5921_v36  ;;  %v490_v27 = vsel %vm489_vm10, 1, %v8659_v35  ;;  %v502_v9 = vshrl.u32 %v471_v54, 16  ;;  %v5937_v62 = vsel %vm618_vm11, %v614_v24, 1326507024 }
 0x196   : > { %v870_v44 = vadd.f32 -0.4999988, %v869_v40  ;;  %v877_v58 = vadd.f32 -0.16666654, %v876_v17  ;;  %v999_v3 = vclz %v998_v30  ;;  %v492_v28 = vadd.s32 %v490_v27, %v484_v56 }
 0x197   : > { %vm885_vm15 = vcmp.eq.s32.totalorder %v5917_v46, 0  ;;  %vm888_vm0 = vcmp.eq.s32.totalorder %v5917_v46, 2  ;;  %vm493_vm1 = vc.u32 %v491_v22, %v487_v59  ;;  %vm884_vm2 = vcmp.lt.s32.totalorder %v5917_v46, 2  ;;  %v8701_v22 = vld [vmem:[#allocation9_spill] sm:$0xff] }
 0x198   : > { %v871_v12 = vmul.f32 %v870_v44, %v866_v29  ;;  %v878_v1 = vmul.f32 %v877_v58, %v866_v29  ;;  %v4571_v23 = vadd.s32 4294967294, %v999_v3  ;;  %v494_v34 = vsel %vm493_vm1, 1, %v8659_v35 }
 0x199   : > { %vm881_vm3 = vweird.f32 %v8678_v53  ;;  %v987_v16 = vadd.s32 %v5841_v5, %v5827_v18  ;;  %v5948_v4 = vsel %vm461_vm14, %v464_v38, %v466_v21  ;;  %v496_v7 = vadd.s32 %v494_v34, %v492_v28 }
 0x19a   : > { %v504_v24 = vmul.u32 %v502_v9, %v5898_v57  ;;  %v872_v10 = vadd.f32 1.0, %v871_v12  ;;  %v879_v11 = vadd.f32 1.0, %v878_v1  ;;  %vm4572_vm4 = vcmp.lt.s32.totalorder %v4571_v23, 0 }
 0x19b   : > { %v505_v29 = vmul.u32 %v501_v51, %v478_v41  ;;  %v1002_v48 = vsel %vm4572_vm4, 0, %v4571_v23  ;;  %v486_v20 = vshrl.u32 %v482_v55, 16  ;;  %v488_v54 = vshrl.u32 %v5925_v6, 16 }
 0x19c   : > { %v507_v13 = vshll.u32 %v504_v24, 16  ;;  %v880_v61 = vmul.f32 %v879_v11, %v864_v52  ;;  %v889_v15 = vxor.u32 2147483648, %v872_v10  ;;  %v1003_v49 = vsub.s32 32, %v1002_v48 }
 0x19d   : > { %v503_v18 = vmul.u32 %v501_v51, %v5898_v57  ;;  %v1004_v19 = vshll.u32 %v5921_v36, %v1002_v48  ;;  %v1007_v5 = vsub.s32 4294967266, %v1002_v48  ;;  %v497_v38 = vadd.s32 %v496_v7, %v486_v20 }
 0x19e   : > { %v506_v21 = vmul.u32 %v502_v9, %v478_v41  ;;  %v886_v37 = vxor.u32 2147483648, %v880_v61  ;;  %v1005_v56 = vshrl.u32 %v987_v16, %v1003_v49  ;;  %v509_v40 = vshll.u32 %v505_v29, 16 }
 0x19f   : > { %vm511_vm8 = vc.u32 %v503_v18, %v507_v13  ;;  %v890_v55 = vsel %vm888_vm0, %v889_v15, %v880_v61  ;;  %vm895_vm5 = vcmp.lt.s32.totalorder %v8685_v26, 0  ;;  %v1008_v6 = vadd.s32 127, %v1007_v5 }
 0x1a0   : > { %v512_v52 = vsel %vm511_vm8, 1, %v8659_v35  ;;  %v513_v17 = vadd.s32 %v507_v13, %v503_v18  ;;  %v887_v57 = vsel %vm885_vm15, %v872_v10, %v886_v37  ;;  %v1006_v36 = vor.u32 %v1005_v56, %v1004_v19 }
 0x1a1   : > { %v514_v51 = vadd.s32 %v512_v52, %v506_v21  ;;  %v583_v41 = vand.u32 2147483647, %v8701_v22  ;;  %v891_v30 = vsel %vm884_vm2, %v887_v57, %v890_v55  ;;  %v1009_v59 = vshll.u32 %v1008_v6, 23 }
 0x1a2   : > { %v1017_v27 = vsub.s32 4, %v5903_v31  ;;  %vm515_vm7 = vc.u32 %v513_v17, %v509_v40  ;;  %v892_v9 = vsel %vm881_vm3, nan, %v891_v30  ;;  %vm5968_vm9 = vcmp.le.f32.partialorder %v893_v8, 0.7853982 }
 0x1a3   : > { %v5972_v58 = vadd.s32 %v497_v38, %v488_v54  ;;  %v508_v3 = vshrl.u32 %v504_v24, 16  ;;  %v516_v28 = vsel %vm515_vm7, 1, %v8659_v35  ;;  %1723 = vmatpush.msrb.mxu2 %v892_v9  ;;  %v1010_v46 = vor.u32 4788187, %v1009_v59 }
 0x1a4   : > { %v510_v12 = vshrl.u32 %v505_v29, 16  ;;  %v5975_v1 = vadd.s32 %v513_v17, %v509_v40  ;;  %v518_v23 = vadd.s32 %v516_v28, %v514_v51  ;;  %v1013_v34 = vcvt.s32.f32 %v1006_v36 }
 0x1a5   : > { %v590_v53 = vand.u32 8388607, %v583_v41  ;;  %v600_v8 = vshll.u32 %v8660_v50, %v8692_v43  ;;  %v601_v16 = vshrl.u32 %v8661_v63, %v8690_v47  ;;  %v1011_v7 = vand.u32 2147483647, %v1010_v46 }
 0x1a6   : > { %v519_v24 = vadd.s32 %v518_v23, %v508_v3  ;;  %v603_v10 = vshll.u32 %v8661_v63, %v8692_v43  ;;  %v604_v11 = vshrl.u32 %v8662_v42, %v8690_v47  ;;  %v606_v20 = vshll.u32 %v8662_v42, %v8692_v43 }
 0x1a7   : > { %v591_v29 = vor.u32 8388608, %v590_v53  ;;  %v5987_v48 = vor.u32 %v601_v16, %v600_v8  ;;  %v607_v54 = vshrl.u32 %v8663_v32, %v8690_v47  ;;  %v1014_v13 = vmul.f32 %v1013_v34, %v1011_v7 }
 0x1a8   : > { %v520_v61 = vadd.s32 %v519_v24, %v510_v12  ;;  %v521_v15 = vmul.u32 %v5877_v39, %v5948_v4  ;;  %v5995_v49 = vor.u32 %v604_v11, %v603_v10  ;;  %v1018_v18 = vsel %vm895_vm5, %v1017_v27, %v5903_v31 }
 0x1a9   : > { %vm523_vm12 = vc.u32 %v5972_v58, %v5975_v1  ;;  %v6002_v19 = vor.u32 %v607_v54, %v606_v20  ;;  %vm617_vm13 = vcmp.lt.s32.totalorder %v8699_v33, 3  ;;  %v1015_v43 = vxor.u32 2147483648, %v1014_v13 }
 0x1aa   : > { %v524_v5 = vadd.s32 1, %v520_v61  ;;  %vm615_vm14 = vcmp.lt.s32.totalorder %v8699_v33, 1  ;;  %v629_v39 = vsel %vm617_vm13, %v5881_v14, %v5937_v62  ;;  %v6022_v21 = vshll.u32 %v591_v29, 8 }
 0x1ab   : > { %v623_v31 = vsel %vm615_vm14, %v5987_v48, %v5995_v49  ;;  %v625_v4 = vsel %vm617_vm13, %v6002_v19, %v5910_v25  ;;  %v627_v38 = vsel %vm615_vm14, %v5995_v49, %v6002_v19  ;;  %v1016_v14 = vsel %vm895_vm5, %v1015_v43, %v1014_v13 }
 0x1ac   : > { %v1020_v62 = vsel %vm5968_vm9, 0, %v1018_v18  ;;  %v525_v37 = vsel %vm523_vm12, %v524_v5, %v520_v61  ;;  %vm616_vm6 = vcmp.lt.s32.totalorder %v8699_v33, 2  ;;  %v1019_v25 = vsel %vm5968_vm9, %v8685_v26, %v1016_v14 }
 0x1ad   : > { %v526_v56 = vadd.s32 %v525_v37, %v521_v15  ;;  %v630_v40 = vsel %vm616_vm6, %v627_v38, %v629_v39  ;;  %v1021_v55 = vmul.f32 %v1019_v25, %v1019_v25  ;;  %v6036_v6 = vsel %vm616_vm6, %v623_v31, %v625_v4 }
 0x1ae   : > { %v634_v52 = vand.u32 65535, %v630_v40  ;;  %v1037_v17 = vadd.s32 3, %v1020_v62  ;;  %v632_v36 = vand.u32 65535, %v6022_v21  ;;  %v635_v51 = vshrl.u32 %v630_v40, 16 }
 0x1af   : > { %v527_v57 = vadd.s32 536870912, %v526_v56  ;;  %v1022_v30 = vmul.f32 -0.001358992, %v1021_v55  ;;  %v1029_v59 = vmul.f32 -0.00019511016, %v1021_v55  ;;  %v633_v27 = vshrl.u32 %v6022_v21, 16 }
 0x1b0   : > { %v637_v44 = vmul.u32 %v635_v51, %v632_v36  ;;  %v657_v3 = vshrl.u32 %v6036_v6, 16  ;;  %v1038_v23 = vand.u32 3, %v1037_v17  ;;  %v636_v53 = vmul.u32 %v634_v52, %v632_v36 }
 0x1b1   : > { %v6040_v9 = vshrl.u32 %v527_v57, 30  ;;  %v1023_v28 = vadd.f32 0.041655596, %v1022_v30  ;;  %v1030_v46 = vadd.f32 0.008332121, %v1029_v59  ;;  %v6043_v12 = vmul.u32 %v634_v52, %v633_v27 }
 0x1b2   : > { %v640_v8 = vshll.u32 %v637_v44, 16  ;;  %v639_v24 = vmul.u32 %v635_v51, %v633_v27  ;;  %v656_v10 = vand.u32 65535, %v6036_v6  ;;  %v6047_v20 = vmul.u32 %v657_v3, %v632_v36 }
 0x1b3   : > { %v529_v34 = vshll.u32 %v6040_v9, 30  ;;  %v1024_v16 = vmul.f32 %v1023_v28, %v1021_v55  ;;  %v1031_v7 = vmul.f32 %v1030_v46, %v1021_v55  ;;  %v642_v61 = vshll.u32 %v6043_v12, 16 }
 0x1b4   : > { %vm644_vm10 = vc.u32 %v636_v53, %v640_v8  ;;  %v646_v29 = vadd.s32 %v640_v8, %v636_v53  ;;  %vm1039_vm0 = vcmp.lt.s32.totalorder %v1038_v23, 2  ;;  %vm1036_vm2 = vweird.f32 %v8685_v26 }
 0x1b5   : > { %v530_v11 = vsub.s32 %v526_v56, %v529_v34  ;;  %v1025_v54 = vadd.f32 -0.4999988, %v1024_v16  ;;  %v1032_v13 = vadd.f32 -0.16666654, %v1031_v7  ;;  %v645_v15 = vsel %vm644_vm10, 1, %v8659_v35 }
 0x1b6   : > { %v647_v43 = vadd.s32 %v645_v15, %v639_v24  ;;  %vm648_vm1 = vc.u32 %v646_v29, %v642_v61  ;;  %v660_v38 = vmul.u32 %v656_v10, %v633_v27  ;;  %v662_v14 = vshll.u32 %v6047_v20, 16 }
 0x1b7   : > { %vm531_vm15 = vcmp.lt.s32.totalorder %v530_v11, 0  ;;  %v532_v18 = vsub.s32 0, %v530_v11  ;;  %v1026_v5 = vmul.f32 %v1025_v54, %v1021_v55  ;;  %v1033_v39 = vmul.f32 %v1032_v13, %v1021_v55 }
 0x1b8   : > { %v649_v4 = vsel %vm648_vm1, 1, %v8659_v35  ;;  %vm1040_vm3 = vcmp.eq.s32.totalorder %v1038_v23, 0  ;;  %vm1043_vm4 = vcmp.eq.s32.totalorder %v1038_v23, 2  ;;  %v522_v40 = vadd.s32 %v5975_v1, %v5972_v58 }
 0x1b9   : > { %v533_v31 = vsel %vm531_vm15, %v532_v18, %v530_v11  ;;  %v1027_v62 = vadd.f32 1.0, %v1026_v5  ;;  %v1034_v37 = vadd.f32 1.0, %v1033_v39  ;;  %v651_v6 = vadd.s32 %v649_v4, %v647_v43 }
 0x1ba   : > { %v534_v56 = vclz %v533_v31  ;;  %v658_v55 = vmul.u32 %v656_v10, %v632_v36  ;;  %v599_v51 = vshrl.u32 %v8660_v50, %v8690_v47  ;;  %v641_v30 = vshrl.u32 %v637_v44, 16 }
 0x1bb   : > { %v1035_v52 = vmul.f32 %v1034_v37, %v1019_v25  ;;  %v1044_v17 = vxor.u32 2147483648, %v1027_v62  ;;  %v664_v59 = vshll.u32 %v660_v38, 16  ;;  %v620_v34 = vsel %vm618_vm11, %v6002_v19, 2102212464 }
 0x1bc   : > { %v4562_v57 = vadd.s32 4294967294, %v534_v56  ;;  %vm666_vm8 = vc.u32 %v658_v55, %v662_v14  ;;  %v668_v28 = vadd.s32 %v662_v14, %v658_v55  ;;  %v661_v53 = vmul.u32 %v657_v3, %v633_v27 }
 0x1bd   : > { %v1041_v46 = vxor.u32 2147483648, %v1035_v52  ;;  %v652_v1 = vadd.s32 %v651_v6, %v641_v30  ;;  %v667_v25 = vsel %vm666_vm8, 1, %v8659_v35  ;;  %v1045_v47 = vsel %vm1043_vm4, %v1044_v17, %v1035_v52 }
 0x1be   : > { %vm4563_vm5 = vcmp.lt.s32.totalorder %v4562_v57, 0  ;;  %vm670_vm7 = vc.u32 %v668_v28, %v664_v59  ;;  %v643_v7 = vshrl.u32 %v6043_v12, 16  ;;  %v669_v24 = vadd.s32 %v667_v25, %v661_v53 }
 0x1bf   : > { %v537_v58 = vsel %vm4563_vm5, 0, %v4562_v57  ;;  %v1042_v36 = vsel %vm1040_vm3, %v1027_v62, %v1041_v46  ;;  %v671_v10 = vsel %vm670_vm7, 1, %v8659_v35  ;;  %v619_v54 = vsel %vm615_vm14, %v599_v51, %v5987_v48 }
 0x1c0   : > { %v538_v44 = vsub.s32 32, %v537_v58  ;;  %v542_v8 = vsub.s32 4294967266, %v537_v58  ;;  %v1046_v16 = vsel %vm1039_vm0, %v1042_v36, %v1045_v47  ;;  %v539_v27 = vshll.u32 %v530_v11, %v537_v58 }
 0x1c1   : > { %v1047_v19 = vsel %vm1036_vm2, nan, %v1046_v16  ;;  %v663_v13 = vshrl.u32 %v6047_v20, 16  ;;  %v673_v23 = vadd.s32 %v671_v10, %v669_v24  ;;  %v621_v12 = vsel %vm617_vm13, %v5995_v49, %v620_v34 }
 0x1c2   : > { %v540_v3 = vshrl.u32 %v522_v40, %v538_v44  ;;  %v543_v29 = vadd.s32 127, %v542_v8  ;;  %1752 = vmatpush.msrb.mxu3 %v1047_v19  ;;  %v653_v18 = vadd.s32 %v652_v1, %v643_v7  ;;  %v665_v26 = vshrl.u32 %v660_v38, 16 }
 0x1c3   : > { %v674_v43 = vadd.s32 %v673_v23, %v663_v13  ;;  %v672_v5 = vadd.s32 %v668_v28, %v664_v59  ;;  %v622_v39 = vsel %vm616_vm6, %v619_v54, %v621_v12  ;;  %vm430_vm9 = vcmp.lt.s32.totalorder %v8696_v0, 0 }
 0x1c4   : > { %v541_v61 = vor.u32 %v540_v3, %v539_v27  ;;  %v544_v15 = vshll.u32 %v543_v29, 23  ;;  %v676_v62 = vmul.u32 %v6022_v21, %v622_v39  ;;  %vm6082_vm12 = vcmp.le.f32.partialorder %v428_v60, 0.7853982 }
 0x1c5   : > { %v675_v31 = vadd.s32 %v674_v43, %v665_v26  ;;  %vm678_vm11 = vc.u32 %v653_v18, %v672_v5  ;;  %v552_v38 = vsub.s32 4, %v6040_v9  ;;  %v677_v29 = vadd.s32 %v672_v5, %v653_v18  ;;  %v1668_v18 = vld [vmem:[%s8477_s3] sm:$0xff] }
 0x1c6   : > { %v545_v11 = vor.u32 4788187, %v544_v15  ;;  %v548_v48 = vcvt.s32.f32 %v541_v61  ;;  %vm571_vm0 = vweird.f32 %v8696_v0  ;;  %vm8588_vm1 = vcmask 261120  }
 0x1c7   : > { %v679_v20 = vadd.s32 1, %v675_v31  ;;  %v553_v17 = vsel %vm430_vm9, %v552_v38, %v6040_v9  ;;  %vm585_vm2 = vcmp.lt.s32.totalorder %v8701_v22, 0  ;;  %vm6107_vm3 = vcmp.le.f32.partialorder %v583_v41, 0.7853982  ;;  %v1670_v41 = vld [vmem:[%s8477_s3 + $0x10] sm:$0xff] }
 0x1c8   : > { %v546_v4 = vand.u32 2147483647, %v545_v11  ;;  %v555_v46 = vsel %vm6082_vm12, 0, %v553_v17  ;;  %vm726_vm7 = vweird.f32 %v8701_v22 }
 0x1c9   : > { %v680_v37 = vsel %vm678_vm11, %v679_v20, %v675_v31  ;;  %v572_v36 = vadd.s32 3, %v555_v46 }
 0x1ca   : > { %v549_v14 = vmul.f32 %v548_v48, %v546_v4  ;;  %v681_v40 = vadd.s32 %v680_v37, %v676_v62 }
 0x1cb   : > { %v573_v10 = vand.u32 3, %v572_v36 }
 0x1cc   : > { %v550_v56 = vxor.u32 2147483648, %v549_v14  ;;  %v682_v6 = vadd.s32 536870912, %v681_v40 }
 0x1cd   : > { %vm575_vm6 = vcmp.eq.s32.totalorder %v573_v10, 0  ;;  %vm578_vm10 = vcmp.eq.s32.totalorder %v573_v10, 2  ;;  %vm574_vm15 = vcmp.lt.s32.totalorder %v573_v10, 2  ;;  %v4624_v10 = vld [vmem:[%s8478_s4 + $0x38] sm:$0xff] }
 0x1ce   : > { %v551_v33 = vsel %vm430_vm9, %v550_v56, %v549_v14  ;;  %v6090_v52 = vshrl.u32 %v682_v6, 30 }
 0x1cf   : > { %v554_v55 = vsel %vm6082_vm12, %v8696_v0, %v551_v33  ;;  %v1669_v0 = vld [vmem:[%s8477_s3 + $0x8] sm:$0xff] }
 0x1d0   : > { %v556_v21 = vmul.f32 %v554_v55, %v554_v55  ;;  %v684_v60 = vshll.u32 %v6090_v52, 30 }
 0x1d2   : > { %v557_v57 = vmul.f32 -0.001358992, %v556_v21  ;;  %v564_v51 = vmul.f32 -0.00019511016, %v556_v21  ;;  %v685_v28 = vsub.s32 %v681_v40, %v684_v60  ;;  %v707_v40 = vsub.s32 4, %v6090_v52 }
 0x1d4   : > { %v558_v30 = vadd.f32 0.041655596, %v557_v57  ;;  %v565_v59 = vadd.f32 0.008332121, %v564_v51  ;;  %vm686_vm13 = vcmp.lt.s32.totalorder %v685_v28, 0  ;;  %v687_v58 = vsub.s32 0, %v685_v28 }
 0x1d6   : > { %v559_v34 = vmul.f32 %v558_v30, %v556_v21  ;;  %v566_v53 = vmul.f32 %v565_v59, %v556_v21  ;;  %v688_v47 = vsel %vm686_vm13, %v687_v58, %v685_v28  ;;  %v1671_v58 = vld [vmem:[%s8477_s3 + $0x18] sm:$0xff] }
 0x1d7   : > { %v689_v44 = vclz %v688_v47  ;;  %v1675_v47 = vld [vmem:[%s8478_s4 + $0x18] sm:$0xff] }
 0x1d8   : > { %v560_v1 = vadd.f32 -0.4999988, %v559_v34  ;;  %v567_v25 = vadd.f32 -0.16666654, %v566_v53  ;;  %1693 = vperm.xlu2 %4727, %v1675_v47  }
 0x1d9   : > { %v4565_v16 = vadd.s32 4294967294, %v689_v44 }
 0x1da   : > { %v561_v9 = vmul.f32 %v560_v1, %v556_v21  ;;  %v568_v8 = vmul.f32 %v567_v25, %v556_v21 }
 0x1db   : > { %vm4566_vm14 = vcmp.lt.s32.totalorder %v4565_v16, 0 }
 0x1dc   : > { %v562_v7 = vadd.f32 1.0, %v561_v9  ;;  %v569_v24 = vadd.f32 1.0, %v568_v8  ;;  %v692_v3 = vsel %vm4566_vm14, 0, %v4565_v16 }
 0x1dd   : > { %v693_v54 = vsub.s32 32, %v692_v3  ;;  %v697_v13 = vsub.s32 4294967266, %v692_v3  ;;  %v694_v61 = vshll.u32 %v685_v28, %v692_v3 }
 0x1de   : > { %v570_v19 = vmul.f32 %v569_v24, %v554_v55  ;;  %v579_v27 = vxor.u32 2147483648, %v562_v7  ;;  %v708_v55 = vsel %vm585_vm2, %v707_v40, %v6090_v52  ;;  %v1674_v24 = vld [vmem:[%s8478_s4 + $0x10] sm:$0xff] }
 0x1df   : > { %v695_v15 = vshrl.u32 %v677_v29, %v693_v54  ;;  %v698_v12 = vadd.s32 127, %v697_v13  ;;  %v710_v57 = vsel %vm6107_vm3, 0, %v708_v55  ;;  %v1684_v13 = vpop.permute.xlu0 %1683 }
 0x1e0   : > { %v576_v23 = vxor.u32 2147483648, %v570_v19  ;;  %v580_v43 = vsel %vm578_vm10, %v579_v27, %v570_v19  ;;  %v727_v28 = vadd.s32 3, %v710_v57  ;;  %1688 = vperm.xlu2 %4727, %v1674_v24   ;;  %v1679_v27 = vpop.permute.xlu1 %1678 }
 0x1e1   : > { %v696_v39 = vor.u32 %v695_v15, %v694_v61  ;;  %v699_v31 = vshll.u32 %v698_v12, 23 }
 0x1e2   : > { %v577_v26 = vsel %vm575_vm6, %v562_v7, %v576_v23  ;;  %v728_v1 = vand.u32 3, %v727_v28 }
 0x1e3   : > { %v581_v11 = vsel %vm574_vm15, %v577_v26, %v580_v43  ;;  %v700_v5 = vor.u32 4788187, %v699_v31  ;;  %v703_v20 = vcvt.s32.f32 %v696_v39 }
 0x1e4   : > { %v582_v4 = vsel %vm571_vm0, nan, %v581_v11  ;;  %vm730_vm4 = vcmp.eq.s32.totalorder %v728_v1, 0  ;;  %vm733_vm8 = vcmp.eq.s32.totalorder %v728_v1, 2  ;;  %vm729_vm5 = vcmp.lt.s32.totalorder %v728_v1, 2 }
 0x1e5   : > { %1724 = vmatpush.msrb.mxu2 %v582_v4  ;;  %v701_v48 = vand.u32 2147483647, %v700_v5 }
 0x1e6   : > { %4585 = vmatmul.msk.f32.vlgmr.msrb.gmra.mxu2 %vm8588_vm1, %v1668_v18 }
 0x1e7   : > { %v704_v14 = vmul.f32 %v703_v20, %v701_v48 }
 0x1e8   : > { %3034 = vperm.xlu2 %4727, %v4624_v10  }
 0x1e9   : > { %v705_v62 = vxor.u32 2147483648, %v704_v14 }
 0x1eb   : > { %v706_v56 = vsel %vm585_vm2, %v705_v62, %v704_v14 }
 0x1ec   : > { %v709_v49 = vsel %vm6107_vm3, %v8701_v22, %v706_v56  ;;  %v4621_v22 = vld [vmem:[%s8478_s4 + $0x20] sm:$0xff] }
 0x1ed   : > { %v711_v33 = vmul.f32 %v709_v49, %v709_v49 }
 0x1ee   : > { %4586 = vmatmul.msk.f32.gmra.mxu2 %vm8588_vm1, %v1669_v0 }
 0x1ef   : > { %v712_v38 = vmul.f32 -0.001358992, %v711_v33  ;;  %v719_v6 = vmul.f32 -0.00019511016, %v711_v33 }
 0x1f0   : > { %3019 = vperm.xlu2 %4727, %v4621_v22  }
 0x1f1   : > { %v713_v21 = vadd.f32 0.041655596, %v712_v38  ;;  %v720_v17 = vadd.f32 0.008332121, %v719_v6 }
 0x1f3   : > { %v714_v51 = vmul.f32 %v713_v21, %v711_v33  ;;  %v721_v60 = vmul.f32 %v720_v17, %v711_v33 }
 0x1f5   : > { %v715_v30 = vadd.f32 -0.4999988, %v714_v51  ;;  %v722_v59 = vadd.f32 -0.16666654, %v721_v60 }
 0x1f6   : > { %4587 = vmatmul.msk.f32.gmra.mxu2 %vm8588_vm1, %v1670_v41 }
 0x1f7   : > { %v716_v46 = vmul.f32 %v715_v30, %v711_v33  ;;  %v723_v34 = vmul.f32 %v722_v59, %v711_v33 }
 0x1f9   : > { %v717_v53 = vadd.f32 1.0, %v716_v46  ;;  %v724_v52 = vadd.f32 1.0, %v723_v34 }
 0x1fb   : > { %v725_v25 = vmul.f32 %v724_v52, %v709_v49  ;;  %v734_v36 = vxor.u32 2147483648, %v717_v53 }
 0x1fd   : > { %v731_v44 = vxor.u32 2147483648, %v725_v25  ;;  %v735_v8 = vsel %vm733_vm8, %v734_v36, %v725_v25 }
 0x1fe   : > { %4588 = vmatmul.msk.f32.gmra.mxu2 %vm8588_vm1, %v1671_v58 }
 0x1ff   : > { %v732_v9 = vsel %vm730_vm4, %v717_v53, %v731_v44 }
 0x200   : > { %v736_v16 = vsel %vm729_vm5, %v732_v9, %v735_v8 }
 0x201   : > { %v737_v7 = vsel %vm726_vm7, nan, %v736_v16 }
 0x202   : > { %1753 = vmatpush.msrb.mxu3 %v737_v7 }
 0x203   : > { %4589 = vmatmul.msk.f32.vlgmr.msrb.gmra.mxu3 %vm8588_vm1, %v1668_v18 }
 0x20b   : > { %4590 = vmatmul.msk.f32.gmra.mxu3 %vm8588_vm1, %v1669_v0 }
 0x213   : > { %4591 = vmatmul.msk.f32.gmra.mxu3 %vm8588_vm1, %v1670_v41 }
 0x21b   : > { %4592 = vmatmul.msk.f32.gmra.mxu3 %vm8588_vm1, %v1671_v58 }
 0x232   : > { %v6147_v54 = vpop.permute.xlu2 %1693 }
 0x23a   : > { %v1689_v31 = vpop.permute.xlu2 %1688 }
 0x269   : > { %v1726_v19 = vpop.f32.mrf.mxu2 }
 0x26a   : > { %v6144_v3 = vadd.f32 %v1726_v19, %v1679_v27 }
 0x26c   : > { %8708 = vst [vmem:[#allocation26_spill] sm:$0xff] %v6144_v3  ;;  %v1770_v29 = vand.u32 2139095040, %v6144_v3 }
 0x26e   : > { %v1771_v61 = vshrl.u32 %v1770_v29, 23 }
 0x270   : > { %v4593_v26 = vadd.s32 4294967169, %v1771_v61 }
 0x271   : > { %v1729_v23 = vpop.f32.mrf.mxu2 }
 0x272   : > { %v6149_v15 = vadd.f32 %v1729_v23, %v1684_v13  ;;  %v1777_v39 = vadd.s32 1, %v4593_v26 }
 0x274   : > { %v2080_v12 = vand.u32 2139095040, %v6149_v15  ;;  %vm1778_vm11 = vcmp.gt.s32.totalorder %v1777_v39, 0 }
 0x275   : > { %v1779_v0 = vsel %vm1778_vm11, %v1777_v39, 0 }
 0x276   : > { %v2081_v43 = vshrl.u32 %v2080_v12, 23  ;;  %v6161_v38 = vand.u32 31, %v1779_v0  ;;  %v6175_v53 = vshrl.u32 %v1779_v0, 5 }
 0x278   : > { %v4599_v11 = vadd.s32 4294967169, %v2081_v43  ;;  %8710 = vst [vmem:[#allocation17_spill] sm:$0xff] %v6161_v38  ;;  %v6169_v51 = vsub.s32 32, %v6161_v38  ;;  %v1793_v36 = vshll.u32 %v8663_v32, %v6161_v38  ;;  %v1796_v8 = vshll.u32 %v8691_v2, %v6161_v38 }
 0x279   : > { %v1732_v4 = vpop.f32.mrf.mxu2  ;;  %8715 = vst [vmem:[#allocation24_spill] sm:$0xff] %v6175_v53  ;;  %vm1802_vm14 = vcmp.lt.s32.totalorder %v6175_v53, 4 }
 0x27a   : > { %v2087_v18 = vadd.s32 1, %v4599_v11  ;;  %v6152_v5 = vadd.f32 %v1732_v4, %v1689_v31  ;;  %8713 = vst [vmem:[#allocation27_spill] sm:$0xff] %v6169_v51  ;;  %v1794_v52 = vshrl.u32 %v8691_v2, %v6169_v51  ;;  %v1797_v47 = vshrl.u32 %v8668_v45, %v6169_v51 }
 0x27c   : > { %v2390_v20 = vand.u32 2139095040, %v6152_v5  ;;  %vm2088_vm9 = vcmp.gt.s32.totalorder %v2087_v18, 0  ;;  %v1798_v23 = vor.u32 %v1797_v47, %v1796_v8 }
 0x27d   : > { %v2089_v56 = vsel %vm2088_vm9, %v2087_v18, 0 }
 0x27e   : > { %v2391_v62 = vshrl.u32 %v2390_v20, 23  ;;  %v6163_v21 = vand.u32 31, %v2089_v56  ;;  %v6198_v29 = vshrl.u32 %v2089_v56, 5 }
 0x280   : > { %v4605_v37 = vadd.s32 4294967169, %v2391_v62  ;;  %8711 = vst [vmem:[#allocation19_spill] sm:$0xff] %v6163_v21  ;;  %v6173_v59 = vsub.s32 32, %v6163_v21  ;;  %v2103_v16 = vshll.u32 %v8663_v32, %v6163_v21  ;;  %v2106_v12 = vshll.u32 %v8691_v2, %v6163_v21 }
 0x281   : > { %v1735_v40 = vpop.f32.mrf.mxu2  ;;  %8717 = vst [vmem:[#allocation18_spill] sm:$0xff] %v6198_v29  ;;  %vm2112_vm10 = vcmp.lt.s32.totalorder %v6198_v29, 4 }
 0x282   : > { %v6159_v33 = vadd.f32 %v1735_v40, %v6147_v54  ;;  %v2397_v55 = vadd.s32 1, %v4605_v37  ;;  %8714 = vst [vmem:[#allocation11_spill] sm:$0xff] %v6173_v59  ;;  %v2104_v44 = vshrl.u32 %v8691_v2, %v6173_v59  ;;  %v2107_v10 = vshrl.u32 %v8668_v45, %v6173_v59 }
 0x284   : > { %v2700_v41 = vand.u32 2139095040, %v6159_v33  ;;  %vm2398_vm12 = vcmp.gt.s32.totalorder %v2397_v55, 0  ;;  %v6200_v61 = vor.u32 %v2104_v44, %v2103_v16  ;;  %v2108_v39 = vor.u32 %v2107_v10, %v2106_v12 }
 0x285   : > { %v2399_v34 = vsel %vm2398_vm12, %v2397_v55, 0 }
 0x286   : > { %v1755_v48 = vpop.f32.mrf.mxu3  ;;  %v2701_v30 = vshrl.u32 %v2700_v41, 23  ;;  %v6191_v7 = vand.u32 31, %v2399_v34  ;;  %8718 = vst [vmem:[#allocation21_spill] sm:$0xff] %v6200_v61  ;;  %v6221_v20 = vsel %vm2112_vm10, %v6200_v61, 920167782 }
 0x287   : > { %v6155_v14 = vadd.f32 %v1755_v48, %v1679_v27  ;;  %v6196_v27 = vor.u32 %v1794_v52, %v1793_v36  ;;  %v6216_v48 = vsel %vm1802_vm14, %v1798_v23, 1326507024  ;;  %8721 = vst [vmem:[#allocation20_spill] sm:$0xff] %v6221_v20 }
 0x288   : > { %v4611_v28 = vadd.s32 4294967169, %v2701_v30  ;;  %v6205_v43 = vsub.s32 32, %v6191_v7  ;;  %8720 = vst [vmem:[#allocation16_spill] sm:$0xff] %v6216_v48  ;;  %v2413_v56 = vshll.u32 %v8663_v32, %v6191_v7  ;;  %v2416_v55 = vshll.u32 %v8691_v2, %v6191_v7 }
 0x289   : > { %8709 = vst [vmem:[#allocation10_spill] sm:$0xff] %v6155_v14  ;;  %v1925_v49 = vand.u32 2139095040, %v6155_v14 }
 0x28a   : > { %v2707_v25 = vadd.s32 1, %v4611_v28  ;;  %8716 = vst [vmem:[#allocation14_spill] sm:$0xff] %v6196_v27  ;;  %v2414_v40 = vshrl.u32 %v8691_v2, %v6205_v43  ;;  %v2417_v41 = vshrl.u32 %v8668_v45, %v6205_v43 }
 0x28b   : > { %v1926_v57 = vshrl.u32 %v1925_v49, 23 }
 0x28c   : > { %vm2708_vm13 = vcmp.gt.s32.totalorder %v2707_v25, 0  ;;  %v2418_v44 = vor.u32 %v2417_v41, %v2416_v55 }
 0x28d   : > { %v4596_v46 = vadd.s32 4294967169, %v1926_v57  ;;  %v2709_v19 = vsel %vm2708_vm13, %v2707_v25, 0  ;;  %v6253_v25 = vor.u32 %v2414_v40, %v2413_v56 }
 0x28e   : > { %v1758_v6 = vpop.f32.mrf.mxu3  ;;  %v2711_v11 = vand.u32 31, %v2709_v19  ;;  %v6256_v8 = vshrl.u32 %v2709_v19, 5 }
 0x28f   : > { %v6165_v17 = vadd.f32 %v1758_v6, %v1684_v13  ;;  %v1932_v24 = vadd.s32 1, %v4596_v46  ;;  %v6234_v6 = vsel %vm2112_vm10, %v2108_v39, 1326507024 }
 0x290   : > { %v6223_v0 = vsub.s32 32, %v2711_v11  ;;  %8722 = vst [vmem:[#allocation8_spill] sm:$0xff] %v6234_v6  ;;  %v2723_v52 = vshll.u32 %v8663_v32, %v2711_v11  ;;  %v2726_v36 = vshll.u32 %v8691_v2, %v2711_v11  ;;  %v2717_v12 = vshll.u32 %v8661_v63, %v2711_v11 }
 0x291   : > { %8712 = vst [vmem:[#allocation25_spill] sm:$0xff] %v6165_v17  ;;  %v2235_v60 = vand.u32 2139095040, %v6165_v17  ;;  %vm1933_vm6 = vcmp.gt.s32.totalorder %v1932_v24, 0  ;;  %vm2732_vm3 = vcmp.lt.s32.totalorder %v6256_v8, 4  ;;  %vm2729_vm8 = vcmp.lt.s32.totalorder %v6256_v8, 1 }
 0x292   : > { %v1934_v37 = vsel %vm1933_vm6, %v1932_v24, 0  ;;  %v2724_v57 = vshrl.u32 %v8691_v2, %v6223_v0  ;;  %vm2731_vm5 = vcmp.lt.s32.totalorder %v6256_v8, 3  ;;  %vm2730_vm7 = vcmp.lt.s32.totalorder %v6256_v8, 2 }
 0x293   : > { %v2236_v58 = vshrl.u32 %v2235_v60, 23  ;;  %v6242_v60 = vshrl.u32 %v2399_v34, 5  ;;  %v6247_v28 = vshrl.u32 %v1934_v37, 5 }
 0x294   : > { %v2725_v16 = vor.u32 %v2724_v57, %v2723_v52 }
 0x295   : > { %v4602_v13 = vadd.s32 4294967169, %v2236_v58  ;;  %8723 = vst [vmem:[#allocation12_spill] sm:$0xff] %v6247_v28  ;;  %v8527_v58 = vand.u32 2147483647, %v6159_v33  ;;  %vm2422_vm2 = vcmp.lt.s32.totalorder %v6242_v60, 4 }
 0x296   : > { %v1761_v1 = vpop.f32.mrf.mxu3  ;;  %v2738_v56 = vsel %vm2732_vm3, %v2725_v16, 920167782 }
 0x297   : > { %v6185_v9 = vadd.f32 %v1761_v1, %v1689_v31  ;;  %v6211_v31 = vsel %vm1802_vm14, %v6196_v27, 920167782  ;;  %v2242_v4 = vadd.s32 1, %v4602_v13  ;;  %v6251_v1 = vand.u32 31, %v1934_v37 }
 0x298   : > { %8719 = vst [vmem:[#allocation22_spill] sm:$0xff] %v6211_v31  ;;  %v2715_v13 = vshrl.u32 %v8661_v63, %v6223_v0  ;;  %v2704_v23 = vand.u32 8388607, %v8527_v58 }
 0x299   : > { %v2545_v22 = vand.u32 2139095040, %v6185_v9  ;;  %vm2243_vm15 = vcmp.gt.s32.totalorder %v2242_v4, 0  ;;  %8724 = vst [vmem:[#allocation13_spill] sm:$0xff] %v6251_v1 }
 0x29a   : > { %v2244_v47 = vsel %vm2243_vm15, %v2242_v4, 0  ;;  %v2720_v4 = vshll.u32 %v8662_v42, %v2711_v11  ;;  %v2705_v57 = vor.u32 8388608, %v2704_v23 }
 0x29b   : > { %v2546_v26 = vshrl.u32 %v2545_v22, 23  ;;  %v2714_v22 = vshll.u32 %v8660_v50, %v2711_v11  ;;  %v6278_v11 = vsub.s32 32, %v6251_v1 }
 0x29d   : > { %v4608_v62 = vadd.s32 4294967169, %v2546_v26  ;;  %v2718_v26 = vshrl.u32 %v8662_v42, %v6223_v0  ;;  %v2716_v19 = vor.u32 %v2715_v13, %v2714_v22  ;;  %8726 = vst [vmem:[#allocation23_spill] sm:$0xff] %v6278_v11 }
 0x29e   : > { %v1764_v18 = vpop.f32.mrf.mxu3 }
 0x29f   : > { %v6230_v49 = vadd.f32 %v1764_v18, %v6147_v54  ;;  %v2727_v54 = vshrl.u32 %v8668_v45, %v6223_v0  ;;  %v2552_v46 = vadd.s32 1, %v4608_v62  ;;  %v2721_v18 = vshrl.u32 %v8663_v32, %v6223_v0 }
 0x2a0   : > { %v6269_v62 = vand.u32 31, %v2244_v47  ;;  %v2719_v37 = vor.u32 %v2718_v26, %v2717_v12 }
 0x2a1   : > { %v2855_v30 = vand.u32 2139095040, %v6230_v49  ;;  %v2728_v24 = vor.u32 %v2727_v54, %v2726_v36  ;;  %vm2553_vm0 = vcmp.gt.s32.totalorder %v2552_v46, 0  ;;  %v2722_v55 = vor.u32 %v2721_v18, %v2720_v4 }
 0x2a2   : > { %8725 = vst [vmem:[#allocation15_spill] sm:$0xff] %v6269_v62  ;;  %v2554_v41 = vsel %vm2553_vm0, %v2552_v46, 0  ;;  %v6285_v54 = vsel %vm2422_vm2, %v6253_v25, 920167782  ;;  %v2737_v52 = vsel %vm2729_vm8, %v2716_v19, %v2719_v37  ;;  %v6310_v13 = vshll.u32 %v8663_v32, %v6269_v62 }
 0x2a3   : > { %v2856_v34 = vshrl.u32 %v2855_v30, 23  ;;  %v2742_v40 = vsel %vm2732_vm3, %v2728_v24, 1326507024  ;;  %v6289_v30 = vsel %vm2422_vm2, %v2418_v44, 1326507024  ;;  %v2739_v46 = vsel %vm2731_vm5, %v2722_v55, %v2738_v56 }
 0x2a4   : > { %v2743_v24 = vsel %vm2731_vm5, %v2725_v16, %v2742_v40  ;;  %v6303_v44 = vsub.s32 32, %v6269_v62  ;;  %v6305_v22 = vand.u32 31, %v2554_v41  ;;  %8728 = vst [vmem:[#allocation28_spill] sm:$0xff] %v6310_v13  ;;  %v2740_v23 = vsel %vm2730_vm7, %v2737_v52, %v2739_v46 }
 0x2a5   : > { %v4614_v10 = vadd.s32 4294967169, %v2856_v34  ;;  %v2741_v34 = vsel %vm2729_vm8, %v2719_v37, %v2722_v55  ;;  %v6316_v16 = vshll.u32 %v2705_v57, 8  ;;  %v2734_v18 = vsel %vm2732_vm3, %v2722_v55, 2102212464 }
 0x2a6   : > { %v2744_v12 = vsel %vm2730_vm7, %v2741_v34, %v2743_v24  ;;  %v2771_v52 = vshrl.u32 %v2740_v23, 16  ;;  %v6328_v46 = vshrl.u32 %v2554_v41, 5  ;;  %v6331_v57 = vsub.s32 32, %v6305_v22 }
 0x2a7   : > { %v2862_v39 = vadd.s32 1, %v4614_v10  ;;  %v6300_v10 = vshrl.u32 %v2244_v47, 5  ;;  %v6320_v47 = vshll.u32 %v8691_v2, %v6269_v62  ;;  %v2749_v4 = vshrl.u32 %v2744_v12, 16 }
 0x2a8   : > { %v2746_v56 = vand.u32 65535, %v6316_v16  ;;  %v2747_v40 = vshrl.u32 %v6316_v16, 16  ;;  %v2713_v34 = vshrl.u32 %v8660_v50, %v6223_v0  ;;  %v2770_v24 = vand.u32 65535, %v2740_v23 }
 0x2a9   : > { %vm2863_vm4 = vcmp.gt.s32.totalorder %v2862_v39, 0  ;;  %8727 = vst [vmem:[#allocation9_spill] sm:$0xff] %v6300_v10  ;;  %v6341_v55 = vshll.u32 %v8691_v2, %v6305_v22  ;;  %v2735_v31 = vsel %vm2731_vm5, %v2719_v37, %v2734_v18  ;;  %v8548_v18 = vand.u32 2147483647, %v6230_v49 }
 0x2aa   : > { %v2864_v36 = vsel %vm2863_vm4, %v2862_v39, 0  ;;  %8729 = vst [vmem:[#allocation29_spill] sm:$0xff] %v6320_v47  ;;  %v2748_v39 = vand.u32 65535, %v2744_v12  ;;  %v6337_v12 = vshll.u32 %v8663_v32, %v6305_v22  ;;  %v2751_v58 = vmul.u32 %v2749_v4, %v2746_v56 }
 0x2ab   : > { %v6322_v26 = vand.u32 31, %v2864_v36  ;;  %v6343_v28 = vshrl.u32 %v2864_v36, 5  ;;  %v2733_v41 = vsel %vm2729_vm8, %v2713_v34, %v2716_v19  ;;  %v2773_v0 = vmul.u32 %v2771_v52, %v2746_v56 }
 0x2ac   : > { %v2752_v14 = vmul.u32 %v2748_v39, %v2747_v40  ;;  %v2750_v48 = vmul.u32 %v2748_v39, %v2746_v56  ;;  %v2754_v53 = vshll.u32 %v2751_v58, 16  ;;  %v2753_v38 = vmul.u32 %v2749_v4, %v2747_v40 }
 0x2ad   : > { %v6350_v23 = vsub.s32 32, %v6322_v26  ;;  %v2878_v27 = vshll.u32 %v8663_v32, %v6322_v26  ;;  %v2772_v51 = vmul.u32 %v2770_v24, %v2746_v56  ;;  %v2774_v3 = vmul.u32 %v2770_v24, %v2747_v40 }
 0x2ae   : > { %v2776_v36 = vshll.u32 %v2773_v0, 16  ;;  %v2756_v1 = vshll.u32 %v2752_v14, 16  ;;  %vm2758_vm11 = vc.u32 %v2750_v48, %v2754_v53  ;;  %v2760_v11 = vadd.s32 %v2754_v53, %v2750_v48 }
 0x2af   : > { %v2775_v19 = vmul.u32 %v2771_v52, %v2747_v40  ;;  %v2759_v34 = vsel %vm2758_vm11, 1, %v8659_v35  ;;  %v2778_v37 = vshll.u32 %v2774_v3, 16  ;;  %v2879_v4 = vshrl.u32 %v8691_v2, %v6350_v23 }
 0x2b0   : > { %vm2780_vm9 = vc.u32 %v2772_v51, %v2776_v36  ;;  %v2761_v62 = vadd.s32 %v2759_v34, %v2753_v38  ;;  %vm2762_vm12 = vc.u32 %v2760_v11, %v2756_v1  ;;  %v2782_v39 = vadd.s32 %v2776_v36, %v2772_v51 }
 0x2b1   : > { %v2781_v17 = vsel %vm2780_vm9, 1, %v8659_v35  ;;  %v2881_v56 = vshll.u32 %v8691_v2, %v6322_v26  ;;  %v2763_v53 = vsel %vm2762_vm12, 1, %v8659_v35  ;;  %v2882_v40 = vshrl.u32 %v8668_v45, %v6350_v23 }
 0x2b2   : > { %v2783_v48 = vadd.s32 %v2781_v17, %v2775_v19  ;;  %v2755_v52 = vshrl.u32 %v2751_v58, 16  ;;  %v2765_v24 = vadd.s32 %v2763_v53, %v2761_v62  ;;  %vm2784_vm13 = vc.u32 %v2782_v39, %v2778_v37 }
 0x2b3   : > { %v2736_v38 = vsel %vm2730_vm7, %v2733_v41, %v2735_v31  ;;  %v2785_v51 = vsel %vm2784_vm13, 1, %v8659_v35  ;;  %v2859_v1 = vand.u32 8388607, %v8548_v18  ;;  %v8549_v11 = vand.u32 2147483647, %v6152_v5 }
 0x2b4   : > { %v2757_v36 = vshrl.u32 %v2752_v14, 16  ;;  %v2766_v34 = vadd.s32 %v2765_v24, %v2755_v52  ;;  %v2777_v61 = vshrl.u32 %v2773_v0, 16  ;;  %v2787_v17 = vadd.s32 %v2785_v51, %v2783_v48 }
 0x2b5   : > { %v6372_v19 = vshrl.u32 %v8691_v2, %v6331_v57  ;;  %v6376_v58 = vshrl.u32 %v8668_v45, %v6331_v57  ;;  %v2880_v31 = vor.u32 %v2879_v4, %v2878_v27  ;;  %vm2887_vm6 = vcmp.lt.s32.totalorder %v6343_v28, 4 }
 0x2b6   : > { %v2883_v8 = vor.u32 %v2882_v40, %v2881_v56  ;;  %v2767_v62 = vadd.s32 %v2766_v34, %v2757_v36  ;;  %v2779_v41 = vshrl.u32 %v2774_v3, 16  ;;  %v2788_v53 = vadd.s32 %v2787_v17, %v2777_v61 }
 0x2b7   : > { %v2786_v18 = vadd.s32 %v2782_v39, %v2778_v37  ;;  %v2790_v14 = vmul.u32 %v6316_v16, %v2736_v38  ;;  %v2860_v0 = vor.u32 8388608, %v2859_v1  ;;  %v6382_v48 = vand.u32 8388607, %v8549_v11 }
 0x2b8   : > { %v2789_v52 = vadd.s32 %v2788_v53, %v2779_v41  ;;  %v2869_v24 = vshll.u32 %v8660_v50, %v6322_v26  ;;  %v2872_v27 = vshll.u32 %v8661_v63, %v6322_v26  ;;  %v2875_v4 = vshll.u32 %v8662_v42, %v6322_v26 }
 0x2b9   : > { %vm2792_vm15 = vc.u32 %v2767_v62, %v2786_v18  ;;  %v2870_v3 = vshrl.u32 %v8661_v63, %v6350_v23  ;;  %v2873_v61 = vshrl.u32 %v8662_v42, %v6350_v23  ;;  %v2876_v16 = vshrl.u32 %v8663_v32, %v6350_v23 }
 0x2ba   : > { %v2893_v37 = vsel %vm2887_vm6, %v2880_v31, 920167782  ;;  %v2897_v39 = vsel %vm2887_vm6, %v2883_v8, 1326507024  ;;  %v2793_v56 = vadd.s32 1, %v2789_v52  ;;  %v2404_v26 = vshll.u32 %v8660_v50, %v6191_v7 }
 0x2bb   : > { %v2871_v40 = vor.u32 %v2870_v3, %v2869_v24  ;;  %v2874_v38 = vor.u32 %v2873_v61, %v2872_v27  ;;  %v2877_v51 = vor.u32 %v2876_v16, %v2875_v4  ;;  %v6402_v1 = vshll.u32 %v2860_v0, 8 }
 0x2bc   : > { %v2794_v36 = vsel %vm2792_vm15, %v2793_v56, %v2789_v52  ;;  %vm2884_vm0 = vcmp.lt.s32.totalorder %v6343_v28, 1  ;;  %v2405_v34 = vshrl.u32 %v8661_v63, %v6205_v43  ;;  %v2407_v17 = vshll.u32 %v8661_v63, %v6191_v7 }
 0x2bd   : > { %v2795_v41 = vadd.s32 %v2794_v36, %v2790_v14  ;;  %vm2886_vm3 = vcmp.lt.s32.totalorder %v6343_v28, 3  ;;  %v2892_v8 = vsel %vm2884_vm0, %v2871_v40, %v2874_v38  ;;  %vm2885_vm4 = vcmp.lt.s32.totalorder %v6343_v28, 2 }
 0x2be   : > { %v2894_v0 = vsel %vm2886_vm3, %v2877_v51, %v2893_v37  ;;  %v2896_v52 = vsel %vm2884_vm0, %v2874_v38, %v2877_v51  ;;  %v2898_v24 = vsel %vm2886_vm3, %v2880_v31, %v2897_v39  ;;  %v2901_v3 = vand.u32 65535, %v6402_v1 }
 0x2bf   : > { %v2796_v27 = vadd.s32 536870912, %v2795_v41  ;;  %v2895_v14 = vsel %vm2885_vm4, %v2892_v8, %v2894_v0  ;;  %v2899_v4 = vsel %vm2885_vm4, %v2896_v52, %v2898_v24  ;;  %v2902_v61 = vshrl.u32 %v6402_v1, 16 }
 0x2c0   : > { %v2903_v16 = vand.u32 65535, %v2899_v4  ;;  %v2904_v56 = vshrl.u32 %v2899_v4, 16  ;;  %v2926_v37 = vshrl.u32 %v2895_v14, 16  ;;  %v6426_v36 = vadd.s32 %v2786_v18, %v2767_v62 }
 0x2c1   : > { %v6428_v11 = vshrl.u32 %v2796_v27, 30  ;;  %v2868_v31 = vshrl.u32 %v8660_v50, %v6350_v23  ;;  %v2925_v39 = vand.u32 65535, %v2895_v14  ;;  %v2889_v8 = vsel %vm2887_vm6, %v2877_v51, 2102212464 }
 0x2c2   : > { %v2906_v0 = vmul.u32 %v2904_v56, %v2901_v3  ;;  %v2907_v52 = vmul.u32 %v2903_v16, %v2902_v61  ;;  %v6434_v24 = vor.u32 %v2405_v34, %v2404_v26  ;;  %v2928_v6 = vmul.u32 %v2926_v37, %v2901_v3 }
 0x2c3   : > { %v2798_v53 = vshll.u32 %v6428_v11, 30  ;;  %v2408_v18 = vshrl.u32 %v8662_v42, %v6205_v43  ;;  %v2410_v62 = vshll.u32 %v8662_v42, %v6191_v7  ;;  %v2888_v23 = vsel %vm2884_vm0, %v2868_v31, %v2871_v40 }
 0x2c4   : > { %v2905_v27 = vmul.u32 %v2903_v16, %v2901_v3  ;;  %v2909_v14 = vshll.u32 %v2906_v0, 16  ;;  %v2411_v51 = vshrl.u32 %v8663_v32, %v6205_v43  ;;  %v2890_v26 = vsel %vm2886_vm3, %v2874_v38, %v2889_v8 }
 0x2c5   : > { %v6445_v4 = vsub.s32 %v2795_v41, %v2798_v53  ;;  %v2908_v34 = vmul.u32 %v2904_v56, %v2902_v61  ;;  %v2929_v20 = vmul.u32 %v2925_v39, %v2902_v61  ;;  %v2911_v29 = vshll.u32 %v2907_v52, 16 }
 0x2c6   : > { %vm2913_vm8 = vc.u32 %v2905_v27, %v2909_v14  ;;  %v2915_v47 = vadd.s32 %v2909_v14, %v2905_v27  ;;  %v2931_v13 = vshll.u32 %v2928_v6, 16  ;;  %v2927_v16 = vmul.u32 %v2925_v39, %v2901_v3 }
 0x2c7   : > { %vm2800_vm5 = vcmp.lt.s32.totalorder %v6445_v4, 0  ;;  %v2801_v7 = vsub.s32 0, %v6445_v4  ;;  %v2914_v40 = vsel %vm2913_vm8, 1, %v8659_v35  ;;  %vm2699_vm7 = vcmp.lt.s32.totalorder %v6159_v33, 0 }
 0x2c8   : > { %v2916_v41 = vadd.s32 %v2914_v40, %v2908_v34  ;;  %vm2917_vm11 = vc.u32 %v2915_v47, %v2911_v29  ;;  %v2930_v53 = vmul.u32 %v2926_v37, %v2902_v61  ;;  %v2933_v31 = vshll.u32 %v2929_v20, 16 }
 0x2c9   : > { %v2802_v38 = vsel %vm2800_vm5, %v2801_v7, %v6445_v4  ;;  %v2918_v56 = vsel %vm2917_vm11, 1, %v8659_v35  ;;  %vm2935_vm9 = vc.u32 %v2927_v16, %v2931_v13  ;;  %v2937_v8 = vadd.s32 %v2931_v13, %v2927_v16 }
 0x2ca   : > { %v2803_v27 = vclz %v2802_v38  ;;  %v2910_v14 = vshrl.u32 %v2906_v0, 16  ;;  %v2920_v10 = vadd.s32 %v2918_v56, %v2916_v41  ;;  %v2936_v21 = vsel %vm2935_vm9, 1, %v8659_v35 }
 0x2cb   : > { %v2938_v59 = vadd.s32 %v2936_v21, %v2930_v53  ;;  %vm2939_vm12 = vc.u32 %v2937_v8, %v2933_v31  ;;  %v6456_v3 = vor.u32 %v2408_v18, %v2407_v17  ;;  %v2412_v39 = vor.u32 %v2411_v51, %v2410_v62 }
 0x2cc   : > { %v4612_v34 = vadd.s32 4294967294, %v2803_v27  ;;  %v2912_v29 = vshrl.u32 %v2907_v52, 16  ;;  %v2921_v47 = vadd.s32 %v2920_v10, %v2910_v14  ;;  %v2940_v61 = vsel %vm2939_vm12, 1, %v8659_v35 }
 0x2cd   : > { %v2821_v37 = vsub.s32 4, %v6428_v11  ;;  %v2891_v13 = vsel %vm2885_vm4, %v2888_v23, %v2890_v26  ;;  %v2932_v7 = vshrl.u32 %v2928_v6, 16  ;;  %v2942_v0 = vadd.s32 %v2940_v61, %v2938_v59 }
 0x2ce   : > { %v8730_v40 = vand.u32 2147483647, %v6159_v33  ;;  %vm4613_vm6 = vcmp.lt.s32.totalorder %v4612_v34, 0  ;;  %v6468_v17 = vadd.s32 %v2921_v47, %v2912_v29  ;;  %v2934_v52 = vshrl.u32 %v2929_v20, 16 }
 0x2cf   : > { %vm2419_vm15 = vcmp.lt.s32.totalorder %v6242_v60, 1  ;;  %v2806_v10 = vsel %vm4613_vm6, 0, %v4612_v34  ;;  %v6471_v18 = vadd.s32 %v2937_v8, %v2933_v31  ;;  %v2943_v62 = vadd.s32 %v2942_v0, %v2932_v7 }
 0x2d0   : > { %vm6464_vm13 = vcmp.le.f32.partialorder %v8730_v40, 0.7853982  ;;  %vm2421_vm0 = vcmp.lt.s32.totalorder %v6242_v60, 3  ;;  %v2807_v6 = vsub.s32 32, %v2806_v10  ;;  %v2811_v59 = vsub.s32 4294967266, %v2806_v10 }
 0x2d1   : > { %v2427_v28 = vsel %vm2419_vm15, %v6434_v24, %v6456_v3  ;;  %v2429_v23 = vsel %vm2421_vm0, %v2412_v39, %v6285_v54  ;;  %v2822_v20 = vsel %vm2699_vm7, %v2821_v37, %v6428_v11  ;;  %v2944_v51 = vadd.s32 %v2943_v62, %v2934_v52 }
 0x2d2   : > { %v2945_v26 = vmul.u32 %v6402_v1, %v2891_v13  ;;  %vm2420_vm3 = vcmp.lt.s32.totalorder %v6242_v60, 2  ;;  %v2808_v16 = vshll.u32 %v6445_v4, %v2806_v10  ;;  %v2809_v41 = vshrl.u32 %v6426_v36, %v2807_v6 }
 0x2d3   : > { %v2812_v53 = vadd.s32 127, %v2811_v59  ;;  %vm2947_vm4 = vc.u32 %v6468_v17, %v6471_v18  ;;  %v2948_v31 = vadd.s32 1, %v2944_v51  ;;  %v6492_v54 = vsel %vm2420_vm3, %v2427_v28, %v2429_v23 }
 0x2d4   : > { %v2431_v11 = vsel %vm2419_vm15, %v6456_v3, %v2412_v39  ;;  %v2433_v1 = vsel %vm2421_vm0, %v6253_v25, %v6289_v30  ;;  %v2810_v4 = vor.u32 %v2809_v41, %v2808_v16  ;;  %v8733_v56 = vor.u32 8388608, %v6382_v48 }
 0x2d5   : > { %v2813_v36 = vshll.u32 %v2812_v53, 23  ;;  %v2434_v38 = vsel %vm2420_vm3, %v2431_v11, %v2433_v1  ;;  %v6509_v27 = vor.u32 %v6372_v19, %v6337_v12  ;;  %v2949_v14 = vsel %vm2947_vm4, %v2948_v31, %v2944_v51 }
 0x2d6   : > { %v6505_v8 = vshll.u32 %v8733_v56, 8  ;;  %v2438_v34 = vand.u32 65535, %v2434_v38  ;;  %v2439_v29 = vshrl.u32 %v2434_v38, 16  ;;  %v2950_v61 = vadd.s32 %v2949_v14, %v2945_v26 }
 0x2d7   : > { %v2814_v47 = vor.u32 4788187, %v2813_v36  ;;  %v2403_v25 = vshrl.u32 %v8660_v50, %v6205_v43  ;;  %v2824_v37 = vsel %vm6464_vm13, 0, %v2822_v20  ;;  %v2424_v48 = vsel %vm2422_vm2, %v2412_v39, 2102212464 }
 0x2d8   : > { %v2436_v30 = vand.u32 65535, %v6505_v8  ;;  %v2437_v13 = vshrl.u32 %v6505_v8, 16  ;;  %v2461_v12 = vshrl.u32 %v6492_v54, 16  ;;  %v2817_v7 = vcvt.s32.f32 %v2810_v4 }
 0x2d9   : > { %v2815_v19 = vand.u32 2147483647, %v2814_v47  ;;  %v2951_v0 = vadd.s32 536870912, %v2950_v61  ;;  %v2573_v52 = vor.u32 %v6376_v58, %v6341_v55  ;;  %v2460_v10 = vand.u32 65535, %v6492_v54 }
 0x2da   : > { %v2441_v40 = vmul.u32 %v2439_v29, %v2436_v30  ;;  %v6522_v43 = vmul.u32 %v2438_v34, %v2437_v13  ;;  %v6525_v62 = vmul.u32 %v2461_v12, %v2436_v30  ;;  %v2440_v39 = vmul.u32 %v2438_v34, %v2436_v30 }
 0x2db   : > { %v2818_v6 = vmul.f32 %v2817_v7, %v2815_v19  ;;  %v2952_v59 = vshrl.u32 %v2951_v0, 30  ;;  %v2841_v23 = vadd.s32 3, %v2824_v37  ;;  %vm2854_vm2 = vcmp.lt.s32.totalorder %v6230_v49, 0 }
 0x2dc   : > { %v2444_v28 = vshll.u32 %v2441_v40, 16  ;;  %v2423_v20 = vsel %vm2419_vm15, %v2403_v25, %v6434_v24  ;;  %v2425_v51 = vsel %vm2421_vm0, %v6456_v3, %v2424_v48  ;;  %v2443_v26 = vmul.u32 %v2439_v29, %v2437_v13 }
 0x2dd   : > { %v2819_v16 = vxor.u32 2147483648, %v2818_v6  ;;  %v2953_v41 = vshll.u32 %v2952_v59, 30  ;;  %v2446_v53 = vshll.u32 %v6522_v43, 16  ;;  %v2464_v11 = vmul.u32 %v2460_v10, %v2437_v13 }
 0x2de   : > { %vm2448_vm8 = vc.u32 %v2440_v39, %v2444_v28  ;;  %v2450_v54 = vadd.s32 %v2444_v28, %v2440_v39  ;;  %v2466_v1 = vshll.u32 %v6525_v62, 16  ;;  %v8734_v24 = vand.u32 2147483647, %v6230_v49 }
 0x2df   : > { %v2449_v31 = vsel %vm2448_vm8, 1, %v8659_v35  ;;  %v2820_v4 = vsel %vm2699_vm7, %v2819_v16, %v2818_v6  ;;  %v6545_v3 = vsub.s32 %v2950_v61, %v2953_v41  ;;  %v6549_v38 = vsel %vm2420_vm3, %v2423_v20, %v2425_v51 }
 0x2e0   : > { %vm6541_vm5 = vcmp.le.f32.partialorder %v8734_v24, 0.7853982  ;;  %v2462_v56 = vmul.u32 %v2460_v10, %v2436_v30  ;;  %v6554_v14 = vsel %vm6464_vm13, %v6159_v33, %v2820_v4  ;;  %v2445_v34 = vshrl.u32 %v2441_v40, 16 }
 0x2e1   : > { %v2451_v29 = vadd.s32 %v2449_v31, %v2443_v26  ;;  %vm2452_vm7 = vc.u32 %v2450_v54, %v2446_v53  ;;  %v2825_v47 = vmul.f32 %v6554_v14, %v6554_v14  ;;  %vm2955_vm11 = vcmp.lt.s32.totalorder %v6545_v3, 0 }
 0x2e2   : > { %v2956_v61 = vsub.s32 0, %v6545_v3  ;;  %v2976_v25 = vsub.s32 4, %v2952_v59  ;;  %v2453_v60 = vsel %vm2452_vm7, 1, %v8659_v35  ;;  %v2468_v37 = vshll.u32 %v2464_v11, 16 }
 0x2e3   : > { %vm2470_vm9 = vc.u32 %v2462_v56, %v2466_v1  ;;  %v2472_v30 = vadd.s32 %v2466_v1, %v2462_v56  ;;  %v2826_v48 = vmul.f32 -0.001358992, %v2825_v47  ;;  %v2833_v21 = vmul.f32 -0.00019511016, %v2825_v47 }
 0x2e4   : > { %v2957_v19 = vsel %vm2955_vm11, %v2956_v61, %v6545_v3  ;;  %v2465_v7 = vmul.u32 %v2461_v12, %v2437_v13  ;;  %v2455_v40 = vadd.s32 %v2453_v60, %v2451_v29  ;;  %v2471_v10 = vsel %vm2470_vm9, 1, %v8659_v35 }
 0x2e5   : > { %v2958_v0 = vclz %v2957_v19  ;;  %vm2474_vm12 = vc.u32 %v2472_v30, %v2468_v37  ;;  %v2827_v6 = vadd.f32 0.041655596, %v2826_v48  ;;  %v2834_v39 = vadd.f32 0.008332121, %v2833_v21 }
 0x2e6   : > { %v6563_v28 = vand.u32 3, %v2841_v23  ;;  %v2977_v20 = vsel %vm2854_vm2, %v2976_v25, %v2952_v59  ;;  %v2946_v51 = vadd.s32 %v6471_v18, %v6468_v17  ;;  %v2456_v16 = vadd.s32 %v2455_v40, %v2445_v34 }
 0x2e7   : > { %v4615_v26 = vadd.s32 4294967294, %v2958_v0  ;;  %v2473_v41 = vadd.s32 %v2471_v10, %v2465_v7  ;;  %v2828_v53 = vmul.f32 %v2827_v6, %v2825_v47  ;;  %v2835_v13 = vmul.f32 %v2834_v39, %v2825_v47 }
 0x2e8   : > { %v2447_v12 = vshrl.u32 %v6522_v43, 16  ;;  %v2475_v31 = vsel %vm2474_vm12, 1, %v8659_v35  ;;  %v2979_v23 = vsel %vm6541_vm5, 0, %v2977_v20  ;;  %v2467_v54 = vshrl.u32 %v6525_v62, 16 }
 0x2e9   : > { %vm4616_vm13 = vcmp.lt.s32.totalorder %v4615_v26, 0  ;;  %v2477_v1 = vadd.s32 %v2475_v31, %v2473_v41  ;;  %v2829_v59 = vadd.f32 -0.4999988, %v2828_v53  ;;  %v2836_v4 = vadd.f32 -0.16666654, %v2835_v13 }
 0x2ea   : > { %v2961_v24 = vsel %vm4616_vm13, 0, %v4615_v26  ;;  %v6574_v17 = vadd.s32 %v2456_v16, %v2447_v12  ;;  %v2469_v34 = vshrl.u32 %v2464_v11, 16  ;;  %vm2843_vm6 = vcmp.lt.s32.totalorder %v6563_v28, 2 }
 0x2eb   : > { %v2962_v18 = vsub.s32 32, %v2961_v24  ;;  %v2966_v56 = vsub.s32 4294967266, %v2961_v24  ;;  %v2478_v29 = vadd.s32 %v2477_v1, %v2467_v54  ;;  %v2830_v61 = vmul.f32 %v2829_v59, %v2825_v47 }
 0x2ec   : > { %v2837_v43 = vmul.f32 %v2836_v4, %v2825_v47  ;;  %v6577_v25 = vadd.s32 %v2472_v30, %v2468_v37  ;;  %v2542_v60 = vand.u32 2147483647, %v6185_v9  ;;  %vm2577_vm15 = vcmp.lt.s32.totalorder %v6328_v46, 4 }
 0x2ed   : > { %vm2840_vm0 = vweird.f32 %v6159_v33  ;;  %v2963_v62 = vshll.u32 %v6545_v3, %v2961_v24  ;;  %v2964_v48 = vshrl.u32 %v2946_v51, %v2962_v18  ;;  %v2967_v21 = vadd.s32 127, %v2966_v56 }
 0x2ee   : > { %v2479_v19 = vadd.s32 %v2478_v29, %v2469_v34  ;;  %v2831_v7 = vadd.f32 1.0, %v2830_v61  ;;  %v2838_v11 = vadd.f32 1.0, %v2837_v43  ;;  %vm2844_vm3 = vcmp.eq.s32.totalorder %v6563_v28, 0 }
 0x2ef   : > { %vm2482_vm4 = vc.u32 %v6574_v17, %v6577_v25  ;;  %vm2847_vm8 = vcmp.eq.s32.totalorder %v6563_v28, 2  ;;  %v2965_v47 = vor.u32 %v2964_v48, %v2963_v62  ;;  %v2968_v37 = vshll.u32 %v2967_v21, 23 }
 0x2f0   : > { %v2483_v30 = vadd.s32 1, %v2479_v19  ;;  %v2839_v0 = vmul.f32 %v2838_v11, %v6554_v14  ;;  %v2848_v40 = vxor.u32 2147483648, %v2831_v7  ;;  %v2996_v10 = vadd.s32 3, %v2979_v23 }
 0x2f1   : > { %v2480_v3 = vmul.u32 %v6505_v8, %v6549_v38  ;;  %v2969_v6 = vor.u32 4788187, %v2968_v37  ;;  %v2549_v20 = vand.u32 8388607, %v2542_v60  ;;  %v2560_v51 = vshrl.u32 %v8661_v63, %v6331_v57 }
 0x2f2   : > { %v2484_v39 = vsel %vm2482_vm4, %v2483_v30, %v2479_v19  ;;  %v2845_v26 = vxor.u32 2147483648, %v2839_v0  ;;  %v2972_v16 = vcvt.s32.f32 %v2965_v47  ;;  %v2562_v53 = vshll.u32 %v8661_v63, %v6305_v22 }
 0x2f3   : > { %v2485_v41 = vadd.s32 %v2484_v39, %v2480_v3  ;;  %v2970_v14 = vand.u32 2147483647, %v2969_v6  ;;  %v2563_v13 = vshrl.u32 %v8662_v42, %v6331_v57  ;;  %v2565_v8 = vshll.u32 %v8662_v42, %v6305_v22 }
 0x2f4   : > { %v2566_v38 = vshrl.u32 %v8663_v32, %v6331_v57  ;;  %v2846_v12 = vsel %vm2844_vm3, %v2831_v7, %v2845_v26  ;;  %v2849_v31 = vsel %vm2847_vm8, %v2848_v40, %v2839_v0  ;;  %v2559_v54 = vshll.u32 %v8660_v50, %v6305_v22 }
 0x2f5   : > { %v2486_v23 = vadd.s32 536870912, %v2485_v41  ;;  %v2850_v1 = vsel %vm2843_vm6, %v2846_v12, %v2849_v31  ;;  %v2973_v59 = vmul.f32 %v2972_v16, %v2970_v14  ;;  %v2564_v4 = vor.u32 %v2563_v13, %v2562_v53 }
 0x2f6   : > { %v2567_v24 = vor.u32 %v2566_v38, %v2565_v8  ;;  %v2583_v18 = vsel %vm2577_vm15, %v6509_v27, 920167782  ;;  %v2587_v56 = vsel %vm2577_vm15, %v2573_v52, 1326507024  ;;  %v2851_v34 = vsel %vm2840_vm0, nan, %v2850_v1 }
 0x2f7   : > { %v2487_v22 = vshrl.u32 %v2486_v23, 30  ;;  %3061 = vmatpush.msrb.mxu0 %v2851_v34  ;;  %v2974_v28 = vxor.u32 2147483648, %v2973_v59  ;;  %vm2389_vm7 = vcmp.lt.s32.totalorder %v6152_v5, 0  ;;  %v2550_v29 = vor.u32 8388608, %v2549_v20 }
 0x2f8   : > { %v2561_v61 = vor.u32 %v2560_v51, %v2559_v54  ;;  %v6621_v43 = vand.u32 3, %v2996_v10  ;;  %vm2574_vm11 = vcmp.lt.s32.totalorder %v6328_v46, 1  ;;  %vm2576_vm9 = vcmp.lt.s32.totalorder %v6328_v46, 3 }
 0x2f9   : > { %v2488_v62 = vshll.u32 %v2487_v22, 30  ;;  %v2975_v55 = vsel %vm2854_vm2, %v2974_v28, %v2973_v59  ;;  %vm2575_vm12 = vcmp.lt.s32.totalorder %v6328_v46, 2  ;;  %v2586_v33 = vsel %vm2574_vm11, %v2564_v4, %v2567_v24 }
 0x2fa   : > { %v2588_v58 = vsel %vm2576_vm9, %v6509_v27, %v2587_v56  ;;  %v6636_v52 = vsel %vm6541_vm5, %v6230_v49, %v2975_v55  ;;  %v2579_v21 = vsel %vm2577_vm15, %v2567_v24, 2102212464  ;;  %v2582_v11 = vsel %vm2574_vm11, %v2561_v61, %v2564_v4 }
 0x2fb   : > { %v6638_v48 = vsub.s32 %v2485_v41, %v2488_v62  ;;  %v2589_v19 = vsel %vm2575_vm12, %v2586_v33, %v2588_v58  ;;  %v2980_v7 = vmul.f32 %v6636_v52, %v6636_v52  ;;  %v2584_v27 = vsel %vm2576_vm9, %v2567_v24, %v2583_v18 }
 0x2fc   : > { %v6650_v36 = vshll.u32 %v2550_v29, 8  ;;  %v2511_v37 = vsub.s32 4, %v2487_v22  ;;  %v2594_v30 = vshrl.u32 %v2589_v19, 16  ;;  %v2481_v10 = vadd.s32 %v6577_v25, %v6574_v17 }
 0x2fd   : > { %vm2490_vm2 = vcmp.lt.s32.totalorder %v6638_v48, 0  ;;  %v2491_v47 = vsub.s32 0, %v6638_v48  ;;  %v2981_v0 = vmul.f32 -0.001358992, %v2980_v7  ;;  %v2988_v40 = vmul.f32 -0.00019511016, %v2980_v7 }
 0x2fe   : > { %v2593_v3 = vand.u32 65535, %v2589_v19  ;;  %v2558_v39 = vshrl.u32 %v8660_v50, %v6331_v57  ;;  %v2585_v20 = vsel %vm2575_vm12, %v2582_v11, %v2584_v27  ;;  %v2591_v51 = vand.u32 65535, %v6650_v36 }
 0x2ff   : > { %v2492_v6 = vsel %vm2490_vm2, %v2491_v47, %v6638_v48  ;;  %v2982_v26 = vadd.f32 0.041655596, %v2981_v0  ;;  %v2989_v16 = vadd.f32 0.008332121, %v2988_v40  ;;  %v2592_v53 = vshrl.u32 %v6650_v36, 16 }
 0x300   : > { %v2493_v41 = vclz %v2492_v6  ;;  %v6665_v14 = vsel %vm2389_vm7, %v2511_v37, %v2487_v22  ;;  %v6669_v17 = vsel %vm2574_vm11, %v2558_v39, %v2561_v61  ;;  %v6673_v57 = vsel %vm2576_vm9, %v2564_v4, %v2579_v21 }
 0x301   : > { %v2596_v25 = vmul.u32 %v2594_v30, %v2591_v51  ;;  %v2983_v13 = vmul.f32 %v2982_v26, %v2980_v7  ;;  %v2990_v8 = vmul.f32 %v2989_v16, %v2980_v7  ;;  %v8737_v38 = vand.u32 2147483647, %v6152_v5 }
 0x302   : > { %v4606_v31 = vadd.s32 4294967294, %v2493_v41  ;;  %v2597_v23 = vmul.u32 %v2593_v3, %v2592_v53  ;;  %v2595_v54 = vmul.u32 %v2593_v3, %v2591_v51  ;;  %v2615_v59 = vand.u32 65535, %v2585_v20 }
 0x303   : > { %vm6677_vm5 = vcmp.le.f32.partialorder %v8737_v38, 0.7853982  ;;  %v2599_v1 = vshll.u32 %v2596_v25, 16  ;;  %v2616_v24 = vshrl.u32 %v2585_v20, 16  ;;  %v2984_v18 = vadd.f32 -0.4999988, %v2983_v13 }
 0x304   : > { %v2991_v56 = vadd.f32 -0.16666654, %v2990_v8  ;;  %vm4607_vm13 = vcmp.lt.s32.totalorder %v4606_v31, 0  ;;  %v2598_v4 = vmul.u32 %v2594_v30, %v2592_v53  ;;  %vm2999_vm6 = vcmp.eq.s32.totalorder %v6621_v43, 0 }
 0x305   : > { %vm3002_vm15 = vcmp.eq.s32.totalorder %v6621_v43, 2  ;;  %v2496_v34 = vsel %vm4607_vm13, 0, %v4606_v31  ;;  %v2601_v22 = vshll.u32 %v2597_v23, 16  ;;  %vm2603_vm0 = vc.u32 %v2595_v54, %v2599_v1 }
 0x306   : > { %v2605_v28 = vadd.s32 %v2599_v1, %v2595_v54  ;;  %v2985_v29 = vmul.f32 %v2984_v18, %v2980_v7  ;;  %v2992_v61 = vmul.f32 %v2991_v56, %v2980_v7  ;;  %vm2998_vm3 = vcmp.lt.s32.totalorder %v6621_v43, 2 }
 0x307   : > { %v2497_v62 = vsub.s32 32, %v2496_v34  ;;  %v2498_v55 = vshll.u32 %v6638_v48, %v2496_v34  ;;  %vm2995_vm4 = vweird.f32 %v6230_v49  ;;  %v2501_v33 = vsub.s32 4294967266, %v2496_v34 }
 0x308   : > { %v2604_v58 = vsel %vm2603_vm0, 1, %v8659_v35  ;;  %vm2607_vm8 = vc.u32 %v2605_v28, %v2601_v22  ;;  %v2618_v21 = vmul.u32 %v2616_v24, %v2591_v51  ;;  %v2986_v19 = vadd.f32 1.0, %v2985_v29 }
 0x309   : > { %v2993_v11 = vadd.f32 1.0, %v2992_v61  ;;  %v2499_v27 = vshrl.u32 %v2481_v10, %v2497_v62  ;;  %v2606_v47 = vadd.s32 %v2604_v58, %v2598_v4  ;;  %v2502_v37 = vadd.s32 127, %v2501_v33 }
 0x30a   : > { %v2600_v30 = vshrl.u32 %v2596_v25, 16  ;;  %v2608_v7 = vsel %vm2607_vm8, 1, %v8659_v35  ;;  %v2619_v0 = vmul.u32 %v2615_v59, %v2592_v53  ;;  %v3003_v3 = vxor.u32 2147483648, %v2986_v19 }
 0x30b   : > { %v2994_v40 = vmul.f32 %v2993_v11, %v6636_v52  ;;  %v2500_v48 = vor.u32 %v2499_v27, %v2498_v55  ;;  %v2610_v6 = vadd.s32 %v2608_v7, %v2606_v47  ;;  %v2503_v39 = vshll.u32 %v2502_v37, 23  ;;  %v8741_v11 = vld [vmem:[#allocation19_spill] sm:$0xff] }
 0x30c   : > { %v2514_v20 = vsel %vm6677_vm5, 0, %v6665_v14  ;;  %v2617_v26 = vmul.u32 %v2615_v59, %v2591_v51  ;;  %v2621_v16 = vshll.u32 %v2618_v21, 16  ;;  %v2602_v10 = vshrl.u32 %v2597_v23, 16 }
 0x30d   : > { %v3000_v41 = vxor.u32 2147483648, %v2994_v40  ;;  %v2611_v13 = vadd.s32 %v2610_v6, %v2600_v30  ;;  %v2620_v8 = vmul.u32 %v2616_v24, %v2592_v53  ;;  %v2504_v25 = vor.u32 4788187, %v2503_v39 }
 0x30e   : > { %v2623_v38 = vshll.u32 %v2619_v0, 16  ;;  %vm2625_vm11 = vc.u32 %v2617_v26, %v2621_v16  ;;  %v2627_v31 = vadd.s32 %v2621_v16, %v2617_v26  ;;  %v3004_v54 = vsel %vm3002_vm15, %v3003_v3, %v2994_v40  ;;  %v8742_v3 = vld [vmem:[#allocation9_spill] sm:$0xff] }
 0x30f   : > { %v3001_v52 = vsel %vm2999_vm6, %v2986_v19, %v3000_v41  ;;  %v2507_v1 = vcvt.s32.f32 %v2500_v48  ;;  %v2626_v18 = vsel %vm2625_vm11, 1, %v8659_v35  ;;  %v2505_v14 = vand.u32 2147483647, %v2504_v25  ;;  %v8744_v16 = vld [vmem:[#allocation29_spill] sm:$0xff] }
 0x310   : > { %v3005_v51 = vsel %vm2998_vm3, %v3001_v52, %v3004_v54  ;;  %v2628_v23 = vadd.s32 %v2626_v18, %v2620_v8  ;;  %vm2629_vm9 = vc.u32 %v2627_v31, %v2623_v38  ;;  %v2259_v53 = vshrl.u32 %v8691_v2, %v6303_v44 }
 0x311   : > { %v3006_v59 = vsel %vm2995_vm4, nan, %v3005_v51  ;;  %v6703_v24 = vadd.s32 %v2611_v13, %v2602_v10  ;;  %v2630_v56 = vsel %vm2629_vm9, 1, %v8659_v35  ;;  %v2508_v4 = vmul.f32 %v2507_v1, %v2505_v14 }
 0x312   : > { %3090 = vmatpush.msrb.mxu1 %v3006_v59  ;;  %v2622_v34 = vshrl.u32 %v2618_v21, 16  ;;  %v2632_v22 = vadd.s32 %v2630_v56, %v2628_v23  ;;  %v2077_v43 = vand.u32 2147483647, %v6149_v15  ;;  %v2262_v28 = vshrl.u32 %v8668_v45, %v6303_v44  ;;  %v8740_v21 = vld [vmem:[#allocation11_spill] sm:$0xff]  ;;  %v8746_v23 = vld [vmem:[#allocation20_spill] sm:$0xff]  ;;  %v8748_v56 = vld [vmem:[#allocation21_spill] sm:$0xff] }
 0x313   : > { %v2531_v29 = vadd.s32 3, %v2514_v20  ;;  %v2581_v49 = vsel %vm2575_vm12, %v6669_v17, %v6673_v57  ;;  %v2631_v61 = vadd.s32 %v2627_v31, %v2623_v38  ;;  %v2509_v62 = vxor.u32 2147483648, %v2508_v4  ;;  %v8743_v20 = vld [vmem:[#allocation28_spill] sm:$0xff]  ;;  %v8745_v38 = vld [vmem:[#allocation18_spill] sm:$0xff] }
 0x314   : > { %v2624_v55 = vshrl.u32 %v2619_v0, 16  ;;  %v2633_v33 = vadd.s32 %v2632_v22, %v2622_v34  ;;  %v2084_v58 = vand.u32 8388607, %v2077_v43  ;;  %v2095_v19 = vshrl.u32 %v8661_v63, %v8740_v21  ;;  %v8747_v59 = vld [vmem:[#allocation8_spill] sm:$0xff] }
 0x315   : > { %vm2637_vm2 = vc.u32 %v6703_v24, %v2631_v61  ;;  %v2097_v27 = vshll.u32 %v8661_v63, %v8741_v11  ;;  %v2098_v47 = vshrl.u32 %v8662_v42, %v8740_v21  ;;  %v2510_v46 = vsel %vm2389_vm7, %v2509_v62, %v2508_v4 }
 0x316   : > { %v2634_v17 = vadd.s32 %v2633_v33, %v2624_v55  ;;  %v2100_v57 = vshll.u32 %v8662_v42, %v8741_v11  ;;  %v2101_v37 = vshrl.u32 %v8663_v32, %v8740_v21  ;;  %v6731_v30 = vsel %vm6677_vm5, %v6152_v5, %v2510_v46 }
 0x317   : > { %v2085_v7 = vor.u32 8388608, %v2084_v58  ;;  %v2094_v0 = vshll.u32 %v8660_v50, %v8741_v11  ;;  %v6735_v40 = vor.u32 %v2098_v47, %v2097_v27  ;;  %vm2267_vm7 = vcmp.lt.s32.totalorder %v8742_v3, 4 }
 0x318   : > { %v2515_v48 = vmul.f32 %v6731_v30, %v6731_v30  ;;  %v2638_v6 = vadd.s32 1, %v2634_v17  ;;  %v2102_v39 = vor.u32 %v2101_v37, %v2100_v57  ;;  %v6741_v26 = vor.u32 %v2259_v53, %v8743_v20 }
 0x319   : > { %v2263_v12 = vor.u32 %v2262_v28, %v8744_v16  ;;  %v2635_v41 = vmul.u32 %v6650_v36, %v2581_v49  ;;  %v6745_v10 = vor.u32 %v2095_v19, %v2094_v0  ;;  %vm2109_vm12 = vcmp.lt.s32.totalorder %v8745_v38, 1 }
 0x31a   : > { %v2516_v13 = vmul.f32 -0.001358992, %v2515_v48  ;;  %v2523_v8 = vmul.f32 -0.00019511016, %v2515_v48  ;;  %v2639_v25 = vsel %vm2637_vm2, %v2638_v6, %v2634_v17  ;;  %v6750_v31 = vand.u32 3, %v2531_v29 }
 0x31b   : > { %v2640_v52 = vadd.s32 %v2639_v25, %v2635_v41  ;;  %v2121_v54 = vsel %vm2109_vm12, %v6735_v40, %v2102_v39  ;;  %v6755_v1 = vshll.u32 %v2085_v7, 8  ;;  %vm2110_vm5 = vcmp.lt.s32.totalorder %v8745_v38, 2 }
 0x31c   : > { %v2517_v18 = vadd.f32 0.041655596, %v2516_v13  ;;  %v2524_v36 = vadd.f32 0.008332121, %v2523_v8  ;;  %vm2111_vm13 = vcmp.lt.s32.totalorder %v8745_v38, 3  ;;  %v2117_v14 = vsel %vm2109_vm12, %v6745_v10, %v6735_v40 }
 0x31d   : > { %v2641_v51 = vadd.s32 536870912, %v2640_v52  ;;  %v2119_v53 = vsel %vm2111_vm13, %v2102_v39, %v8746_v23  ;;  %v2123_v4 = vsel %vm2111_vm13, %v8748_v56, %v8747_v59  ;;  %v6773_v34 = vsel %vm2267_vm7, %v6741_v26, 920167782 }
 0x31e   : > { %v2518_v22 = vmul.f32 %v2517_v18, %v2515_v48  ;;  %v2525_v28 = vmul.f32 %v2524_v36, %v2515_v48  ;;  %v2124_v29 = vsel %vm2110_vm5, %v2121_v54, %v2123_v4  ;;  %v2126_v62 = vand.u32 65535, %v6755_v1 }
 0x31f   : > { %v6777_v49 = vshrl.u32 %v2641_v51, 30  ;;  %v2128_v55 = vand.u32 65535, %v2124_v29  ;;  %v2129_v33 = vshrl.u32 %v2124_v29, 16  ;;  %v6782_v58 = vsel %vm2267_vm7, %v2263_v12, 1326507024 }
 0x320   : > { %v2519_v19 = vadd.f32 -0.4999988, %v2518_v22  ;;  %v2526_v11 = vadd.f32 -0.16666654, %v2525_v28  ;;  %v2120_v27 = vsel %vm2110_vm5, %v2117_v14, %v2119_v53  ;;  %vm2534_vm6 = vcmp.eq.s32.totalorder %v6750_v31, 0 }
 0x321   : > { %vm2537_vm15 = vcmp.eq.s32.totalorder %v6750_v31, 2  ;;  %v2643_v47 = vshll.u32 %v6777_v49, 30  ;;  %v2127_v46 = vshrl.u32 %v6755_v1, 16  ;;  %v2131_v17 = vmul.u32 %v2129_v33, %v2126_v62 }
 0x322   : > { %v2520_v57 = vmul.f32 %v2519_v19, %v2515_v48  ;;  %v2527_v37 = vmul.f32 %v2526_v11, %v2515_v48  ;;  %vm2533_vm0 = vcmp.lt.s32.totalorder %v6750_v31, 2  ;;  %v2636_v7 = vadd.s32 %v2631_v61, %v6703_v24 }
 0x323   : > { %v2093_v0 = vshrl.u32 %v8660_v50, %v8740_v21  ;;  %vm2530_vm3 = vweird.f32 %v6152_v5  ;;  %v6795_v6 = vsub.s32 %v2640_v52, %v2643_v47  ;;  %v2132_v20 = vmul.u32 %v2128_v55, %v2127_v46 }
 0x324   : > { %v2134_v16 = vshll.u32 %v2131_v17, 16  ;;  %v2151_v12 = vshrl.u32 %v2120_v27, 16  ;;  %v2521_v41 = vadd.f32 1.0, %v2520_v57  ;;  %v2528_v13 = vadd.f32 1.0, %v2527_v37 }
 0x325   : > { %v2130_v8 = vmul.u32 %v2128_v55, %v2126_v62  ;;  %v2150_v25 = vand.u32 65535, %v2120_v27  ;;  %vm2645_vm4 = vcmp.lt.s32.totalorder %v6795_v6, 0  ;;  %v2646_v48 = vsub.s32 0, %v6795_v6 }
 0x326   : > { %v2114_v24 = vsel %vm2112_vm10, %v2102_v39, 2102212464  ;;  %v2133_v61 = vmul.u32 %v2129_v33, %v2127_v46  ;;  %v2529_v21 = vmul.f32 %v2528_v13, %v6731_v30  ;;  %v2538_v54 = vxor.u32 2147483648, %v2521_v41 }
 0x327   : > { %vm2138_vm8 = vc.u32 %v2130_v8, %v2134_v16  ;;  %v2140_v52 = vadd.s32 %v2134_v16, %v2130_v8  ;;  %v2647_v18 = vsel %vm2645_vm4, %v2646_v48, %v6795_v6  ;;  %v2136_v36 = vshll.u32 %v2132_v20, 16 }
 0x328   : > { %v2139_v51 = vsel %vm2138_vm8, 1, %v8659_v35  ;;  %v2153_v14 = vmul.u32 %v2151_v12, %v2126_v62  ;;  %v2535_v23 = vxor.u32 2147483648, %v2529_v21  ;;  %v2648_v53 = vclz %v2647_v18 }
 0x329   : > { %v2141_v59 = vadd.s32 %v2139_v51, %v2133_v61  ;;  %v2154_v56 = vmul.u32 %v2150_v25, %v2127_v46  ;;  %v2113_v39 = vsel %vm2109_vm12, %v2093_v0, %v6745_v10  ;;  %v2115_v30 = vsel %vm2111_vm13, %v6735_v40, %v2114_v24 }
 0x32a   : > { %vm2142_vm10 = vc.u32 %v2140_v52, %v2136_v36  ;;  %v2152_v4 = vmul.u32 %v2150_v25, %v2126_v62  ;;  %v2536_v22 = vsel %vm2534_vm6, %v2521_v41, %v2535_v23  ;;  %v2539_v28 = vsel %vm2537_vm15, %v2538_v54, %v2529_v21 }
 0x32b   : > { %vm2544_vm11 = vcmp.lt.s32.totalorder %v6185_v9, 0  ;;  %v4609_v29 = vadd.s32 4294967294, %v2648_v53  ;;  %v2143_v55 = vsel %vm2142_vm10, 1, %v8659_v35  ;;  %v2540_v10 = vsel %vm2533_vm0, %v2536_v22, %v2539_v28 }
 0x32c   : > { %v2135_v33 = vshrl.u32 %v2131_v17, 16  ;;  %v2145_v19 = vadd.s32 %v2143_v55, %v2141_v59  ;;  %v2156_v11 = vshll.u32 %v2153_v14, 16  ;;  %v2541_v40 = vsel %vm2530_vm3, nan, %v2540_v10 }
 0x32d   : > { %vm4610_vm9 = vcmp.lt.s32.totalorder %v4609_v29, 0  ;;  %v2155_v62 = vmul.u32 %v2151_v12, %v2127_v46  ;;  %v2158_v27 = vshll.u32 %v2154_v56, 16  ;;  %3062 = vmatpush.msrb.mxu0 %v2541_v40  ;;  %v2137_v41 = vshrl.u32 %v2132_v20, 16 }
 0x32e   : > { %v2651_v47 = vsel %vm4610_vm9, 0, %v4609_v29  ;;  %v2146_v57 = vadd.s32 %v2145_v19, %v2135_v33  ;;  %vm2160_vm2 = vc.u32 %v2152_v4, %v2156_v11  ;;  %v2162_v37 = vadd.s32 %v2156_v11, %v2152_v4 }
 0x32f   : > { %v2652_v0 = vsub.s32 32, %v2651_v47  ;;  %v2656_v16 = vsub.s32 4294967266, %v2651_v47  ;;  %v2161_v31 = vsel %vm2160_vm2, 1, %v8659_v35  ;;  %v2653_v17 = vshll.u32 %v6795_v6, %v2651_v47 }
 0x330   : > { %v2666_v13 = vsub.s32 4, %v6777_v49  ;;  %v2163_v8 = vadd.s32 %v2161_v31, %v2155_v62  ;;  %vm2164_vm12 = vc.u32 %v2162_v37, %v2158_v27  ;;  %v6823_v46 = vadd.s32 %v2146_v57, %v2137_v41  ;;  %v8753_v62 = vld [vmem:[#allocation23_spill] sm:$0xff] }
 0x331   : > { %v2654_v5 = vshrl.u32 %v2636_v7, %v2652_v0  ;;  %v2657_v25 = vadd.s32 127, %v2656_v16  ;;  %v2165_v12 = vsel %vm2164_vm12, 1, %v8659_v35  ;;  %vm6828_vm13 = vcmp.le.f32.partialorder %v2542_v60, 0.7853982  ;;  %v8751_v7 = vld [vmem:[#allocation25_spill] sm:$0xff] }
 0x332   : > { %v2116_v20 = vsel %vm2110_vm5, %v2113_v39, %v2115_v30  ;;  %v2157_v6 = vshrl.u32 %v2153_v14, 16  ;;  %v2167_v24 = vadd.s32 %v2165_v12, %v2163_v8  ;;  %v6834_v54 = vadd.s32 %v2162_v37, %v2158_v27  ;;  %v8752_v14 = vld [vmem:[#allocation15_spill] sm:$0xff] }
 0x333   : > { %v2655_v61 = vor.u32 %v2654_v5, %v2653_v17  ;;  %v2658_v21 = vshll.u32 %v2657_v25, 23  ;;  %v2232_v52 = vand.u32 2147483647, %v8751_v7  ;;  %v2667_v18 = vsel %vm2544_vm11, %v2666_v13, %v6777_v49 }
 0x334   : > { %v2159_v36 = vshrl.u32 %v2154_v56, 16  ;;  %v2168_v60 = vadd.s32 %v2167_v24, %v2157_v6  ;;  %v2250_v51 = vshrl.u32 %v8661_v63, %v6303_v44  ;;  %vm2172_vm5 = vc.u32 %v6823_v46, %v6834_v54 }
 0x335   : > { %v2659_v23 = vor.u32 4788187, %v2658_v21  ;;  %v2239_v38 = vand.u32 8388607, %v2232_v52  ;;  %v2249_v53 = vshll.u32 %v8660_v50, %v8752_v14  ;;  %v2662_v59 = vcvt.s32.f32 %v2655_v61 }
 0x336   : > { %v2169_v39 = vadd.s32 %v2168_v60, %v2159_v36  ;;  %v2252_v49 = vshll.u32 %v8661_v63, %v8752_v14  ;;  %v2253_v56 = vshrl.u32 %v8662_v42, %v6303_v44  ;;  %v2255_v22 = vshll.u32 %v8662_v42, %v8752_v14 }
 0x337   : > { %v2660_v30 = vand.u32 2147483647, %v2659_v23  ;;  %v2240_v4 = vor.u32 8388608, %v2239_v38  ;;  %v2256_v28 = vshrl.u32 %v8663_v32, %v6303_v44  ;;  %v2669_v29 = vsel %vm6828_vm13, 0, %v2667_v18 }
 0x338   : > { %v2173_v55 = vadd.s32 1, %v2169_v39  ;;  %v6858_v10 = vor.u32 %v2250_v51, %v2249_v53  ;;  %v6860_v33 = vor.u32 %v2253_v56, %v2252_v49  ;;  %v2170_v11 = vmul.u32 %v6755_v1, %v2116_v20  ;;  %v8754_v20 = vld [vmem:[#allocation13_spill] sm:$0xff] }
 0x339   : > { %v2663_v19 = vmul.f32 %v2662_v59, %v2660_v30  ;;  %v2257_v40 = vor.u32 %v2256_v28, %v2255_v22  ;;  %vm2266_vm6 = vcmp.lt.s32.totalorder %v8742_v3, 3  ;;  %v1949_v27 = vshrl.u32 %v8691_v2, %v8753_v62 }
 0x33a   : > { %v2174_v47 = vsel %vm2172_vm5, %v2173_v55, %v2169_v39  ;;  %v2278_v57 = vsel %vm2266_vm6, %v6741_v26, %v6782_v58  ;;  %v6873_v37 = vshll.u32 %v2240_v4, 8  ;;  %v2686_v16 = vadd.s32 3, %v2669_v29 }
 0x33b   : > { %v2664_v0 = vxor.u32 2147483648, %v2663_v19  ;;  %v2175_v1 = vadd.s32 %v2174_v47, %v2170_v11  ;;  %vm2264_vm15 = vcmp.lt.s32.totalorder %v8742_v3, 1  ;;  %vm2265_vm0 = vcmp.lt.s32.totalorder %v8742_v3, 2 }
 0x33c   : > { %v2272_v41 = vsel %vm2264_vm15, %v6858_v10, %v6860_v33  ;;  %v2274_v31 = vsel %vm2266_vm6, %v2257_v40, %v6773_v34  ;;  %v2276_v26 = vsel %vm2264_vm15, %v6860_v33, %v2257_v40  ;;  %v6892_v8 = vand.u32 65535, %v6873_v37 }
 0x33d   : > { %v2665_v58 = vsel %vm2544_vm11, %v2664_v0, %v2663_v19  ;;  %v2176_v17 = vadd.s32 536870912, %v2175_v1  ;;  %v2279_v13 = vsel %vm2265_vm0, %v2276_v26, %v2278_v57  ;;  %v6900_v34 = vshrl.u32 %v6873_v37, 16 }
 0x33e   : > { %v6897_v5 = vsel %vm6828_vm13, %v6185_v9, %v2665_v58  ;;  %v2283_v25 = vand.u32 65535, %v2279_v13  ;;  %v2284_v12 = vshrl.u32 %v2279_v13, 16  ;;  %v1948_v6 = vshll.u32 %v8663_v32, %v8754_v20 }
 0x33f   : > { %v2670_v24 = vmul.f32 %v6897_v5, %v6897_v5  ;;  %v6906_v61 = vshrl.u32 %v2176_v17, 30  ;;  %v6910_v21 = vsel %vm2265_vm0, %v2272_v41, %v2274_v31  ;;  %v6914_v48 = vshll.u32 %v8691_v2, %v8754_v20 }
 0x340   : > { %v6918_v18 = vshrl.u32 %v8668_v45, %v8753_v62  ;;  %v2286_v36 = vmul.u32 %v2284_v12, %v6892_v8  ;;  %v6922_v60 = vmul.u32 %v2283_v25, %v6900_v34  ;;  %v6924_v51 = vor.u32 %v1949_v27, %v1948_v6 }
 0x341   : > { %v2671_v23 = vmul.f32 -0.001358992, %v2670_v24  ;;  %v2678_v38 = vmul.f32 -0.00019511016, %v2670_v24  ;;  %v2178_v14 = vshll.u32 %v6906_v61, 30  ;;  %v6927_v53 = vand.u32 3, %v2686_v16 }
 0x342   : > { %v2285_v59 = vmul.u32 %v2283_v25, %v6892_v8  ;;  %v2289_v39 = vshll.u32 %v2286_v36, 16  ;;  %v2306_v49 = vshrl.u32 %v6910_v21, 16  ;;  %v2269_v22 = vsel %vm2267_vm7, %v2257_v40, 2102212464 }
 0x343   : > { %v2672_v56 = vadd.f32 0.041655596, %v2671_v23  ;;  %v2679_v30 = vadd.f32 0.008332121, %v2678_v38  ;;  %v6931_v4 = vsub.s32 %v2175_v1, %v2178_v14  ;;  %v2288_v28 = vmul.u32 %v2284_v12, %v6900_v34 }
 0x344   : > { %v2291_v29 = vshll.u32 %v6922_v60, 16  ;;  %vm2293_vm3 = vc.u32 %v2285_v59, %v2289_v39  ;;  %v2295_v55 = vadd.s32 %v2289_v39, %v2285_v59  ;;  %v2305_v57 = vand.u32 65535, %v6910_v21 }
 0x345   : > { %v2673_v19 = vmul.f32 %v2672_v56, %v2670_v24  ;;  %v2680_v11 = vmul.f32 %v2679_v30, %v2670_v24  ;;  %vm2180_vm4 = vcmp.lt.s32.totalorder %v6931_v4, 0  ;;  %v2181_v27 = vsub.s32 0, %v6931_v4 }
 0x346   : > { %v2294_v47 = vsel %vm2293_vm3, 1, %v8659_v35  ;;  %vm2297_vm8 = vc.u32 %v2295_v55, %v2291_v29  ;;  %v6942_v0 = vmul.u32 %v2306_v49, %v6892_v8  ;;  %vm2689_vm7 = vcmp.eq.s32.totalorder %v6927_v53, 0 }
 0x347   : > { %v2674_v40 = vadd.f32 -0.4999988, %v2673_v19  ;;  %v2681_v16 = vadd.f32 -0.16666654, %v2680_v11  ;;  %v2182_v1 = vsel %vm2180_vm4, %v2181_v27, %v6931_v4  ;;  %v2296_v41 = vadd.s32 %v2294_v47, %v2288_v28 }
 0x348   : > { %vm2692_vm10 = vcmp.eq.s32.totalorder %v6927_v53, 2  ;;  %v2183_v31 = vclz %v2182_v1  ;;  %v2248_v26 = vshrl.u32 %v8660_v50, %v6303_v44  ;;  %v2298_v58 = vsel %vm2297_vm8, 1, %v8659_v35 }
 0x349   : > { %v2675_v17 = vmul.f32 %v2674_v40, %v2670_v24  ;;  %v2682_v13 = vmul.f32 %v2681_v16, %v2670_v24  ;;  %vm2688_vm11 = vcmp.lt.s32.totalorder %v6927_v53, 2  ;;  %v2171_v25 = vadd.s32 %v6834_v54, %v6823_v46 }
 0x34a   : > { %v2300_v12 = vadd.s32 %v2298_v58, %v2296_v41  ;;  %vm2685_vm9 = vweird.f32 %v6185_v9  ;;  %v4600_v6 = vadd.s32 4294967294, %v2183_v31  ;;  %v2268_v21 = vsel %vm2264_vm15, %v2248_v26, %v6858_v10 }
 0x34b   : > { %v2270_v44 = vsel %vm2266_vm6, %v6860_v33, %v2269_v22  ;;  %v2290_v23 = vshrl.u32 %v2286_v36, 16  ;;  %v2676_v38 = vadd.f32 1.0, %v2675_v17  ;;  %v2683_v24 = vadd.f32 1.0, %v2682_v13  ;;  %v8757_v13 = vld [vmem:[#allocation26_spill] sm:$0xff] }
 0x34c   : > { %v2309_v14 = vmul.u32 %v2305_v57, %v6900_v34  ;;  %v2311_v59 = vshll.u32 %v6942_v0, 16  ;;  %vm2079_vm2 = vcmp.lt.s32.totalorder %v6149_v15, 0  ;;  %vm4601_vm12 = vcmp.lt.s32.totalorder %v4600_v6, 0 }
 0x34d   : > { %v2201_v46 = vsub.s32 4, %v6906_v61  ;;  %v2292_v54 = vshrl.u32 %v6922_v60, 16  ;;  %v2307_v10 = vmul.u32 %v2305_v57, %v6892_v8  ;;  %v2684_v39 = vmul.f32 %v2683_v24, %v6897_v5 }
 0x34e   : > { %v2693_v56 = vxor.u32 2147483648, %v2676_v38  ;;  %v2186_v33 = vsel %vm4601_vm12, 0, %v4600_v6  ;;  %v2301_v36 = vadd.s32 %v2300_v12, %v2290_v23  ;;  %v2310_v28 = vmul.u32 %v2306_v49, %v6900_v34  ;;  %v8758_v6 = vld [vmem:[#allocation27_spill] sm:$0xff] }
 0x34f   : > { %v2187_v30 = vsub.s32 32, %v2186_v33  ;;  %v2191_v22 = vsub.s32 4294967266, %v2186_v33  ;;  %vm2315_vm13 = vc.u32 %v2307_v10, %v2311_v59  ;;  %v2690_v29 = vxor.u32 2147483648, %v2684_v39 }
 0x350   : > { %v2313_v55 = vshll.u32 %v2309_v14, 16  ;;  %v2316_v19 = vsel %vm2315_vm13, 1, %v8659_v35  ;;  %v2317_v11 = vadd.s32 %v2311_v59, %v2307_v10  ;;  %v2188_v27 = vshll.u32 %v6931_v4, %v2186_v33 }
 0x351   : > { %v2189_v60 = vshrl.u32 %v2171_v25, %v2187_v30  ;;  %v2192_v47 = vadd.s32 127, %v2191_v22  ;;  %v2318_v8 = vadd.s32 %v2316_v19, %v2310_v28  ;;  %v2691_v5 = vsel %vm2689_vm7, %v2676_v38, %v2690_v29  ;;  %v8760_v29 = vld [vmem:[#allocation24_spill] sm:$0xff] }
 0x352   : > { %v2694_v57 = vsel %vm2692_vm10, %v2693_v56, %v2684_v39  ;;  %v6974_v40 = vadd.s32 %v2301_v36, %v2292_v54  ;;  %vm2319_vm5 = vc.u32 %v2317_v11, %v2313_v55  ;;  %vm6983_vm6 = vcmp.le.f32.partialorder %v2077_v43, 0.7853982 }
 0x353   : > { %v2695_v34 = vsel %vm2688_vm11, %v2691_v5, %v2694_v57  ;;  %v2190_v49 = vor.u32 %v2189_v60, %v2188_v27  ;;  %v2193_v16 = vshll.u32 %v2192_v47, 23  ;;  %v2320_v1 = vsel %vm2319_vm5, 1, %v8659_v35  ;;  %v8762_v27 = vld [vmem:[#allocation14_spill] sm:$0xff] }
 0x354   : > { %v2696_v4 = vsel %vm2685_vm9, nan, %v2695_v34  ;;  %v2312_v31 = vshrl.u32 %v6942_v0, 16  ;;  %v2322_v26 = vadd.s32 %v2320_v1, %v2318_v8  ;;  %v2271_v53 = vsel %vm2265_vm0, %v2268_v21, %v2270_v44  ;;  %v8759_v44 = vld [vmem:[#allocation17_spill] sm:$0xff] }
 0x355   : > { %3091 = vmatpush.msrb.mxu1 %v2696_v4  ;;  %v2194_v58 = vor.u32 4788187, %v2193_v16  ;;  %v6990_v17 = vadd.s32 %v2317_v11, %v2313_v55  ;;  %v1767_v25 = vand.u32 2147483647, %v8757_v13  ;;  %v2202_v9 = vsel %vm2079_vm2, %v2201_v46, %v6906_v61  ;;  %v8761_v11 = vld [vmem:[#allocation16_spill] sm:$0xff]  ;;  %v8763_v16 = vld [vmem:[#allocation22_spill] sm:$0xff] }
 0x356   : > { %v2314_v43 = vshrl.u32 %v2309_v14, 16  ;;  %v2323_v12 = vadd.s32 %v2322_v26, %v2312_v31  ;;  %v1785_v23 = vshrl.u32 %v8661_v63, %v8758_v6  ;;  %v2197_v38 = vcvt.s32.f32 %v2190_v49 }
 0x357   : > { %v2195_v0 = vand.u32 2147483647, %v2194_v58  ;;  %vm2327_vm15 = vc.u32 %v6974_v40, %v6990_v17  ;;  %v1774_v3 = vand.u32 8388607, %v1767_v25  ;;  %v1784_v24 = vshll.u32 %v8660_v50, %v8759_v44 }
 0x358   : > { %v2324_v21 = vadd.s32 %v2323_v12, %v2314_v43  ;;  %v1787_v61 = vshll.u32 %v8661_v63, %v8759_v44  ;;  %v1788_v14 = vshrl.u32 %v8662_v42, %v8758_v6  ;;  %v1790_v54 = vshll.u32 %v8662_v42, %v8759_v44 }
 0x359   : > { %v2198_v59 = vmul.f32 %v2197_v38, %v2195_v0  ;;  %v1775_v46 = vor.u32 8388608, %v1774_v3  ;;  %v1791_v10 = vshrl.u32 %v8663_v32, %v8758_v6  ;;  %v2204_v39 = vsel %vm6983_vm6, 0, %v2202_v9 }
 0x35a   : > { %v2328_v56 = vadd.s32 1, %v2324_v21  ;;  %v7014_v33 = vor.u32 %v1785_v23, %v1784_v24  ;;  %v7016_v36 = vor.u32 %v1788_v14, %v1787_v61  ;;  %v2325_v22 = vmul.u32 %v6873_v37, %v2271_v53  ;;  %v8764_v53 = vld [vmem:[#allocation12_spill] sm:$0xff] }
 0x35b   : > { %v2199_v30 = vxor.u32 2147483648, %v2198_v59  ;;  %v7019_v28 = vor.u32 %v1791_v10, %v1790_v54  ;;  %vm1801_vm0 = vcmp.lt.s32.totalorder %v8760_v29, 3  ;;  %v1953_v55 = vor.u32 %v6918_v18, %v6914_v48 }
 0x35c   : > { %v2329_v19 = vsel %vm2327_vm15, %v2328_v56, %v2324_v21  ;;  %v1813_v60 = vsel %vm1801_vm0, %v8762_v27, %v8761_v11  ;;  %v7031_v47 = vshll.u32 %v1775_v46, 8  ;;  %v2221_v8 = vadd.s32 3, %v2204_v39 }
 0x35d   : > { %v2200_v37 = vsel %vm2079_vm2, %v2199_v30, %v2198_v59  ;;  %v2330_v5 = vadd.s32 %v2329_v19, %v2325_v22  ;;  %vm1799_vm3 = vcmp.lt.s32.totalorder %v8760_v29, 1  ;;  %vm1800_vm4 = vcmp.lt.s32.totalorder %v8760_v29, 2 }
 0x35e   : > { %v2203_v48 = vsel %vm6983_vm6, %v6149_v15, %v2200_v37  ;;  %v1807_v18 = vsel %vm1799_vm3, %v7014_v33, %v7016_v36  ;;  %v1811_v57 = vsel %vm1799_vm3, %v7016_v36, %v7019_v28  ;;  %v1809_v1 = vsel %vm1801_vm0, %v7019_v28, %v8763_v16 }
 0x35f   : > { %v2205_v34 = vmul.f32 %v2203_v48, %v2203_v48  ;;  %v2331_v49 = vadd.s32 536870912, %v2330_v5  ;;  %v1814_v4 = vsel %vm1800_vm4, %v1811_v57, %v1813_v60  ;;  %v1816_v41 = vand.u32 65535, %v7031_v47 }
 0x360   : > { %v7056_v31 = vshrl.u32 %v7031_v47, 16  ;;  %v1818_v26 = vand.u32 65535, %v1814_v4  ;;  %v1819_v58 = vshrl.u32 %v1814_v4, 16  ;;  %vm1957_vm8 = vcmp.lt.s32.totalorder %v8764_v53, 4 }
 0x361   : > { %v2206_v9 = vmul.f32 -0.001358992, %v2205_v34  ;;  %v2213_v43 = vmul.f32 -0.00019511016, %v2205_v34  ;;  %v7059_v12 = vshrl.u32 %v2331_v49, 30  ;;  %v1810_v24 = vsel %vm1800_vm4, %v1807_v18, %v1809_v1 }
 0x362   : > { %v7064_v23 = vsel %vm1957_vm8, %v6924_v51, 920167782  ;;  %v1821_v0 = vmul.u32 %v1819_v58, %v1816_v41  ;;  %v7067_v38 = vmul.u32 %v1818_v26, %v7056_v31  ;;  %v7074_v61 = vsel %vm1957_vm8, %v1953_v55, 1326507024 }
 0x363   : > { %v2207_v3 = vadd.f32 0.041655596, %v2206_v9  ;;  %v2214_v21 = vadd.f32 0.008332121, %v2213_v43  ;;  %v2333_v44 = vshll.u32 %v7059_v12, 30  ;;  %v2222_v14 = vand.u32 3, %v2221_v8 }
 0x364   : > { %v1820_v59 = vmul.u32 %v1818_v26, %v1816_v41  ;;  %v1824_v46 = vshll.u32 %v1821_v0, 16  ;;  %v1823_v56 = vmul.u32 %v1819_v58, %v7056_v31  ;;  %v1826_v30 = vshll.u32 %v7067_v38, 16 }
 0x365   : > { %v2208_v54 = vmul.f32 %v2207_v3, %v2205_v34  ;;  %v2215_v10 = vmul.f32 %v2214_v21, %v2205_v34  ;;  %v2334_v39 = vsub.s32 %v2330_v5, %v2333_v44  ;;  %v1841_v19 = vshrl.u32 %v1810_v24, 16 }
 0x366   : > { %vm1828_vm7 = vc.u32 %v1820_v59, %v1824_v46  ;;  %v1830_v22 = vadd.s32 %v1824_v46, %v1820_v59  ;;  %vm2224_vm11 = vcmp.eq.s32.totalorder %v2222_v14, 0  ;;  %v1840_v37 = vand.u32 65535, %v1810_v24 }
 0x367   : > { %v2209_v11 = vadd.f32 -0.4999988, %v2208_v54  ;;  %v2216_v27 = vadd.f32 -0.16666654, %v2215_v10  ;;  %vm2335_vm10 = vcmp.lt.s32.totalorder %v2334_v39, 0  ;;  %v2336_v60 = vsub.s32 0, %v2334_v39 }
 0x368   : > { %v1829_v55 = vsel %vm1828_vm7, 1, %v8659_v35  ;;  %vm1832_vm9 = vc.u32 %v1830_v22, %v1826_v30  ;;  %vm2223_vm2 = vcmp.lt.s32.totalorder %v2222_v14, 2  ;;  %vm2220_vm12 = vweird.f32 %v6149_v15 }
 0x369   : > { %v2210_v8 = vmul.f32 %v2209_v11, %v2205_v34  ;;  %v2217_v18 = vmul.f32 %v2216_v27, %v2205_v34  ;;  %v2337_v5 = vsel %vm2335_vm10, %v2336_v60, %v2334_v39  ;;  %v1831_v57 = vadd.s32 %v1829_v55, %v1823_v56 }
 0x36a   : > { %v2338_v49 = vclz %v2337_v5  ;;  %v1783_v16 = vshrl.u32 %v8660_v50, %v8758_v6  ;;  %v1833_v1 = vsel %vm1832_vm9, 1, %v8659_v35  ;;  %v1843_v4 = vmul.u32 %v1841_v19, %v1816_v41  ;;  %v8765_v5 = vld [vmem:[#allocation10_spill] sm:$0xff] }
 0x36b   : > { %v2211_v26 = vadd.f32 1.0, %v2210_v8  ;;  %v2218_v58 = vadd.f32 1.0, %v2217_v18  ;;  %v1804_v9 = vsel %vm1802_vm14, %v7019_v28, 2102212464  ;;  %v1835_v43 = vadd.s32 %v1833_v1, %v1831_v57 }
 0x36c   : > { %vm2227_vm13 = vcmp.eq.s32.totalorder %v2222_v14, 2  ;;  %v2326_v34 = vadd.s32 %v6990_v17, %v6974_v40  ;;  %v4603_v3 = vadd.s32 4294967294, %v2338_v49  ;;  %v1844_v21 = vmul.u32 %v1840_v37, %v7056_v31 }
 0x36d   : > { %v2219_v44 = vmul.f32 %v2218_v58, %v2203_v48  ;;  %v2228_v24 = vxor.u32 2147483648, %v2211_v26  ;;  %v1803_v6 = vsel %vm1799_vm3, %v1783_v16, %v7014_v33  ;;  %v1825_v59 = vshrl.u32 %v1821_v0, 16 }
 0x36e   : > { %vm4604_vm5 = vcmp.lt.s32.totalorder %v4603_v3, 0  ;;  %v1805_v28 = vsel %vm1801_vm0, %v7016_v36, %v1804_v9  ;;  %v1842_v46 = vmul.u32 %v1840_v37, %v1816_v41  ;;  %v1846_v54 = vshll.u32 %v1843_v4, 16 }
 0x36f   : > { %v2225_v10 = vxor.u32 2147483648, %v2219_v44  ;;  %v2341_v56 = vsel %vm4604_vm5, 0, %v4603_v3  ;;  %v1836_v40 = vadd.s32 %v1835_v43, %v1825_v59  ;;  %v1845_v17 = vmul.u32 %v1841_v19, %v7056_v31 }
 0x370   : > { %v2229_v48 = vsel %vm2227_vm13, %v2228_v24, %v2219_v44  ;;  %v2342_v30 = vsub.s32 32, %v2341_v56  ;;  %v2346_v22 = vsub.s32 4294967266, %v2341_v56  ;;  %v1848_v11 = vshll.u32 %v1844_v21, 16 }
 0x371   : > { %v2226_v33 = vsel %vm2224_vm11, %v2211_v26, %v2225_v10  ;;  %v2343_v0 = vshll.u32 %v2334_v39, %v2341_v56  ;;  %vm1850_vm14 = vc.u32 %v1842_v46, %v1846_v54  ;;  %v1852_v27 = vadd.s32 %v1846_v54, %v1842_v46 }
 0x372   : > { %v2230_v60 = vsel %vm2223_vm2, %v2226_v33, %v2229_v48  ;;  %v2344_v36 = vshrl.u32 %v2326_v34, %v2342_v30  ;;  %v2347_v41 = vadd.s32 127, %v2346_v22  ;;  %v1851_v55 = vsel %vm1850_vm14, 1, %v8659_v35 }
 0x373   : > { %v2231_v37 = vsel %vm2220_vm12, nan, %v2230_v60  ;;  %v1827_v31 = vshrl.u32 %v7067_v38, 16  ;;  %v1853_v19 = vadd.s32 %v1851_v55, %v1845_v17  ;;  %vm1854_vm6 = vc.u32 %v1852_v27, %v1848_v11 }
 0x374   : > { %3063 = vmatpush.msrb.mxu0 %v2231_v37  ;;  %v2345_v8 = vor.u32 %v2344_v36, %v2343_v0  ;;  %v2348_v18 = vshll.u32 %v2347_v41, 23  ;;  %v1855_v39 = vsel %vm1854_vm6, 1, %v8659_v35  ;;  %v1922_v57 = vand.u32 2147483647, %v8765_v5 }
 0x375   : > { %vm2234_vm15 = vcmp.lt.s32.totalorder %v8751_v7, 0  ;;  %v1806_v14 = vsel %vm1800_vm4, %v1803_v6, %v1805_v28  ;;  %v7108_v49 = vadd.s32 %v1836_v40, %v1827_v31  ;;  %v1847_v15 = vshrl.u32 %v1843_v4, 16 }
 0x376   : > { %v1857_v16 = vadd.s32 %v1855_v39, %v1853_v19  ;;  %v2349_v1 = vor.u32 4788187, %v2348_v18  ;;  %v1849_v38 = vshrl.u32 %v1844_v21, 16  ;;  %v7110_v26 = vadd.s32 %v1852_v27, %v1848_v11 }
 0x377   : > { %v1929_v58 = vand.u32 8388607, %v1922_v57  ;;  %v2352_v9 = vcvt.s32.f32 %v2345_v8  ;;  %v1939_v34 = vshll.u32 %v8660_v50, %v8754_v20  ;;  %v1940_v29 = vshrl.u32 %v8661_v63, %v8753_v62 }
 0x378   : > { %v1858_v43 = vadd.s32 %v1857_v16, %v1847_v15  ;;  %v2350_v3 = vand.u32 2147483647, %v2349_v1  ;;  %v1942_v4 = vshll.u32 %v8661_v63, %v8754_v20  ;;  %v1943_v21 = vshrl.u32 %v8662_v42, %v8753_v62 }
 0x379   : > { %v1930_v44 = vor.u32 8388608, %v1929_v58  ;;  %v7122_v6 = vor.u32 %v1940_v29, %v1939_v34  ;;  %v1945_v59 = vshll.u32 %v8662_v42, %v8754_v20  ;;  %v1946_v28 = vshrl.u32 %v8663_v32, %v8753_v62 }
 0x37a   : > { %v1859_v24 = vadd.s32 %v1858_v43, %v1849_v38  ;;  %v2353_v46 = vmul.f32 %v2352_v9, %v2350_v3  ;;  %v2356_v54 = vsub.s32 4, %v7059_v12  ;;  %vm1862_vm0 = vc.u32 %v7108_v49, %v7110_v26 }
 0x37b   : > { %v7131_v10 = vor.u32 %v1943_v21, %v1942_v4  ;;  %v7133_v40 = vor.u32 %v1946_v28, %v1945_v59  ;;  %vm1954_vm3 = vcmp.lt.s32.totalorder %v8764_v53, 1  ;;  %vm1956_vm4 = vcmp.lt.s32.totalorder %v8764_v53, 3 }
 0x37c   : > { %v1863_v56 = vadd.s32 1, %v1859_v24  ;;  %v2354_v17 = vxor.u32 2147483648, %v2353_v46  ;;  %v1860_v20 = vmul.u32 %v7031_v47, %v1806_v14  ;;  %v1968_v30 = vsel %vm1956_vm4, %v6924_v51, %v7074_v61 }
 0x37d   : > { %v1962_v48 = vsel %vm1954_vm3, %v7122_v6, %v7131_v10  ;;  %v1964_v11 = vsel %vm1956_vm4, %v7133_v40, %v7064_v23  ;;  %v1966_v47 = vsel %vm1954_vm3, %v7131_v10, %v7133_v40  ;;  %v7154_v33 = vshll.u32 %v1930_v44, 8 }
 0x37e   : > { %v1864_v22 = vsel %vm1862_vm0, %v1863_v56, %v1859_v24  ;;  %vm7158_vm7 = vcmp.le.f32.partialorder %v2232_v52, 0.7853982  ;;  %v2355_v51 = vsel %vm2234_vm15, %v2354_v17, %v2353_v46  ;;  %vm1955_vm10 = vcmp.lt.s32.totalorder %v8764_v53, 2 }
 0x37f   : > { %v1865_v61 = vadd.s32 %v1864_v22, %v1860_v20  ;;  %v2357_v23 = vsel %vm2234_vm15, %v2356_v54, %v7059_v12  ;;  %v2358_v27 = vsel %vm7158_vm7, %v8751_v7, %v2355_v51  ;;  %v1969_v52 = vsel %vm1955_vm10, %v1966_v47, %v1968_v30 }
 0x380   : > { %v2360_v60 = vmul.f32 %v2358_v27, %v2358_v27  ;;  %v1965_v41 = vsel %vm1955_vm10, %v1962_v48, %v1964_v11  ;;  %v1973_v55 = vand.u32 65535, %v1969_v52  ;;  %v1971_v37 = vand.u32 65535, %v7154_v33 }
 0x381   : > { %v1866_v36 = vadd.s32 536870912, %v1865_v61  ;;  %v1972_v31 = vshrl.u32 %v7154_v33, 16  ;;  %v1974_v19 = vshrl.u32 %v1969_v52, 16  ;;  %v2359_v12 = vsel %vm7158_vm7, 0, %v2357_v23 }
 0x382   : > { %v2361_v8 = vmul.f32 -0.001358992, %v2360_v60  ;;  %v2368_v18 = vmul.f32 -0.00019511016, %v2360_v60  ;;  %v1996_v16 = vshrl.u32 %v1965_v41, 16  ;;  %v2376_v9 = vadd.s32 3, %v2359_v12 }
 0x383   : > { %v7179_v39 = vshrl.u32 %v1866_v36, 30  ;;  %v1976_v14 = vmul.u32 %v1974_v19, %v1971_v37  ;;  %v7181_v15 = vmul.u32 %v1973_v55, %v1972_v31  ;;  %v1975_v43 = vmul.u32 %v1973_v55, %v1971_v37 }
 0x384   : > { %v2362_v1 = vadd.f32 0.041655596, %v2361_v8  ;;  %v2369_v38 = vadd.f32 0.008332121, %v2368_v18  ;;  %v1978_v4 = vmul.u32 %v1974_v19, %v1972_v31  ;;  %v7185_v59 = vmul.u32 %v1996_v16, %v1971_v37 }
 0x385   : > { %v1868_v58 = vshll.u32 %v7179_v39, 30  ;;  %v1979_v34 = vshll.u32 %v1976_v14, 16  ;;  %v1981_v21 = vshll.u32 %v7181_v15, 16  ;;  %v2377_v56 = vand.u32 3, %v2376_v9 }
 0x386   : > { %v2363_v29 = vmul.f32 %v2362_v1, %v2360_v60  ;;  %v2370_v3 = vmul.f32 %v2369_v38, %v2360_v60  ;;  %v1995_v20 = vand.u32 65535, %v1965_v41  ;;  %vm2375_vm12 = vweird.f32 %v8751_v7 }
 0x387   : > { %v1869_v44 = vsub.s32 %v1865_v61, %v1868_v58  ;;  %vm1983_vm11 = vc.u32 %v1975_v43, %v1979_v34  ;;  %v1985_v24 = vadd.s32 %v1979_v34, %v1975_v43  ;;  %v2001_v52 = vshll.u32 %v7185_v59, 16 }
 0x388   : > { %v2364_v28 = vadd.f32 -0.4999988, %v2363_v29  ;;  %v2371_v46 = vadd.f32 -0.16666654, %v2370_v3  ;;  %v1984_v17 = vsel %vm1983_vm11, 1, %v8659_v35  ;;  %vm2378_vm13 = vcmp.lt.s32.totalorder %v2377_v56, 2 }
 0x389   : > { %vm1870_vm9 = vcmp.lt.s32.totalorder %v1869_v44, 0  ;;  %v1871_v54 = vsub.s32 0, %v1869_v44  ;;  %vm1987_vm2 = vc.u32 %v1985_v24, %v1981_v21  ;;  %v1986_v11 = vadd.s32 %v1984_v17, %v1978_v4 }
 0x38a   : > { %v2365_v48 = vmul.f32 %v2364_v28, %v2360_v60  ;;  %v2372_v30 = vmul.f32 %v2371_v46, %v2360_v60  ;;  %v1988_v0 = vsel %vm1987_vm2, 1, %v8659_v35  ;;  %v1997_v55 = vmul.u32 %v1995_v20, %v1971_v37 }
 0x38b   : > { %v1872_v22 = vsel %vm1870_vm9, %v1871_v54, %v1869_v44  ;;  %v1990_v23 = vadd.s32 %v1988_v0, %v1986_v11  ;;  %v1999_v19 = vmul.u32 %v1995_v20, %v1972_v31  ;;  %vm2379_vm5 = vcmp.eq.s32.totalorder %v2377_v56, 0 }
 0x38c   : > { %v1873_v47 = vclz %v1872_v22  ;;  %v2366_v51 = vadd.f32 1.0, %v2365_v48  ;;  %v2373_v61 = vadd.f32 1.0, %v2372_v30  ;;  %v1980_v60 = vshrl.u32 %v1976_v14, 16 }
 0x38d   : > { %vm2382_vm14 = vcmp.eq.s32.totalorder %v2377_v56, 2  ;;  %v1861_v8 = vadd.s32 %v7110_v26, %v7108_v49  ;;  %vm2005_vm15 = vc.u32 %v1997_v55, %v2001_v52  ;;  %v2000_v58 = vmul.u32 %v1996_v16, %v1972_v31 }
 0x38e   : > { %v4594_v36 = vadd.s32 4294967294, %v1873_v47  ;;  %v2374_v12 = vmul.f32 %v2373_v61, %v2358_v27  ;;  %v2383_v41 = vxor.u32 2147483648, %v2366_v51  ;;  %v1991_v38 = vadd.s32 %v1990_v23, %v1980_v60 }
 0x38f   : > { %v2003_v34 = vshll.u32 %v1999_v19, 16  ;;  %v2006_v37 = vsel %vm2005_vm15, 1, %v8659_v35  ;;  %v2007_v3 = vadd.s32 %v2001_v52, %v1997_v55  ;;  %v1938_v31 = vshrl.u32 %v8660_v50, %v8753_v62 }
 0x390   : > { %vm4595_vm6 = vcmp.lt.s32.totalorder %v4594_v36, 0  ;;  %v2380_v18 = vxor.u32 2147483648, %v2374_v12  ;;  %v2384_v27 = vsel %vm2382_vm14, %v2383_v41, %v2374_v12  ;;  %v2008_v4 = vadd.s32 %v2006_v37, %v2000_v58 }
 0x391   : > { %v1876_v1 = vsel %vm4595_vm6, 0, %v4594_v36  ;;  %v1959_v16 = vsel %vm1957_vm8, %v7133_v40, 2102212464  ;;  %vm2009_vm0 = vc.u32 %v2007_v3, %v2003_v34  ;;  %v1982_v54 = vshrl.u32 %v7181_v15, 16 }
 0x392   : > { %v1877_v9 = vsub.s32 32, %v1876_v1  ;;  %v1881_v43 = vsub.s32 4294967266, %v1876_v1  ;;  %v2381_v29 = vsel %vm2379_vm5, %v2366_v51, %v2380_v18  ;;  %v1878_v21 = vshll.u32 %v1869_v44, %v1876_v1 }
 0x393   : > { %v2385_v14 = vsel %vm2378_vm13, %v2381_v29, %v2384_v27  ;;  %v2010_v44 = vsel %vm2009_vm0, 1, %v8659_v35  ;;  %v2002_v56 = vshrl.u32 %v7185_v59, 16  ;;  %v1958_v62 = vsel %vm1954_vm3, %v1938_v31, %v7122_v6 }
 0x394   : > { %v1879_v24 = vshrl.u32 %v1861_v8, %v1877_v9  ;;  %v1882_v49 = vadd.s32 127, %v1881_v43  ;;  %v2386_v26 = vsel %vm2375_vm12, nan, %v2385_v14  ;;  %v2012_v17 = vadd.s32 %v2010_v44, %v2008_v4 }
 0x395   : > { %3092 = vmatpush.msrb.mxu1 %v2386_v26  ;;  %v1960_v40 = vsel %vm1956_vm4, %v7131_v10, %v1959_v16  ;;  %v1992_v20 = vadd.s32 %v1991_v38, %v1982_v54  ;;  %v2004_v48 = vshrl.u32 %v1999_v19, 16  ;;  %v2011_v15 = vadd.s32 %v2007_v3, %v2003_v34 }
 0x396   : > { %v1880_v28 = vor.u32 %v1879_v24, %v1878_v21  ;;  %v1883_v46 = vshll.u32 %v1882_v49, 23  ;;  %v2013_v30 = vadd.s32 %v2012_v17, %v2002_v56  ;;  %v1961_v47 = vsel %vm1955_vm10, %v1958_v62, %v1960_v40 }
 0x397   : > { %vm2017_vm8 = vc.u32 %v1992_v20, %v2011_v15  ;;  %v2015_v6 = vmul.u32 %v7154_v33, %v1961_v47  ;;  %vm1769_vm3 = vcmp.lt.s32.totalorder %v8757_v13, 0  ;;  %v1891_v10 = vsub.s32 4, %v7179_v39 }
 0x398   : > { %v1884_v7 = vor.u32 4788187, %v1883_v46  ;;  %v1887_v11 = vcvt.s32.f32 %v1880_v28  ;;  %v2014_v59 = vadd.s32 %v2013_v30, %v2004_v48  ;;  %vm7218_vm4 = vcmp.le.f32.partialorder %v1767_v25, 0.7853982 }
 0x399   : > { %v1892_v33 = vsel %vm1769_vm3, %v1891_v10, %v7179_v39  ;;  %v2016_v54 = vadd.s32 %v2011_v15, %v1992_v20  ;;  %vm1910_vm2 = vweird.f32 %v8757_v13  ;;  %vm1924_vm13 = vcmp.lt.s32.totalorder %v8765_v5, 0 }
 0x39a   : > { %v1885_v22 = vand.u32 2147483647, %v1884_v7  ;;  %v2018_v51 = vadd.s32 1, %v2014_v59  ;;  %v1894_v18 = vsel %vm7218_vm4, 0, %v1892_v33  ;;  %vm7239_vm5 = vcmp.le.f32.partialorder %v1922_v57, 0.7853982 }
 0x39b   : > { %v1911_v34 = vadd.s32 3, %v1894_v18  ;;  %vm2065_vm0 = vweird.f32 %v8765_v5 }
 0x39c   : > { %v1888_v0 = vmul.f32 %v1887_v11, %v1885_v22  ;;  %v2019_v23 = vsel %vm2017_vm8, %v2018_v51, %v2014_v59  ;;  %v4617_v59 = vld [vmem:[%s8477_s3 + $0x20] sm:$0xff]  ;;  %v4618_v51 = vld [vmem:[%s8477_s3 + $0x28] sm:$0xff] }
 0x39d   : > { %v2020_v36 = vadd.s32 %v2019_v23, %v2015_v6  ;;  %v1912_v49 = vand.u32 3, %v1911_v34 }
 0x39e   : > { %v1889_v61 = vxor.u32 2147483648, %v1888_v0 }
 0x39f   : > { %v2021_v12 = vadd.s32 536870912, %v2020_v36  ;;  %vm1914_vm11 = vcmp.eq.s32.totalorder %v1912_v49, 0  ;;  %vm1917_vm9 = vcmp.eq.s32.totalorder %v1912_v49, 2  ;;  %vm1913_vm12 = vcmp.lt.s32.totalorder %v1912_v49, 2 }
 0x3a0   : > { %v1890_v53 = vsel %vm1769_vm3, %v1889_v61, %v1888_v0 }
 0x3a1   : > { %v1893_v55 = vsel %vm7218_vm4, %v8757_v13, %v1890_v53  ;;  %v2022_v8 = vshrl.u32 %v2021_v12, 30  ;;  %v4619_v12 = vld [vmem:[%s8477_s3 + $0x30] sm:$0xff] }
 0x3a2   : > { %v1895_v19 = vmul.f32 %v1893_v55, %v1893_v55 }
 0x3a3   : > { %v2023_v38 = vshll.u32 %v2022_v8, 30  ;;  %v2046_v23 = vsub.s32 4, %v2022_v8 }
 0x3a4   : > { %v1896_v41 = vmul.f32 -0.001358992, %v1895_v19  ;;  %v1903_v60 = vmul.f32 -0.00019511016, %v1895_v19 }
 0x3a5   : > { %v2024_v43 = vsub.s32 %v2020_v36, %v2023_v38 }
 0x3a6   : > { %v1897_v25 = vadd.f32 0.041655596, %v1896_v41  ;;  %v1904_v1 = vadd.f32 0.008332121, %v1903_v60 }
 0x3a7   : > { %vm2025_vm7 = vcmp.lt.s32.totalorder %v2024_v43, 0  ;;  %v2026_v27 = vsub.s32 0, %v2024_v43 }
 0x3a8   : > { %v1898_v58 = vmul.f32 %v1897_v25, %v1895_v19  ;;  %v1905_v9 = vmul.f32 %v1904_v1, %v1895_v19 }
 0x3a9   : > { %v2027_v39 = vsel %vm2025_vm7, %v2026_v27, %v2024_v43 }
 0x3aa   : > { %v1899_v37 = vadd.f32 -0.4999988, %v1898_v58  ;;  %v1906_v29 = vadd.f32 -0.16666654, %v1905_v9  ;;  %v2028_v14 = vclz %v2027_v39 }
 0x3ac   : > { %v1900_v3 = vmul.f32 %v1899_v37, %v1895_v19  ;;  %v1907_v4 = vmul.f32 %v1906_v29, %v1895_v19  ;;  %v4597_v26 = vadd.s32 4294967294, %v2028_v14  ;;  %v2047_v19 = vsel %vm1924_vm13, %v2046_v23, %v2022_v8  ;;  %v4620_v8 = vld [vmem:[%s8477_s3 + $0x38] sm:$0xff] }
 0x3ad   : > { %v2049_v41 = vsel %vm7239_vm5, 0, %v2047_v19 }
 0x3ae   : > { %v1901_v21 = vadd.f32 1.0, %v1900_v3  ;;  %v1908_v24 = vadd.f32 1.0, %v1907_v4  ;;  %vm4598_vm10 = vcmp.lt.s32.totalorder %v4597_v26, 0  ;;  %v2066_v38 = vadd.s32 3, %v2049_v41 }
 0x3af   : > { %v2031_v46 = vsel %vm4598_vm10, 0, %v4597_v26 }
 0x3b0   : > { %v1909_v31 = vmul.f32 %v1908_v24, %v1893_v55  ;;  %v1918_v16 = vxor.u32 2147483648, %v1901_v21  ;;  %v2032_v44 = vsub.s32 32, %v2031_v46  ;;  %v2036_v56 = vsub.s32 4294967266, %v2031_v46  ;;  %v7262_v24 = vpop.permute.xlu2 %3034 }
 0x3b1   : > { %v2033_v40 = vshll.u32 %v2024_v43, %v2031_v46  ;;  %v2067_v37 = vand.u32 3, %v2066_v38 }
 0x3b2   : > { %v1915_v28 = vxor.u32 2147483648, %v1909_v31  ;;  %v1919_v7 = vsel %vm1917_vm9, %v1918_v16, %v1909_v31  ;;  %v2034_v48 = vshrl.u32 %v2016_v54, %v2032_v44  ;;  %v2037_v30 = vadd.s32 127, %v2036_v56  ;;  %v3025_v54 = vpop.permute.xlu1 %3024 }
 0x3b3   : > { %vm2069_vm14 = vcmp.eq.s32.totalorder %v2067_v37, 0  ;;  %vm2072_vm6 = vcmp.eq.s32.totalorder %v2067_v37, 2  ;;  %vm2068_vm15 = vcmp.lt.s32.totalorder %v2067_v37, 2 }
 0x3b4   : > { %v1916_v17 = vsel %vm1914_vm11, %v1901_v21, %v1915_v28  ;;  %v2035_v11 = vor.u32 %v2034_v48, %v2033_v40  ;;  %v2038_v47 = vshll.u32 %v2037_v30, 23 }
 0x3b5   : > { %v1920_v62 = vsel %vm1913_vm12, %v1916_v17, %v1919_v7 }
 0x3b6   : > { %v1921_v22 = vsel %vm1910_vm2, nan, %v1920_v62  ;;  %v2039_v20 = vor.u32 4788187, %v2038_v47  ;;  %v2042_v13 = vcvt.s32.f32 %v2035_v11 }
 0x3b7   : > { %3064 = vmatpush.msrb.mxu0 %v1921_v22 }
 0x3b8   : > { %4625 = vmatmul.msk.f32.vlgmr.msrb.gmra.mxu0 %vm8588_vm1, %v4617_v59  ;;  %v2040_v15 = vand.u32 2147483647, %v2039_v20  ;;  %v3020_v26 = vpop.permute.xlu2 %3019 }
 0x3ba   : > { %v2043_v0 = vmul.f32 %v2042_v13, %v2040_v15 }
 0x3bc   : > { %v2044_v61 = vxor.u32 2147483648, %v2043_v0 }
 0x3be   : > { %v2045_v10 = vsel %vm1924_vm13, %v2044_v61, %v2043_v0 }
 0x3bf   : > { %v2048_v52 = vsel %vm7239_vm5, %v8765_v5, %v2045_v10 }
 0x3c0   : > { %4626 = vmatmul.msk.f32.gmra.mxu0 %vm8588_vm1, %v4618_v51  ;;  %v2050_v53 = vmul.f32 %v2048_v52, %v2048_v52 }
 0x3c2   : > { %v2051_v36 = vmul.f32 -0.001358992, %v2050_v53  ;;  %v2058_v55 = vmul.f32 -0.00019511016, %v2050_v53 }
 0x3c4   : > { %v2052_v57 = vadd.f32 0.041655596, %v2051_v36  ;;  %v2059_v33 = vadd.f32 0.008332121, %v2058_v55 }
 0x3c6   : > { %v2053_v60 = vmul.f32 %v2052_v57, %v2050_v53  ;;  %v2060_v18 = vmul.f32 %v2059_v33, %v2050_v53 }
 0x3c8   : > { %4627 = vmatmul.msk.f32.gmra.mxu0 %vm8588_vm1, %v4619_v12  ;;  %v2054_v25 = vadd.f32 -0.4999988, %v2053_v60  ;;  %v2061_v1 = vadd.f32 -0.16666654, %v2060_v18 }
 0x3ca   : > { %v2055_v58 = vmul.f32 %v2054_v25, %v2050_v53  ;;  %v2062_v9 = vmul.f32 %v2061_v1, %v2050_v53 }
 0x3cc   : > { %v2056_v43 = vadd.f32 1.0, %v2055_v58  ;;  %v2063_v34 = vadd.f32 1.0, %v2062_v9 }
 0x3ce   : > { %v2064_v29 = vmul.f32 %v2063_v34, %v2048_v52  ;;  %v2073_v27 = vxor.u32 2147483648, %v2056_v43 }
 0x3d0   : > { %4628 = vmatmul.msk.f32.gmra.mxu0 %vm8588_vm1, %v4620_v8  ;;  %v2070_v3 = vxor.u32 2147483648, %v2064_v29  ;;  %v2074_v39 = vsel %vm2072_vm6, %v2073_v27, %v2064_v29 }
 0x3d2   : > { %v2071_v4 = vsel %vm2069_vm14, %v2056_v43, %v2070_v3 }
 0x3d3   : > { %v2075_v14 = vsel %vm2068_vm15, %v2071_v4, %v2074_v39 }
 0x3d4   : > { %v2076_v21 = vsel %vm2065_vm0, nan, %v2075_v14 }
 0x3d5   : > { %3093 = vmatpush.msrb.mxu1 %v2076_v21 }
 0x3d6   : > { %4629 = vmatmul.msk.f32.vlgmr.msrb.gmra.mxu1 %vm8588_vm1, %v4617_v59 }
 0x3de   : > { %4630 = vmatmul.msk.f32.gmra.mxu1 %vm8588_vm1, %v4618_v51 }
 0x3e6   : > { %4631 = vmatmul.msk.f32.gmra.mxu1 %vm8588_vm1, %v4619_v12 }
 0x3ee   : > { %4632 = vmatmul.msk.f32.gmra.mxu1 %vm8588_vm1, %v4620_v8 }
 0x435   : > { %v3066_v49 = vpop.f32.mrf.mxu0 }
 0x436   : > { %v7264_v31 = vadd.f32 %v3066_v49, %v3020_v26 }
 0x438   : > { %8772 = vst [vmem:[#allocation11_spill] sm:$0xff] %v7264_v31  ;;  %v3110_v16 = vand.u32 2139095040, %v7264_v31  ;;  %v8558_v48 = vand.u32 2147483647, %v7264_v31 }
 0x43a   : > { %v3111_v5 = vshrl.u32 %v3110_v16, 23  ;;  %v3114_v15 = vand.u32 8388607, %v8558_v48 }
 0x43c   : > { %v4633_v28 = vadd.s32 4294967169, %v3111_v5  ;;  %v3115_v6 = vor.u32 8388608, %v3114_v15 }
 0x43d   : > { %v3069_v44 = vpop.f32.mrf.mxu0 }
 0x43e   : > { %v3117_v46 = vadd.s32 1, %v4633_v28  ;;  %v7267_v56 = vadd.f32 %v3069_v44, %v3025_v54  ;;  %v7303_v34 = vshll.u32 %v3115_v6, 8 }
 0x440   : > { %vm3118_vm8 = vcmp.gt.s32.totalorder %v3117_v46, 0  ;;  %8773 = vst [vmem:[#allocation19_spill] sm:$0xff] %v7267_v56  ;;  %v3420_v7 = vand.u32 2139095040, %v7267_v56  ;;  %v8560_v20 = vand.u32 2147483647, %v7267_v56  ;;  %v7327_v49 = vand.u32 65535, %v7303_v34 }
 0x441   : > { %v3119_v17 = vsel %vm3118_vm8, %v3117_v46, 0  ;;  %8779 = vst [vmem:[#allocation8_spill] sm:$0xff] %v7303_v34 }
 0x442   : > { %v3421_v62 = vshrl.u32 %v3420_v7, 23  ;;  %v3121_v40 = vand.u32 31, %v3119_v17  ;;  %v3424_v61 = vand.u32 8388607, %v8560_v20  ;;  %v7283_v10 = vshrl.u32 %v3119_v17, 5  ;;  %8784 = vst [vmem:[#allocation13_spill] sm:$0xff] %v7327_v49 }
 0x444   : > { %v4639_v30 = vadd.s32 4294967169, %v3421_v62  ;;  %v7271_v47 = vsub.s32 32, %v3121_v40  ;;  %8776 = vst [vmem:[#allocation29_spill] sm:$0xff] %v7283_v10  ;;  %v3133_v55 = vshll.u32 %v8663_v32, %v3121_v40  ;;  %v3124_v12 = vshll.u32 %v8660_v50, %v3121_v40 }
 0x445   : > { %v3136_v33 = vshll.u32 %v8691_v2, %v3121_v40  ;;  %v3127_v60 = vshll.u32 %v8661_v63, %v3121_v40  ;;  %v3425_v25 = vor.u32 8388608, %v3424_v61  ;;  %v3130_v38 = vshll.u32 %v8662_v42, %v3121_v40  ;;  %v3072_v44 = vpop.f32.mrf.mxu0 }
 0x446   : > { %v3427_v11 = vadd.s32 1, %v4639_v30  ;;  %8774 = vst [vmem:[#allocation9_spill] sm:$0xff] %v7271_v47  ;;  %v3134_v0 = vshrl.u32 %v8691_v2, %v7271_v47  ;;  %v3137_v23 = vshrl.u32 %v8668_v45, %v7271_v47  ;;  %v3125_v53 = vshrl.u32 %v8661_v63, %v7271_v47  ;;  %v3030_v30 = vpop.permute.xlu0 %3029 }
 0x447   : > { %v3128_v36 = vshrl.u32 %v8662_v42, %v7271_v47  ;;  %v3131_v57 = vshrl.u32 %v8663_v32, %v7271_v47  ;;  %vm8625_vm4 = vcmp.lt.s32.totalorder %v7283_v10, 4  ;;  %v7314_v39 = vshll.u32 %v3425_v25, 8 }
 0x448   : > { %vm3428_vm3 = vcmp.gt.s32.totalorder %v3427_v11, 0  ;;  %v3135_v18 = vor.u32 %v3134_v0, %v3133_v55  ;;  %v3138_v58 = vor.u32 %v3137_v23, %v3136_v33  ;;  %v7299_v8 = vor.u32 %v3125_v53, %v3124_v12 }
 0x449   : > { %v3429_v52 = vsel %vm3428_vm3, %v3427_v11, 0  ;;  %v7301_v43 = vor.u32 %v3128_v36, %v3127_v60  ;;  %v7305_v37 = vor.u32 %v3131_v57, %v3130_v38  ;;  %8782 = vst [vmem:[#allocation15_spill] sm:$0xff] %v7314_v39  ;;  %vm8617_vm7 = vcmp.lt.s32.totalorder %v7283_v10, 1 }
 0x44a   : > { %v3431_v1 = vand.u32 31, %v3429_v52  ;;  %8777 = vst [vmem:[#allocation18_spill] sm:$0xff] %v7299_v8  ;;  %v3148_v3 = vsel %vm8625_vm4, %v3135_v18, 920167782  ;;  %v3152_v14 = vsel %vm8625_vm4, %v3138_v58, 1326507024  ;;  %v7367_v61 = vadd.f32 %v3072_v44, %v3030_v30 }
 0x44b   : > { %8778 = vst [vmem:[#allocation20_spill] sm:$0xff] %v7301_v43  ;;  %vm8611_vm11 = vcmp.lt.s32.totalorder %v7283_v10, 3  ;;  %v7324_v21 = vsel %vm8617_vm7, %v7299_v8, %v7301_v43  ;;  %v7341_v5 = vsel %vm8617_vm7, %v7301_v43, %v7305_v37  ;;  %v7352_v40 = vand.u32 65535, %v7314_v39 }
 0x44c   : > { %8780 = vst [vmem:[#allocation21_spill] sm:$0xff] %v7305_v37  ;;  %v7312_v4 = vsub.s32 32, %v3431_v1  ;;  %v7335_v16 = vsel %vm8611_vm11, %v7305_v37, %v3148_v3  ;;  %v7347_v17 = vsel %vm8611_vm11, %v3135_v18, %v3152_v14  ;;  %v7361_v15 = vshrl.u32 %v7314_v39, 16 }
 0x44d   : > { %8783 = vst [vmem:[#allocation23_spill] sm:$0xff] %v7324_v21  ;;  %v3440_v36 = vshll.u32 %v8662_v42, %v3431_v1  ;;  %v8561_v58 = vand.u32 2147483647, %v7367_v61 }
 0x44e   : > { %8781 = vst [vmem:[#allocation25_spill] sm:$0xff] %v7312_v4  ;;  %v3444_v62 = vshrl.u32 %v8691_v2, %v7312_v4  ;;  %v3435_v11 = vshrl.u32 %v8661_v63, %v7312_v4  ;;  %v3441_v0 = vshrl.u32 %v8663_v32, %v7312_v4  ;;  %v3447_v12 = vshrl.u32 %v8668_v45, %v7312_v4 }
 0x44f   : > { %8786 = vst [vmem:[#allocation27_spill] sm:$0xff] %v7335_v16 }
 0x450   : > { %8787 = vst [vmem:[#allocation17_spill] sm:$0xff] %v7341_v5  ;;  %v7384_v25 = vor.u32 %v3441_v0, %v3440_v36 }
 0x451   : > { %8789 = vst [vmem:[#allocation16_spill] sm:$0xff] %v7347_v17 }
 0x452   : > { %8790 = vst [vmem:[#allocation14_spill] sm:$0xff] %v7352_v40 }
 0x453   : > { %v3095_v22 = vpop.f32.mrf.mxu1  ;;  %8792 = vst [vmem:[#allocation12_spill] sm:$0xff] %v7361_v15 }
 0x454   : > { %v7273_v59 = vadd.f32 %v3095_v22, %v3020_v26  ;;  %v7330_v26 = vshrl.u32 %v7303_v34, 16  ;;  %v7354_v22 = vshrl.u32 %v3429_v52, 5  ;;  %8793 = vst [vmem:[#allocation10_spill] sm:$0xff] %v7367_v61  ;;  %v3437_v52 = vshll.u32 %v8661_v63, %v3431_v1 }
 0x455   : > { %8797 = vst [vmem:[#allocation33_spill] sm:$0xff] %v7384_v25 }
 0x456   : > { %8775 = vst [vmem:[#allocation28_spill] sm:$0xff] %v7273_v59  ;;  %v3265_v13 = vand.u32 2139095040, %v7273_v59  ;;  %v8557_v41 = vand.u32 2147483647, %v7273_v59  ;;  %vm3449_vm9 = vcmp.lt.s32.totalorder %v7354_v22, 1  ;;  %vm3452_vm2 = vcmp.lt.s32.totalorder %v7354_v22, 4 }
 0x457   : > { %8785 = vst [vmem:[#allocation26_spill] sm:$0xff] %v7330_v26  ;;  %vm8630_vm12 = vcmp.lt.s32.totalorder %v7354_v22, 3 }
 0x458   : > { %v3266_v51 = vshrl.u32 %v3265_v13, 23  ;;  %v3269_v29 = vand.u32 8388607, %v8557_v41  ;;  %8791 = vst [vmem:[#allocation22_spill] sm:$0xff] %v7354_v22  ;;  %v3434_v13 = vshll.u32 %v8660_v50, %v3431_v1 }
 0x45a   : > { %v4636_v19 = vadd.s32 4294967169, %v3266_v51  ;;  %v3270_v28 = vor.u32 8388608, %v3269_v29  ;;  %v3443_v51 = vshll.u32 %v8663_v32, %v3431_v1  ;;  %v7379_v57 = vor.u32 %v3435_v11, %v3434_v13 }
 0x45b   : > { %v3098_v27 = vpop.f32.mrf.mxu1 }
 0x45c   : > { %v3272_v9 = vadd.s32 1, %v4636_v19  ;;  %v7343_v46 = vadd.f32 %v3098_v27, %v3025_v54  ;;  %v3438_v54 = vshrl.u32 %v8662_v42, %v7312_v4  ;;  %v7369_v23 = vshll.u32 %v3270_v28, 8  ;;  %8795 = vst [vmem:[#allocation31_spill] sm:$0xff] %v7379_v57 }
 0x45d   : > { %v7374_v55 = vor.u32 %v3444_v62, %v3443_v51  ;;  %v3446_v19 = vshll.u32 %v8691_v2, %v3431_v1 }
 0x45e   : > { %vm3273_vm10 = vcmp.gt.s32.totalorder %v3272_v9, 0  ;;  %8788 = vst [vmem:[#allocation24_spill] sm:$0xff] %v7343_v46  ;;  %v3575_v53 = vand.u32 2139095040, %v7343_v46  ;;  %v7381_v33 = vor.u32 %v3438_v54, %v3437_v52  ;;  %v8559_v38 = vand.u32 2147483647, %v7343_v46 }
 0x45f   : > { %v3274_v7 = vsel %vm3273_vm10, %v3272_v9, 0  ;;  %8794 = vst [vmem:[#allocation30_spill] sm:$0xff] %v7369_v23  ;;  %v3730_v9 = vand.u32 2139095040, %v7367_v61  ;;  %v7392_v29 = vand.u32 65535, %v7369_v23  ;;  %v3448_v3 = vor.u32 %v3447_v12, %v3446_v19 }
 0x460   : > { %v3276_v6 = vand.u32 31, %v3274_v7  ;;  %8796 = vst [vmem:[#allocation32_spill] sm:$0xff] %v7381_v33  ;;  %v3576_v60 = vshrl.u32 %v3575_v53, 23  ;;  %v3458_v14 = vsel %vm3452_vm2, %v7374_v55, 920167782  ;;  %v7401_v62 = vshrl.u32 %v7369_v23, 16 }
 0x461   : > { %8799 = vst [vmem:[#allocation35_spill] sm:$0xff] %v7392_v29  ;;  %v3731_v28 = vshrl.u32 %v3730_v9, 23  ;;  %v7408_v11 = vsel %vm3449_vm9, %v7379_v57, %v7381_v33  ;;  %v7410_v13 = vshrl.u32 %v3274_v7, 5  ;;  %v3579_v0 = vand.u32 8388607, %v8559_v38 }
 0x462   : > { %v7389_v1 = vsub.s32 32, %v3276_v6  ;;  %v4642_v27 = vadd.s32 4294967169, %v3576_v60  ;;  %8801 = vst [vmem:[#allocation37_spill] sm:$0xff] %v7401_v62  ;;  %v7421_v53 = vsel %vm8630_vm12, %v7384_v25, %v3458_v14  ;;  %v7427_v7 = vsel %vm3449_vm9, %v7381_v33, %v7384_v25 }
 0x463   : > { %v3101_v18 = vpop.f32.mrf.mxu1  ;;  %8802 = vst [vmem:[#allocation38_spill] sm:$0xff] %v7408_v11  ;;  %v4645_v51 = vadd.s32 4294967169, %v3731_v28  ;;  %v3462_v36 = vsel %vm3452_vm2, %v3448_v3, 1326507024  ;;  %v3288_v14 = vshll.u32 %v8663_v32, %v3276_v6  ;;  %v3279_v28 = vshll.u32 %v8660_v50, %v3276_v6 }
 0x464   : > { %8798 = vst [vmem:[#allocation34_spill] sm:$0xff] %v7389_v1  ;;  %v7398_v44 = vadd.f32 %v3101_v18, %v3030_v30  ;;  %v3582_v54 = vadd.s32 1, %v4642_v27  ;;  %v3734_v30 = vand.u32 8388607, %v8561_v58  ;;  %v3289_v52 = vshrl.u32 %v8691_v2, %v7389_v1 }
 0x465   : > { %8803 = vst [vmem:[#allocation39_spill] sm:$0xff] %v7410_v13  ;;  %v3737_v12 = vadd.s32 1, %v4645_v51  ;;  %v3280_v18 = vshrl.u32 %v8661_v63, %v7389_v1  ;;  %v3283_v9 = vshrl.u32 %v8662_v42, %v7389_v1  ;;  %v3286_v27 = vshrl.u32 %v8663_v32, %v7389_v1  ;;  %v3075_v51 = vpop.f32.mrf.mxu0 }
 0x466   : > { %8800 = vst [vmem:[#allocation36_spill] sm:$0xff] %v7398_v44  ;;  %vm3583_vm13 = vcmp.gt.s32.totalorder %v3582_v54, 0  ;;  %v3885_v60 = vand.u32 2139095040, %v7398_v44  ;;  %v3282_v41 = vshll.u32 %v8661_v63, %v3276_v6  ;;  %v3580_v3 = vor.u32 8388608, %v3579_v0 }
 0x467   : > { %8804 = vst [vmem:[#allocation40_spill] sm:$0xff] %v7421_v53  ;;  %v3584_v19 = vsel %vm3583_vm13, %v3582_v54, 0  ;;  %v3735_v54 = vor.u32 8388608, %v3734_v30  ;;  %v3285_v48 = vshll.u32 %v8662_v42, %v3276_v6  ;;  %v7442_v38 = vor.u32 %v3289_v52, %v3288_v14 }
 0x468   : > { %8805 = vst [vmem:[#allocation41_spill] sm:$0xff] %v7427_v7  ;;  %v3586_v20 = vand.u32 31, %v3584_v19  ;;  %vm3738_vm5 = vcmp.gt.s32.totalorder %v3737_v12, 0  ;;  %v7445_v58 = vshll.u32 %v8691_v2, %v3276_v6  ;;  %v7449_v59 = vshrl.u32 %v8668_v45, %v7389_v1 }
 0x469   : > { %8806 = vst [vmem:[#allocation42_spill] sm:$0xff] %v7442_v38  ;;  %v8569_v31 = vand.u32 2147483647, %v7398_v44  ;;  %v3886_v23 = vshrl.u32 %v3885_v60, 23  ;;  %v7452_v62 = vor.u32 %v3280_v18, %v3279_v28  ;;  %v7454_v0 = vor.u32 %v3283_v9, %v3282_v41 }
 0x46a   : > { %8807 = vst [vmem:[#allocation43_spill] sm:$0xff] %v7445_v58  ;;  %v7456_v30 = vor.u32 %v3286_v27, %v3285_v48  ;;  %v7459_v52 = vadd.f32 %v3075_v51, %v7262_v24  ;;  %vm8629_vm14 = vcmp.lt.s32.totalorder %v7410_v13, 4  ;;  %v7462_v6 = vshll.u32 %v3580_v3, 8 }
 0x46b   : > { %8808 = vst [vmem:[#allocation44_spill] sm:$0xff] %v7449_v59  ;;  %v3739_v14 = vsel %vm3738_vm5, %v3737_v12, 0  ;;  %v7464_v29 = vshll.u32 %v3735_v54, 8  ;;  %vm8610_vm6 = vcmp.lt.s32.totalorder %v7410_v13, 1  ;;  %vm8626_vm15 = vcmp.lt.s32.totalorder %v7410_v13, 3 }
 0x46c   : > { %8809 = vst [vmem:[#allocation45_spill] sm:$0xff] %v7452_v62  ;;  %v3303_v41 = vsel %vm8629_vm14, %v7442_v38, 920167782  ;;  %v7471_v48 = vsub.s32 32, %v3586_v20  ;;  %v7476_v60 = vsel %vm8630_vm12, %v7374_v55, %v3462_v36  ;;  %v3741_v18 = vand.u32 31, %v3739_v14 }
 0x46d   : > { %8810 = vst [vmem:[#allocation46_spill] sm:$0xff] %v7454_v0  ;;  %v4648_v9 = vadd.s32 4294967169, %v3886_v23  ;;  %v3889_v12 = vand.u32 8388607, %v8569_v31  ;;  %v7486_v28 = vsel %vm8610_vm6, %v7452_v62, %v7454_v0  ;;  %v7492_v55 = vsel %vm8610_vm6, %v7454_v0, %v7456_v30 }
 0x46e   : > { %8811 = vst [vmem:[#allocation47_spill] sm:$0xff] %v7456_v30  ;;  %v7498_v36 = vsel %vm8626_vm15, %v7456_v30, %v3303_v41  ;;  %v7501_v3 = vand.u32 65535, %v7462_v6  ;;  %v7504_v54 = vand.u32 65535, %v7464_v29  ;;  %v7507_v51 = vshrl.u32 %v7464_v29, 16 }
 0x46f   : > { %8812 = vst [vmem:[#allocation48_spill] sm:$0xff] %v7462_v6  ;;  %v7509_v31 = vshrl.u32 %v3584_v19, 5  ;;  %v3590_v27 = vshrl.u32 %v8661_v63, %v7471_v48  ;;  %v3593_v23 = vshrl.u32 %v8662_v42, %v7471_v48  ;;  %v7515_v0 = vsub.s32 32, %v3741_v18 }
 0x470   : > { %8813 = vst [vmem:[#allocation49_spill] sm:$0xff] %v7471_v48  ;;  %v3596_v41 = vshrl.u32 %v8663_v32, %v7471_v48  ;;  %v3599_v62 = vshrl.u32 %v8691_v2, %v7471_v48  ;;  %v3890_v1 = vor.u32 8388608, %v3889_v12  ;;  %v3892_v30 = vadd.s32 1, %v4648_v9 }
 0x471   : > { %8814 = vst [vmem:[#allocation50_spill] sm:$0xff] %v7476_v60  ;;  %v3592_v19 = vshll.u32 %v8661_v63, %v3586_v20  ;;  %v3595_v46 = vshll.u32 %v8662_v42, %v3586_v20  ;;  %v3598_v43 = vshll.u32 %v8663_v32, %v3586_v20  ;;  %v7531_v8 = vshll.u32 %v8691_v2, %v3586_v20 }
 0x472   : > { %8815 = vst [vmem:[#allocation51_spill] sm:$0xff] %v7486_v28  ;;  %v4040_v28 = vand.u32 2139095040, %v7459_v52  ;;  %v7535_v9 = vshrl.u32 %v8668_v45, %v7471_v48  ;;  %vm3607_vm0 = vcmp.lt.s32.totalorder %v7509_v31, 4  ;;  %vm3893_vm8 = vcmp.gt.s32.totalorder %v3892_v30, 0 }
 0x473   : > { %8816 = vst [vmem:[#allocation52_spill] sm:$0xff] %v7492_v55  ;;  %v3589_v55 = vshll.u32 %v8660_v50, %v3586_v20  ;;  %v7539_v47 = vor.u32 %v3593_v23, %v3592_v19  ;;  %v7544_v37 = vor.u32 %v3596_v41, %v3595_v46  ;;  %v7546_v21 = vor.u32 %v3599_v62, %v3598_v43 }
 0x474   : > { %8817 = vst [vmem:[#allocation53_spill] sm:$0xff] %v7498_v36  ;;  %v8820_v36 = vand.u32 2147483647, %v7459_v52  ;;  %v3757_v20 = vshrl.u32 %v8668_v45, %v7515_v0  ;;  %v3745_v16 = vshrl.u32 %v8661_v63, %v7515_v0  ;;  %v3753_v23 = vshll.u32 %v8663_v32, %v3741_v18 }
 0x475   : > { %8818 = vst [vmem:[#allocation54_spill] sm:$0xff] %v7501_v3  ;;  %v7537_v12 = vor.u32 %v3590_v27, %v3589_v55  ;;  %v3748_v27 = vshrl.u32 %v8662_v42, %v7515_v0  ;;  %v3751_v55 = vshrl.u32 %v8663_v32, %v7515_v0  ;;  %v7557_v19 = vshrl.u32 %v3739_v14, 5 }
 0x476   : > { %8819 = vst [vmem:[#allocation55_spill] sm:$0xff] %v7509_v31  ;;  %v7526_v34 = vand.u32 8388607, %v8820_v36  ;;  %v3754_v36 = vshrl.u32 %v8691_v2, %v7515_v0  ;;  %v3744_v43 = vshll.u32 %v8660_v50, %v3741_v18  ;;  %v3756_v46 = vshll.u32 %v8691_v2, %v3741_v18 }
 0x477   : > { %8821 = vst [vmem:[#allocation56_spill] sm:$0xff] %v7531_v8  ;;  %v4041_v62 = vshrl.u32 %v4040_v28, 23  ;;  %v3747_v41 = vshll.u32 %v8661_v63, %v3741_v18  ;;  %v3750_v26 = vshll.u32 %v8662_v42, %v3741_v18  ;;  %v3894_v5 = vsel %vm3893_vm8, %v3892_v30, 0 }
 0x478   : > { %8822 = vst [vmem:[#allocation57_spill] sm:$0xff] %v7535_v9  ;;  %v3755_v49 = vor.u32 %v3754_v36, %v3753_v23  ;;  %vm8628_vm3 = vcmp.lt.s32.totalorder %v7509_v31, 1  ;;  %vm3606_vm10 = vcmp.lt.s32.totalorder %v7509_v31, 3  ;;  %v3613_v14 = vsel %vm3607_vm0, %v7546_v21, 920167782  ;;  %v3104_v23 = vpop.f32.mrf.mxu1 }
 0x479   : > { %8823 = vst [vmem:[#allocation58_spill] sm:$0xff] %v7537_v12  ;;  %v3758_v17 = vor.u32 %v3757_v20, %v3756_v46  ;;  %v7568_v10 = vor.u32 %v3745_v16, %v3744_v43  ;;  %v7570_v38 = vor.u32 %v3748_v27, %v3747_v41  ;;  %v7572_v28 = vor.u32 %v3751_v55, %v3750_v26 }
 0x47a   : > { %8824 = vst [vmem:[#allocation59_spill] sm:$0xff] %v7539_v47  ;;  %v7574_v56 = vshll.u32 %v3890_v1, 8  ;;  %vm3762_vm13 = vcmp.lt.s32.totalorder %v7557_v19, 4  ;;  %v3896_v18 = vand.u32 31, %v3894_v5  ;;  %v4651_v36 = vadd.s32 4294967169, %v4041_v62 }
 0x47b   : > { %8825 = vst [vmem:[#allocation60_spill] sm:$0xff] %v7544_v37  ;;  %v7583_v16 = vsel %vm8628_vm3, %v7537_v12, %v7539_v47  ;;  %v7588_v26 = vsel %vm3606_vm10, %v7544_v37, %v3613_v14  ;;  %v7594_v1 = vsel %vm8628_vm3, %v7539_v47, %v7544_v37  ;;  %v3768_v20 = vsel %vm3762_vm13, %v3755_v49, 920167782 }
 0x47c   : > { %8826 = vst [vmem:[#allocation61_spill] sm:$0xff] %v7546_v21  ;;  %vm3759_vm5 = vcmp.lt.s32.totalorder %v7557_v19, 1  ;;  %vm3761_vm8 = vcmp.lt.s32.totalorder %v7557_v19, 3  ;;  %v3772_v27 = vsel %vm3762_vm13, %v3758_v17, 1326507024  ;;  %v4047_v55 = vadd.s32 1, %v4651_v36 }
 0x47d   : > { %8827 = vst [vmem:[#allocation62_spill] sm:$0xff] %v7574_v56  ;;  %v7606_v43 = vsel %vm3759_vm5, %v7568_v10, %v7570_v38  ;;  %v7612_v46 = vsel %vm3759_vm5, %v7570_v38, %v7572_v28  ;;  %v7615_v62 = vand.u32 65535, %v7574_v56  ;;  %v7618_v41 = vadd.f32 %v3104_v23, %v7262_v24 }
 0x47e   : > { %8828 = vst [vmem:[#allocation63_spill] sm:$0xff] %v7583_v16  ;;  %v7623_v17 = vsel %vm3761_vm8, %v7572_v28, %v3768_v20  ;;  %v7625_v14 = vsub.s32 32, %v3896_v18  ;;  %v4045_v36 = vor.u32 8388608, %v7526_v34  ;;  %vm4048_vm1 = vcmp.gt.s32.totalorder %v4047_v55, 0 }
 0x47f   : > { %8829 = vst [vmem:[#allocation64_spill] sm:$0xff] %v7588_v26  ;;  %v7630_v30 = vsel %vm3761_vm8, %v3755_v49, %v3772_v27  ;;  %v7632_v47 = vshrl.u32 %v3894_v5, 5  ;;  %v4049_v12 = vsel %vm4048_vm1, %v4047_v55, 0  ;;  %v3899_v23 = vshll.u32 %v8660_v50, %v3896_v18 }
 0x480   : > { %8830 = vst [vmem:[#allocation65_spill] sm:$0xff] %v7594_v1  ;;  %v7637_v37 = vshll.u32 %v8661_v63, %v3896_v18  ;;  %v7640_v20 = vshrl.u32 %v7574_v56, 16  ;;  %v4051_v48 = vand.u32 31, %v4049_v12  ;;  %v7643_v34 = vshll.u32 %v8662_v42, %v3896_v18 }
 0x481   : > { %8831 = vst [vmem:[#allocation66_spill] sm:$0xff] %v7615_v62  ;;  %v7646_v49 = vshll.u32 %v8663_v32, %v3896_v18  ;;  %v7649_v5 = vshll.u32 %v8691_v2, %v3896_v18  ;;  %v4050_v27 = vshrl.u32 %v4049_v12, 5  ;;  %v3900_v55 = vshrl.u32 %v8661_v63, %v7625_v14 }
 0x482   : > { %8832 = vst [vmem:[#allocation67_spill] sm:$0xff] %v7625_v14  ;;  %v4052_v24 = vsub.s32 32, %v4051_v48  ;;  %v7653_v3 = vshll.u32 %v4045_v36, 8  ;;  %v4195_v13 = vand.u32 2139095040, %v7618_v41  ;;  %v4054_v58 = vshll.u32 %v8660_v50, %v4051_v48 }
 0x483   : > { %8833 = vst [vmem:[#allocation68_spill] sm:$0xff] %v7640_v20  ;;  %v4057_v59 = vshll.u32 %v8661_v63, %v4051_v48  ;;  %v4060_v6 = vshll.u32 %v8662_v42, %v4051_v48  ;;  %v8834_v1 = vand.u32 2147483647, %v7618_v41  ;;  %v4063_v36 = vshll.u32 %v8663_v32, %v4051_v48 }
 0x484   : > { %v4055_v18 = vshrl.u32 %v8661_v63, %v4052_v24  ;;  %v4058_v12 = vshrl.u32 %v8662_v42, %v4052_v24  ;;  %v4061_v16 = vshrl.u32 %v8663_v32, %v4052_v24  ;;  %v4064_v26 = vshrl.u32 %v8691_v2, %v4052_v24 }
 0x485   : > { %v4199_v39 = vand.u32 8388607, %v8834_v1  ;;  %v4066_v33 = vshll.u32 %v8691_v2, %v4051_v48  ;;  %v4067_v44 = vshrl.u32 %v8668_v45, %v4052_v24  ;;  %vm4069_vm1 = vcmp.lt.s32.totalorder %v4050_v27, 1 }
 0x486   : > { %v4056_v57 = vor.u32 %v4055_v18, %v4054_v58  ;;  %v4059_v25 = vor.u32 %v4058_v12, %v4057_v59  ;;  %v4062_v4 = vor.u32 %v4061_v16, %v4060_v6  ;;  %v4196_v21 = vshrl.u32 %v4195_v13, 23 }
 0x487   : > { %v4053_v1 = vshrl.u32 %v8660_v50, %v4052_v24  ;;  %v4065_v15 = vor.u32 %v4064_v26, %v4063_v36  ;;  %v4068_v40 = vor.u32 %v4067_v44, %v4066_v33  ;;  %vm4072_vm6 = vcmp.lt.s32.totalorder %v4050_v27, 4 }
 0x488   : > { %vm4071_vm11 = vcmp.lt.s32.totalorder %v4050_v27, 3  ;;  %v4074_v56 = vsel %vm4072_vm6, %v4062_v4, 2102212464  ;;  %v4077_v31 = vsel %vm4069_vm1, %v4056_v57, %v4059_v25  ;;  %v4081_v8 = vsel %vm4069_vm1, %v4059_v25, %v4062_v4 }
 0x489   : > { %v4078_v9 = vsel %vm4072_vm6, %v4065_v15, 920167782  ;;  %v4082_v48 = vsel %vm4072_vm6, %v4068_v40, 1326507024  ;;  %v4654_v7 = vadd.s32 4294967169, %v4196_v21  ;;  %v4200_v60 = vor.u32 8388608, %v4199_v39 }
 0x48a   : > { %vm4070_vm7 = vcmp.lt.s32.totalorder %v4050_v27, 2  ;;  %v4073_v59 = vsel %vm4069_vm1, %v4053_v1, %v4056_v57  ;;  %v4079_v58 = vsel %vm4071_vm11, %v4062_v4, %v4078_v9  ;;  %v4083_v13 = vsel %vm4071_vm11, %v4065_v15, %v4082_v48 }
 0x48b   : > { %v4075_v6 = vsel %vm4071_vm11, %v4059_v25, %v4074_v56  ;;  %v7673_v16 = vsel %vm4070_vm7, %v4077_v31, %v4079_v58  ;;  %v4084_v33 = vsel %vm4070_vm7, %v4081_v8, %v4083_v13  ;;  %v4202_v44 = vadd.s32 1, %v4654_v7 }
 0x48c   : > { %v3903_v26 = vshrl.u32 %v8662_v42, %v7625_v14  ;;  %v4086_v24 = vand.u32 65535, %v7653_v3  ;;  %v4088_v40 = vand.u32 65535, %v4084_v33  ;;  %v4089_v21 = vshrl.u32 %v4084_v33, 16 }
 0x48d   : > { %v7681_v39 = vshrl.u32 %v8663_v32, %v7625_v14  ;;  %v4087_v4 = vshrl.u32 %v7653_v3, 16  ;;  %vm4203_vm11 = vcmp.gt.s32.totalorder %v4202_v44, 0  ;;  %v7684_v56 = vshll.u32 %v4200_v60, 8 }
 0x48e   : > { %v7687_v31 = vsel %vm4070_vm7, %v4073_v59, %v4075_v6  ;;  %v7689_v8 = vmul.u32 %v4089_v21, %v4086_v24  ;;  %v4110_v15 = vand.u32 65535, %v7673_v16  ;;  %v4111_v57 = vshrl.u32 %v7673_v16, 16 }
 0x48f   : > { %v7693_v25 = vor.u32 %v3900_v55, %v3899_v23  ;;  %v7697_v7 = vshrl.u32 %v8691_v2, %v7625_v14  ;;  %v7701_v9 = vshrl.u32 %v8668_v45, %v7625_v14  ;;  %v7703_v60 = vmul.u32 %v4088_v40, %v4087_v4 }
 0x490   : > { %v7706_v27 = vor.u32 %v3903_v26, %v7637_v37  ;;  %v4090_v18 = vmul.u32 %v4088_v40, %v4086_v24  ;;  %v4094_v12 = vshll.u32 %v7689_v8, 16  ;;  %v4204_v36 = vsel %vm4203_vm11, %v4202_v44, 0 }
 0x491   : > { %8835 = vst [vmem:[#allocation69_spill] sm:$0xff] %v7693_v25  ;;  %v4206_v55 = vand.u32 31, %v4204_v36  ;;  %v7712_v1 = vand.u32 65535, %v7684_v56  ;;  %v7715_v48 = vshrl.u32 %v7684_v56, 16  ;;  %v4093_v59 = vmul.u32 %v4089_v21, %v4087_v4 }
 0x492   : > { %vm4098_vm7 = vc.u32 %v4090_v18, %v4094_v12  ;;  %v4112_v58 = vmul.u32 %v4110_v15, %v4086_v24  ;;  %v7717_v13 = vmul.u32 %v4111_v57, %v4086_v24  ;;  %v4096_v37 = vshll.u32 %v7703_v60, 16 }
 0x493   : > { %v7720_v6 = vmul.u32 %v4110_v15, %v4087_v4  ;;  %v7722_v16 = vshrl.u32 %v4204_v36, 5  ;;  %v4207_v33 = vsub.s32 32, %v4206_v55  ;;  %v4099_v44 = vsel %vm4098_vm7, 1, %v8659_v35 }
 0x494   : > { %v4100_v26 = vadd.s32 %v4094_v12, %v4090_v18  ;;  %v4209_v40 = vshll.u32 %v8660_v50, %v4206_v55  ;;  %v4212_v23 = vshll.u32 %v8661_v63, %v4206_v55  ;;  %v4215_v24 = vshll.u32 %v8662_v42, %v4206_v55 }
 0x495   : > { %v4210_v21 = vshrl.u32 %v8661_v63, %v4207_v33  ;;  %v4213_v11 = vshrl.u32 %v8662_v42, %v4207_v33  ;;  %v4216_v53 = vshrl.u32 %v8663_v32, %v4207_v33  ;;  %v4218_v15 = vshll.u32 %v8663_v32, %v4206_v55 }
 0x496   : > { %v4219_v36 = vshrl.u32 %v8691_v2, %v4207_v33  ;;  %v4221_v22 = vshll.u32 %v8691_v2, %v4206_v55  ;;  %v4222_v18 = vshrl.u32 %v8668_v45, %v4207_v33  ;;  %v4101_v12 = vadd.s32 %v4099_v44, %v4093_v59 }
 0x497   : > { %v4211_v61 = vor.u32 %v4210_v21, %v4209_v40  ;;  %v7735_v14 = vor.u32 %v4213_v11, %v4212_v23  ;;  %v4217_v20 = vor.u32 %v4216_v53, %v4215_v24  ;;  %vm4224_vm6 = vcmp.lt.s32.totalorder %v7722_v16, 1 }
 0x498   : > { %v4220_v63 = vor.u32 %v4219_v36, %v4218_v15  ;;  %v4223_v62 = vor.u32 %v4222_v18, %v4221_v22  ;;  %vm4102_vm1 = vc.u32 %v4100_v26, %v4096_v37  ;;  %vm4227_vm11 = vcmp.lt.s32.totalorder %v7722_v16, 4 }
 0x499   : > { %v4232_v42 = vsel %vm4224_vm6, %v4211_v61, %v7735_v14  ;;  %v4236_v32 = vsel %vm4224_vm6, %v7735_v14, %v4217_v20  ;;  %v4116_v45 = vshll.u32 %v7717_v13, 16  ;;  %vm4226_vm7 = vcmp.lt.s32.totalorder %v7722_v16, 3 }
 0x49a   : > { %v4233_v2 = vsel %vm4227_vm11, %v4220_v63, 920167782  ;;  %v4237_v22 = vsel %vm4227_vm11, %v4223_v62, 1326507024  ;;  %v4103_v11 = vsel %vm4102_vm1, 1, %v8659_v35  ;;  %v4115_v53 = vmul.u32 %v4111_v57, %v4087_v4 }
 0x49b   : > { %vm4225_vm4 = vcmp.lt.s32.totalorder %v7722_v16, 2  ;;  %v4234_v23 = vsel %vm4226_vm7, %v4217_v20, %v4233_v2  ;;  %v4238_v55 = vsel %vm4226_vm7, %v4220_v63, %v4237_v22  ;;  %v4095_v44 = vshrl.u32 %v7689_v8, 16 }
 0x49c   : > { %v4235_v59 = vsel %vm4225_vm4, %v4232_v42, %v4234_v23  ;;  %v4239_v37 = vsel %vm4225_vm4, %v4236_v32, %v4238_v55  ;;  %v4105_v62 = vadd.s32 %v4103_v11, %v4101_v12  ;;  %v4097_v57 = vshrl.u32 %v7703_v60, 16 }
 0x49d   : > { %v4243_v26 = vand.u32 65535, %v4239_v37  ;;  %v4244_v40 = vshrl.u32 %v4239_v37, 16  ;;  %v4266_v4 = vshrl.u32 %v4235_v59, 16  ;;  %v4208_v21 = vshrl.u32 %v8660_v50, %v4207_v33 }
 0x49e   : > { %v4265_v24 = vand.u32 65535, %v4235_v59  ;;  %vm4120_vm1 = vc.u32 %v4112_v58, %v4116_v45  ;;  %v4122_v15 = vadd.s32 %v4116_v45, %v4112_v58  ;;  %v4117_v63 = vshrl.u32 %v7717_v13, 16 }
 0x49f   : > { %v4246_v36 = vmul.u32 %v4244_v40, %v7712_v1  ;;  %v4247_v18 = vmul.u32 %v4243_v26, %v7715_v48  ;;  %v4118_v42 = vshll.u32 %v7720_v6, 16  ;;  %v4228_v8 = vsel %vm4224_vm6, %v4208_v21, %v4211_v61 }
 0x4a0   : > { %v4229_v12 = vsel %vm4227_vm11, %v4217_v20, 2102212464  ;;  %v4106_v60 = vadd.s32 %v4105_v62, %v4095_v44  ;;  %v4119_v33 = vshrl.u32 %v7720_v6, 16  ;;  %vm3760_vm15 = vcmp.lt.s32.totalorder %v7557_v19, 2 }
 0x4a1   : > { %v4245_v58 = vmul.u32 %v4243_v26, %v7712_v1  ;;  %v4249_v32 = vshll.u32 %v4246_v36, 16  ;;  %v4268_v45 = vmul.u32 %v4266_v4, %v7712_v1  ;;  %v4121_v13 = vsel %vm4120_vm1, 1, %v8659_v35 }
 0x4a2   : > { %v4248_v2 = vmul.u32 %v4244_v40, %v7715_v48  ;;  %v4269_v22 = vmul.u32 %v4265_v24, %v7715_v48  ;;  %v4123_v61 = vadd.s32 %v4121_v13, %v4115_v53  ;;  %vm4124_vm6 = vc.u32 %v4122_v15, %v4118_v42 }
 0x4a3   : > { %v4251_v11 = vshll.u32 %v4247_v18, 16  ;;  %vm4253_vm11 = vc.u32 %v4245_v58, %v4249_v32  ;;  %v4255_v20 = vadd.s32 %v4249_v32, %v4245_v58  ;;  %v4125_v6 = vsel %vm4124_vm6, 1, %v8659_v35 }
 0x4a4   : > { %v4254_v23 = vsel %vm4253_vm11, 1, %v8659_v35  ;;  %v4267_v55 = vmul.u32 %v4265_v24, %v7712_v1  ;;  %v7782_v59 = vadd.s32 %v4106_v60, %v4097_v57  ;;  %v4127_v37 = vadd.s32 %v4125_v6, %v4123_v61 }
 0x4a5   : > { %v4256_v44 = vadd.s32 %v4254_v23, %v4248_v2  ;;  %v4270_v62 = vmul.u32 %v4266_v4, %v7715_v48  ;;  %vm4257_vm1 = vc.u32 %v4255_v20, %v4251_v11  ;;  %v4271_v26 = vshll.u32 %v4268_v45, 16 }
 0x4a6   : > { %v7785_v40 = vadd.s32 %v4122_v15, %v4118_v42  ;;  %v4128_v53 = vadd.s32 %v4127_v37, %v4117_v63  ;;  %v4250_v21 = vshrl.u32 %v4246_v36, 16  ;;  %v4258_v58 = vsel %vm4257_vm1, 1, %v8659_v35 }
 0x4a7   : > { %v4260_v32 = vadd.s32 %v4258_v58, %v4256_v44  ;;  %v4273_v13 = vshll.u32 %v4269_v22, 16  ;;  %vm4275_vm6 = vc.u32 %v4267_v55, %v4271_v26  ;;  %v4277_v25 = vadd.s32 %v4271_v26, %v4267_v55 }
 0x4a8   : > { %v4230_v1 = vsel %vm4226_vm7, %v7735_v14, %v4229_v12  ;;  %v4129_v57 = vadd.s32 %v4128_v53, %v4119_v33  ;;  %vm4132_vm11 = vc.u32 %v7782_v59, %v7785_v40  ;;  %v4276_v48 = vsel %vm4275_vm6, 1, %v8659_v35 }
 0x4a9   : > { %v4261_v4 = vadd.s32 %v4260_v32, %v4250_v21  ;;  %v4278_v24 = vadd.s32 %v4276_v48, %v4270_v62  ;;  %vm4279_vm3 = vc.u32 %v4277_v25, %v4273_v13  ;;  %v3770_v15 = vsel %vm3760_vm15, %v7606_v43, %v7623_v17 }
 0x4aa   : > { %vm3917_vm1 = vcmp.lt.s32.totalorder %v7632_v47, 4  ;;  %v4133_v36 = vadd.s32 1, %v4129_v57  ;;  %v4252_v63 = vshrl.u32 %v4247_v18, 16  ;;  %v4280_v14 = vsel %vm4279_vm3, 1, %v8659_v35 }
 0x4ab   : > { %v3774_v42 = vsel %vm3760_vm15, %v7612_v46, %v7630_v30  ;;  %v4272_v12 = vshrl.u32 %v4268_v45, 16  ;;  %v4282_v60 = vadd.s32 %v4280_v14, %v4278_v24  ;;  %v7806_v61 = vor.u32 %v7681_v39, %v7643_v34 }
 0x4ac   : > { %v3778_v33 = vand.u32 65535, %v3774_v42  ;;  %v3779_v2 = vshrl.u32 %v3774_v42, 16  ;;  %v4134_v43 = vsel %vm4132_vm11, %v4133_v36, %v4129_v57  ;;  %v7811_v17 = vadd.s32 %v4261_v4, %v4252_v63 }
 0x4ad   : > { %v3801_v18 = vshrl.u32 %v3770_v15, 16  ;;  %v3910_v11 = vor.u32 %v7697_v7, %v7646_v49  ;;  %vm3914_vm3 = vcmp.lt.s32.totalorder %v7632_v47, 1  ;;  %v8836_v30 = vmul.u32 %v7653_v3, %v7687_v31 }
 0x4ae   : > { %v4274_v45 = vshrl.u32 %v4269_v22, 16  ;;  %v4283_v20 = vadd.s32 %v4282_v60, %v4272_v12  ;;  %v4231_v34 = vsel %vm4225_vm4, %v4228_v8, %v4230_v1  ;;  %v7821_v39 = vadd.s32 %v4277_v25, %v4273_v13 }
 0x4af   : > { %v4135_v46 = vadd.s32 %v4134_v43, %v8836_v30  ;;  %v3781_v6 = vmul.u32 %v3779_v2, %v7504_v54  ;;  %v7825_v23 = vmul.u32 %v3778_v33, %v7507_v51  ;;  %v3913_v49 = vor.u32 %v7701_v9, %v7649_v5 }
 0x4b0   : > { %vm3916_vm7 = vcmp.lt.s32.totalorder %v7632_v47, 3  ;;  %v4284_v3 = vadd.s32 %v4283_v20, %v4274_v45  ;;  %v7831_v31 = vmul.u32 %v3801_v18, %v7504_v54  ;;  %vm4287_vm4 = vc.u32 %v7811_v17, %v7821_v39 }
 0x4b1   : > { %v4136_v7 = vadd.s32 536870912, %v4135_v46  ;;  %v3780_v25 = vmul.u32 %v3778_v33, %v7504_v54  ;;  %v3784_v16 = vshll.u32 %v3781_v6, 16  ;;  %v3800_v8 = vand.u32 65535, %v3770_v15 }
 0x4b2   : > { %v4285_v22 = vmul.u32 %v7684_v56, %v4231_v34  ;;  %v4288_v37 = vadd.s32 1, %v4284_v3  ;;  %v3783_v5 = vmul.u32 %v3779_v2, %v7507_v51  ;;  %v3786_v9 = vshll.u32 %v7825_v23, 16 }
 0x4b3   : > { %v7837_v55 = vshrl.u32 %v4136_v7, 30  ;;  %vm3788_vm6 = vc.u32 %v3780_v25, %v3784_v16  ;;  %v3790_v44 = vadd.s32 %v3784_v16, %v3780_v25  ;;  %v3806_v62 = vshll.u32 %v7831_v31, 16 }
 0x4b4   : > { %v7844_v26 = vsel %vm3917_vm1, %v3910_v11, 920167782  ;;  %v4289_v21 = vsel %vm4287_vm4, %v4288_v37, %v4284_v3  ;;  %v3789_v56 = vsel %vm3788_vm6, 1, %v8659_v35  ;;  %v3802_v13 = vmul.u32 %v3800_v8, %v7504_v54 }
 0x4b5   : > { %v4138_v53 = vshll.u32 %v7837_v55, 30  ;;  %v4290_v58 = vadd.s32 %v4289_v21, %v4285_v22  ;;  %v3791_v32 = vadd.s32 %v3789_v56, %v3783_v5  ;;  %vm3792_vm11 = vc.u32 %v3790_v44, %v3786_v9 }
 0x4b6   : > { %v3927_v1 = vsel %vm3917_vm1, %v3913_v49, 1326507024  ;;  %v3793_v48 = vsel %vm3792_vm11, 1, %v8659_v35  ;;  %v3804_v4 = vmul.u32 %v3800_v8, %v7507_v51  ;;  %v7857_v24 = vsel %vm3914_vm3, %v7706_v27, %v7806_v61 }
 0x4b7   : > { %v4139_v57 = vsub.s32 %v4135_v46, %v4138_v53  ;;  %v4291_v15 = vadd.s32 536870912, %v4290_v58  ;;  %v3805_v36 = vmul.u32 %v3801_v18, %v7507_v51  ;;  %vm3810_vm4 = vc.u32 %v3802_v13, %v3806_v62 }
 0x4b8   : > { %vm4039_vm6 = vcmp.lt.s32.totalorder %v7459_v52, 0  ;;  %v3795_v63 = vadd.s32 %v3793_v48, %v3791_v32  ;;  %v3811_v14 = vsel %vm3810_vm4, 1, %v8659_v35  ;;  %v3928_v42 = vsel %vm3916_vm7, %v3910_v11, %v3927_v1 }
 0x4b9   : > { %vm4140_vm14 = vcmp.lt.s32.totalorder %v4139_v57, 0  ;;  %v4141_v54 = vsub.s32 0, %v4139_v57  ;;  %v4292_v12 = vshrl.u32 %v4291_v15, 30  ;;  %v3743_v60 = vshrl.u32 %v8660_v50, %v7515_v0 }
 0x4ba   : > { %v3812_v33 = vadd.s32 %v3806_v62, %v3802_v13  ;;  %v3785_v43 = vshrl.u32 %v3781_v6, 16  ;;  %v3808_v30 = vshll.u32 %v3804_v4, 16  ;;  %v3813_v51 = vadd.s32 %v3811_v14, %v3805_v36 }
 0x4bb   : > { %v4142_v2 = vsel %vm4140_vm14, %v4141_v54, %v4139_v57  ;;  %vm4194_vm11 = vcmp.lt.s32.totalorder %v7618_v41, 0  ;;  %v8837_v18 = vand.u32 2147483647, %v7459_v52  ;;  %v4293_v20 = vshll.u32 %v4292_v12, 30 }
 0x4bc   : > { %v4143_v45 = vclz %v4142_v2  ;;  %v3764_v11 = vsel %vm3762_vm13, %v7572_v28, 2102212464  ;;  %v4131_v0 = vadd.s32 %v7785_v40, %v7782_v59  ;;  %v3763_v34 = vsel %vm3759_vm5, %v3743_v60, %v7568_v10 }
 0x4bd   : > { %vm7869_vm12 = vcmp.le.f32.partialorder %v8837_v18, 0.7853982  ;;  %v3796_v6 = vadd.s32 %v3795_v63, %v3785_v43  ;;  %vm3814_vm14 = vc.u32 %v3812_v33, %v3808_v30  ;;  %v4161_v7 = vsub.s32 4, %v7837_v55 }
 0x4be   : > { %v4652_v49 = vadd.s32 4294967294, %v4143_v45  ;;  %v4294_v3 = vsub.s32 %v4290_v58, %v4293_v20  ;;  %v3815_v25 = vsel %vm3814_vm14, 1, %v8659_v35  ;;  %v3765_v16 = vsel %vm3761_vm8, %v7570_v38, %v3764_v11 }
 0x4bf   : > { %v3787_v28 = vshrl.u32 %v7825_v23, 16  ;;  %v3807_v59 = vshrl.u32 %v7831_v31, 16  ;;  %v3817_v40 = vadd.s32 %v3815_v25, %v3813_v51  ;;  %v3809_v8 = vshrl.u32 %v3804_v4, 16 }
 0x4c0   : > { %vm4653_vm13 = vcmp.lt.s32.totalorder %v4652_v49, 0  ;;  %vm4295_vm4 = vcmp.lt.s32.totalorder %v4294_v3, 0  ;;  %v4296_v10 = vsub.s32 0, %v4294_v3  ;;  %v4316_v37 = vsub.s32 4, %v4292_v12 }
 0x4c1   : > { %v4146_v22 = vsel %vm4653_vm13, 0, %v4652_v49  ;;  %v3797_v5 = vadd.s32 %v3796_v6, %v3787_v28  ;;  %v3818_v9 = vadd.s32 %v3817_v40, %v3807_v59  ;;  %v4162_v53 = vsel %vm4039_vm6, %v4161_v7, %v7837_v55  ;;  %v8844_v7 = vld [vmem:[#allocation66_spill] sm:$0xff] }
 0x4c2   : > { %v4147_v44 = vsub.s32 32, %v4146_v22  ;;  %v4151_v62 = vsub.s32 4294967266, %v4146_v22  ;;  %v4297_v38 = vsel %vm4295_vm4, %v4296_v10, %v4294_v3  ;;  %v8840_v23 = vand.u32 2147483647, %v7618_v41 }
 0x4c3   : > { %v4298_v21 = vclz %v4297_v38  ;;  %v3816_v56 = vadd.s32 %v3812_v33, %v3808_v30  ;;  %v3819_v58 = vadd.s32 %v3818_v9, %v3809_v8  ;;  %v4148_v32 = vshll.u32 %v4139_v57, %v4146_v22  ;;  %v8845_v8 = vld [vmem:[#allocation68_spill] sm:$0xff] }
 0x4c4   : > { %vm7893_vm5 = vcmp.le.f32.partialorder %v8840_v23, 0.7853982  ;;  %v4149_v13 = vshrl.u32 %v4131_v0, %v4147_v44  ;;  %v4152_v1 = vadd.s32 127, %v4151_v62  ;;  %v3766_v48 = vsel %vm3760_vm15, %v3763_v34, %v3765_v16  ;;  %v8846_v62 = vld [vmem:[#allocation67_spill] sm:$0xff] }
 0x4c5   : > { %v4164_v4 = vsel %vm7869_vm12, 0, %v4162_v53  ;;  %v4655_v55 = vadd.s32 4294967294, %v4298_v21  ;;  %v4317_v15 = vsel %vm4194_vm11, %v4316_v37, %v4292_v12  ;;  %vm3822_vm8 = vc.u32 %v3797_v5, %v3816_v56 }
 0x4c6   : > { %v4150_v36 = vor.u32 %v4149_v13, %v4148_v32  ;;  %v4153_v54 = vshll.u32 %v4152_v1, 23  ;;  %v3823_v63 = vadd.s32 1, %v3819_v58  ;;  %vm3915_vm14 = vcmp.lt.s32.totalorder %v7632_v47, 2 }
 0x4c7   : > { %v4286_v57 = vadd.s32 %v7821_v39, %v7811_v17  ;;  %vm4656_vm13 = vcmp.lt.s32.totalorder %v4655_v55, 0  ;;  %v3820_v19 = vmul.u32 %v7464_v29, %v3766_v48  ;;  %v3929_v14 = vsel %vm3915_vm14, %v7857_v24, %v3928_v42  ;;  %v8843_v24 = vld [vmem:[#allocation69_spill] sm:$0xff] }
 0x4c8   : > { %v4154_v60 = vor.u32 4788187, %v4153_v54  ;;  %v4181_v33 = vadd.s32 3, %v4164_v4  ;;  %v4301_v2 = vsel %vm4656_vm13, 0, %v4655_v55  ;;  %v3824_v12 = vsel %vm3822_vm8, %v3823_v63, %v3819_v58 }
 0x4c9   : > { %v4302_v43 = vsub.s32 32, %v4301_v2  ;;  %v4306_v30 = vsub.s32 4294967266, %v4301_v2  ;;  %v4319_v51 = vsel %vm7893_vm5, 0, %v4317_v15  ;;  %v3825_v18 = vadd.s32 %v3824_v12, %v3820_v19 }
 0x4ca   : > { %v4155_v45 = vand.u32 2147483647, %v4154_v60  ;;  %v4157_v20 = vcvt.s32.f32 %v4150_v36  ;;  %v3933_v17 = vand.u32 65535, %v3929_v14  ;;  %v3934_v39 = vshrl.u32 %v3929_v14, 16 }
 0x4cb   : > { %v4303_v11 = vshll.u32 %v4294_v3, %v4301_v2  ;;  %v4304_v29 = vshrl.u32 %v4286_v57, %v4302_v43  ;;  %v4307_v0 = vadd.s32 127, %v4306_v30  ;;  %v3826_v34 = vadd.s32 536870912, %v3825_v18 }
 0x4cc   : > { %v3922_v42 = vsel %vm3914_vm3, %v8843_v24, %v7706_v27  ;;  %v3924_v6 = vsel %vm3916_vm7, %v7806_v61, %v7844_v26  ;;  %v4158_v49 = vmul.f32 %v4157_v20, %v4155_v45  ;;  %v7921_v25 = vmul.u32 %v3934_v39, %v8844_v7 }
 0x4cd   : > { %v4305_v16 = vor.u32 %v4304_v29, %v4303_v11  ;;  %v4308_v28 = vshll.u32 %v4307_v0, 23  ;;  %v4336_v3 = vadd.s32 3, %v4319_v51  ;;  %v7923_v59 = vshrl.u32 %v3826_v34, 30 }
 0x4ce   : > { %v4159_v40 = vxor.u32 2147483648, %v4158_v49  ;;  %v3935_v10 = vmul.u32 %v3933_v17, %v8844_v7  ;;  %v7927_v22 = vmul.u32 %v3933_v17, %v8845_v8  ;;  %v3939_v37 = vshll.u32 %v7921_v25, 16 }
 0x4cf   : > { %v7930_v9 = vand.u32 3, %v4181_v33  ;;  %v4309_v26 = vor.u32 4788187, %v4308_v28  ;;  %v3828_v44 = vshll.u32 %v7923_v59, 30  ;;  %v3898_v53 = vshrl.u32 %v8660_v50, %v8846_v62 }
 0x4d0   : > { %v4160_v38 = vsel %vm4039_vm6, %v4159_v40, %v4158_v49  ;;  %v4312_v23 = vcvt.s32.f32 %v4305_v16  ;;  %v3821_v21 = vadd.s32 %v3816_v56, %v3797_v5  ;;  %v3945_v58 = vadd.s32 %v3939_v37, %v3935_v10 }
 0x4d1   : > { %v7940_v32 = vsel %vm7869_vm12, %v7459_v52, %v4160_v38  ;;  %v4310_v13 = vand.u32 2147483647, %v4309_v26  ;;  %v7942_v1 = vsub.s32 %v3825_v18, %v3828_v44  ;;  %vm3943_vm15 = vc.u32 %v3935_v10, %v3939_v37  ;;  %v8847_v10 = vld [vmem:[#allocation10_spill] sm:$0xff] }
 0x4d2   : > { %v4165_v48 = vmul.f32 %v7940_v32, %v7940_v32  ;;  %v7946_v4 = vand.u32 3, %v4336_v3  ;;  %v7950_v55 = vsel %vm3915_vm14, %v3922_v42, %v3924_v6  ;;  %v3941_v5 = vshll.u32 %v7927_v22, 16 }
 0x4d3   : > { %v4313_v56 = vmul.f32 %v4312_v23, %v4310_v13  ;;  %vm3830_vm6 = vcmp.lt.s32.totalorder %v7942_v1, 0  ;;  %v3831_v46 = vsub.s32 0, %v7942_v1  ;;  %v7958_v15 = vsel %vm3914_vm3, %v3898_v53, %v8843_v24 }
 0x4d4   : > { %v4166_v36 = vmul.f32 -0.001358992, %v4165_v48  ;;  %v4173_v54 = vmul.f32 -0.00019511016, %v4165_v48  ;;  %v3944_v63 = vsel %vm3943_vm15, 1, %v8659_v35  ;;  %vm3947_vm12 = vc.u32 %v3945_v58, %v3941_v5 }
 0x4d5   : > { %v4314_v57 = vxor.u32 2147483648, %v4313_v56  ;;  %v3832_v19 = vsel %vm3830_vm6, %v3831_v46, %v7942_v1  ;;  %v3938_v14 = vmul.u32 %v3934_v39, %v8845_v8  ;;  %v3956_v60 = vshrl.u32 %v7950_v55, 16 }
 0x4d6   : > { %v4167_v33 = vadd.f32 0.041655596, %v4166_v36  ;;  %v4174_v2 = vadd.f32 0.008332121, %v4173_v54  ;;  %v3833_v12 = vclz %v3832_v19  ;;  %v3919_v43 = vsel %vm3917_vm1, %v7806_v61, 2102212464 }
 0x4d7   : > { %v4315_v30 = vsel %vm4194_vm11, %v4314_v57, %v4313_v56  ;;  %v3946_v51 = vadd.s32 %v3944_v63, %v3938_v14  ;;  %v3948_v18 = vsel %vm3947_vm12, 1, %v8659_v35  ;;  %v3955_v45 = vand.u32 65535, %v7950_v55 }
 0x4d8   : > { %v4168_v20 = vmul.f32 %v4167_v33, %v4165_v48  ;;  %v4175_v17 = vmul.f32 %v4174_v2, %v4165_v48  ;;  %v7974_v39 = vsel %vm7893_vm5, %v7618_v41, %v4315_v30  ;;  %v4646_v11 = vadd.s32 4294967294, %v3833_v12 }
 0x4d9   : > { %v4320_v29 = vmul.f32 %v7974_v39, %v7974_v39  ;;  %v7981_v61 = vsel %vm3916_vm7, %v7706_v27, %v3919_v43  ;;  %v3940_v0 = vshrl.u32 %v7921_v25, 16  ;;  %v7985_v34 = vmul.u32 %v3956_v60, %v8844_v7 }
 0x4da   : > { %v4169_v24 = vadd.f32 -0.4999988, %v4168_v20  ;;  %v4176_v42 = vadd.f32 -0.16666654, %v4175_v17  ;;  %vm4647_vm1 = vcmp.lt.s32.totalorder %v4646_v11, 0  ;;  %v3851_v31 = vsub.s32 4, %v7923_v59 }
 0x4db   : > { %vm4184_vm3 = vcmp.eq.s32.totalorder %v7930_v9, 0  ;;  %vm4187_vm11 = vcmp.eq.s32.totalorder %v7930_v9, 2  ;;  %v4321_v6 = vmul.f32 -0.001358992, %v4320_v29  ;;  %v4328_v49 = vmul.f32 -0.00019511016, %v4320_v29 }
 0x4dc   : > { %v3836_v16 = vsel %vm4647_vm1, 0, %v4646_v11  ;;  %v3950_v28 = vadd.s32 %v3948_v18, %v3946_v51  ;;  %v4170_v27 = vmul.f32 %v4169_v24, %v4165_v48  ;;  %v4177_v3 = vmul.f32 %v4176_v42, %v4165_v48 }
 0x4dd   : > { %vm4183_vm7 = vcmp.lt.s32.totalorder %v7930_v9, 2  ;;  %v3837_v25 = vsub.s32 32, %v3836_v16  ;;  %v7992_v40 = vmul.u32 %v3955_v45, %v8845_v8  ;;  %vm3729_vm4 = vcmp.lt.s32.totalorder %v8847_v10, 0 }
 0x4de   : > { %vm4180_vm5 = vweird.f32 %v7459_v52  ;;  %v4322_v37 = vadd.f32 0.041655596, %v4321_v6  ;;  %v4329_v26 = vadd.f32 0.008332121, %v4328_v49  ;;  %v3841_v44 = vsub.s32 4294967266, %v3836_v16 }
 0x4df   : > { %v3961_v62 = vshll.u32 %v7985_v34, 16  ;;  %v4171_v53 = vadd.f32 1.0, %v4170_v27  ;;  %v4178_v38 = vadd.f32 1.0, %v4177_v3  ;;  %v3838_v23 = vshll.u32 %v7942_v1, %v3836_v16 }
 0x4e0   : > { %v3839_v58 = vshrl.u32 %v3821_v21, %v3837_v25  ;;  %v4323_v13 = vmul.f32 %v4322_v37, %v4320_v29  ;;  %v4330_v48 = vmul.f32 %v4329_v26, %v4320_v29  ;;  %v3842_v55 = vadd.s32 127, %v3841_v44  ;;  %v8852_v37 = vld [vmem:[#allocation40_spill] sm:$0xff]  ;;  %v8853_v26 = vld [vmem:[#allocation38_spill] sm:$0xff] }
 0x4e1   : > { %v3957_v5 = vmul.u32 %v3955_v45, %v8844_v7  ;;  %v4179_v56 = vmul.f32 %v4178_v38, %v7940_v32  ;;  %v4188_v46 = vxor.u32 2147483648, %v4171_v53  ;;  %v8848_v36 = vand.u32 2147483647, %v8847_v10  ;;  %v8854_v44 = vld [vmem:[#allocation50_spill] sm:$0xff] }
 0x4e2   : > { %v3840_v63 = vor.u32 %v3839_v58, %v3838_v23  ;;  %v3951_v1 = vadd.s32 %v3950_v28, %v3940_v0  ;;  %v4324_v21 = vadd.f32 -0.4999988, %v4323_v13  ;;  %v4331_v57 = vadd.f32 -0.16666654, %v4330_v48 }
 0x4e3   : > { %vm8005_vm8 = vcmp.le.f32.partialorder %v8848_v36, 0.7853982  ;;  %vm4342_vm13 = vcmp.eq.s32.totalorder %v7946_v4, 2  ;;  %v3843_v19 = vshll.u32 %v3842_v55, 23  ;;  %vm3965_vm15 = vc.u32 %v3957_v5, %v3961_v62 }
 0x4e4   : > { %v4185_v7 = vxor.u32 2147483648, %v4179_v56  ;;  %vm4339_vm6 = vcmp.eq.s32.totalorder %v7946_v4, 0  ;;  %v3960_v32 = vmul.u32 %v3956_v60, %v8845_v8  ;;  %v3963_v14 = vshll.u32 %v7992_v40, 16 }
 0x4e5   : > { %v3966_v33 = vsel %vm3965_vm15, 1, %v8659_v35  ;;  %v4325_v2 = vmul.f32 %v4324_v21, %v4320_v29  ;;  %v4332_v12 = vmul.f32 %v4331_v57, %v4320_v29  ;;  %vm4338_vm12 = vcmp.lt.s32.totalorder %v7946_v4, 2 }
 0x4e6   : > { %v3844_v43 = vor.u32 4788187, %v3843_v19  ;;  %v3967_v30 = vadd.s32 %v3961_v62, %v3957_v5  ;;  %v4186_v51 = vsel %vm4184_vm3, %v4171_v53, %v4185_v7  ;;  %v4189_v18 = vsel %vm4187_vm11, %v4188_v46, %v4179_v56  ;;  %v8855_v62 = vld [vmem:[#allocation41_spill] sm:$0xff]  ;;  %v8857_v46 = vld [vmem:[#allocation56_spill] sm:$0xff]  ;;  %v8860_v7 = vld [vmem:[#allocation62_spill] sm:$0xff] }
 0x4e7   : > { %vm4335_vm1 = vweird.f32 %v7618_v41  ;;  %v3847_v8 = vcvt.s32.f32 %v3840_v63  ;;  %v3968_v60 = vadd.s32 %v3966_v33, %v3960_v32  ;;  %v4190_v45 = vsel %vm4183_vm7, %v4186_v51, %v4189_v18  ;;  %v8856_v56 = vld [vmem:[#allocation57_spill] sm:$0xff]  ;;  %v8859_v63 = vld [vmem:[#allocation55_spill] sm:$0xff]  ;;  %v8861_v41 = vld [vmem:[#allocation14_spill] sm:$0xff] }
 0x4e8   : > { %v4326_v20 = vadd.f32 1.0, %v4325_v2  ;;  %v4333_v17 = vadd.f32 1.0, %v4332_v12  ;;  %v3845_v11 = vand.u32 2147483647, %v3844_v43  ;;  %v4191_v29 = vsel %vm4180_vm5, nan, %v4190_v45  ;;  %v8862_v12 = vld [vmem:[#allocation12_spill] sm:$0xff] }
 0x4e9   : > { %v3852_v0 = vsel %vm3729_vm4, %v3851_v31, %v7923_v59  ;;  %v3942_v24 = vshrl.u32 %v7927_v22, 16  ;;  %vm3969_vm3 = vc.u32 %v3967_v30, %v3963_v14  ;;  %4353 = vst [vmem:[%s8029_s22 + $0x30] sm:$0xff] %v4191_v29  ;;  %4377 = vmatpush.msra.mxu2 %v4191_v29  ;;  %v3921_v52 = vsel %vm3915_vm14, %v7958_v15, %v7981_v61  ;;  %v8851_v15 = vld [vmem:[#allocation22_spill] sm:$0xff]  ;;  %v8863_v45 = vld [vmem:[#allocation61_spill] sm:$0xff] }
 0x4ea   : > { %v4334_v9 = vmul.f32 %v4333_v17, %v7974_v39  ;;  %v4343_v42 = vxor.u32 2147483648, %v4326_v20  ;;  %v3848_v6 = vmul.f32 %v3847_v8, %v3845_v11  ;;  %v3970_v49 = vsel %vm3969_vm3, 1, %v8659_v35 }
 0x4eb   : > { %v8038_v59 = vadd.s32 %v3951_v1, %v3942_v24  ;;  %v3962_v22 = vshrl.u32 %v7985_v34, 16  ;;  %v3972_v31 = vadd.s32 %v3970_v49, %v3968_v60  ;;  %v3854_v27 = vsel %vm8005_vm8, 0, %v3852_v0 }
 0x4ec   : > { %v4340_v16 = vxor.u32 2147483648, %v4334_v9  ;;  %v3849_v28 = vxor.u32 2147483648, %v3848_v6  ;;  %v3964_v39 = vshrl.u32 %v7992_v40, 16  ;;  %v4344_v3 = vsel %vm4342_vm13, %v4343_v42, %v4334_v9 }
 0x4ed   : > { %v8046_v25 = vadd.s32 %v3967_v30, %v3963_v14  ;;  %v3973_v47 = vadd.s32 %v3972_v31, %v3962_v22  ;;  %vm3450_vm14 = vcmp.lt.s32.totalorder %v8851_v15, 2  ;;  %v8858_v36 = vor.u32 %v8856_v56, %v8857_v46 }
 0x4ee   : > { %v4341_v61 = vsel %vm4339_vm6, %v4326_v20, %v4340_v16  ;;  %v3850_v34 = vsel %vm3729_vm4, %v3849_v28, %v3848_v6  ;;  %v3460_v40 = vsel %vm3450_vm14, %v8853_v26, %v8852_v37  ;;  %v3464_v53 = vsel %vm3450_vm14, %v8855_v62, %v8854_v44  ;;  %v8864_v28 = vld [vmem:[#allocation25_spill] sm:$0xff] }
 0x4ef   : > { %v4345_v38 = vsel %vm4338_vm12, %v4341_v61, %v4344_v3  ;;  %v3853_v23 = vsel %vm8005_vm8, %v8847_v10, %v3850_v34  ;;  %v3974_v58 = vadd.s32 %v3973_v47, %v3964_v39  ;;  %vm3977_vm11 = vc.u32 %v8038_v59, %v8046_v25  ;;  %v8865_v26 = vld [vmem:[#allocation33_spill] sm:$0xff] }
 0x4f0   : > { %v4346_v13 = vsel %vm4335_vm1, nan, %v4345_v38  ;;  %v3855_v48 = vmul.f32 %v3853_v23, %v3853_v23  ;;  %v3468_v55 = vand.u32 65535, %v3464_v53  ;;  %v3469_v5 = vshrl.u32 %v3464_v53, 16 }
 0x4f1   : > { %v3617_v4 = vsel %vm3607_vm0, %v8858_v36, 1326507024  ;;  %4354 = vst [vmem:[%s8029_s22 + $0x38] sm:$0xff] %v4346_v13  ;;  %4397 = vmatpush.msra.mxu3 %v4346_v13  ;;  %v3871_v54 = vadd.s32 3, %v3854_v27  ;;  %v3978_v1 = vadd.s32 1, %v3974_v58  ;;  %v3491_v21 = vshrl.u32 %v3460_v40, 16 }
 0x4f2   : > { %v3856_v57 = vmul.f32 -0.001358992, %v3855_v48  ;;  %v3863_v19 = vmul.f32 -0.00019511016, %v3855_v48  ;;  %v3975_v32 = vmul.u32 %v8860_v7, %v3921_v52  ;;  %v3471_v14 = vmul.u32 %v3469_v5, %v8861_v41 }
 0x4f3   : > { %v3979_v33 = vsel %vm3977_vm11, %v3978_v1, %v3974_v58  ;;  %v3470_v2 = vmul.u32 %v3468_v55, %v8861_v41  ;;  %v8080_v43 = vmul.u32 %v3468_v55, %v8862_v12  ;;  %v3490_v30 = vand.u32 65535, %v3460_v40 }
 0x4f4   : > { %v3857_v51 = vadd.f32 0.041655596, %v3856_v57  ;;  %v3864_v18 = vadd.f32 0.008332121, %v3863_v19  ;;  %v3980_v8 = vadd.s32 %v3979_v33, %v3975_v32  ;;  %v3474_v60 = vshll.u32 %v3471_v14, 16  ;;  %v8866_v32 = vld [vmem:[#allocation31_spill] sm:$0xff] }
 0x4f5   : > { %v8085_v20 = vsel %vm3606_vm10, %v8863_v45, %v3617_v4  ;;  %v3872_v17 = vand.u32 3, %v3871_v54  ;;  %v3473_v11 = vmul.u32 %v3469_v5, %v8862_v12  ;;  %v3493_v29 = vmul.u32 %v3491_v21, %v8861_v41 }
 0x4f6   : > { %v3858_v0 = vmul.f32 %v3857_v51, %v3855_v48  ;;  %v3865_v24 = vmul.f32 %v3864_v18, %v3855_v48  ;;  %v3981_v9 = vadd.s32 536870912, %v3980_v8  ;;  %vm3478_vm7 = vc.u32 %v3470_v2, %v3474_v60 }
 0x4f7   : > { %v3476_v42 = vshll.u32 %v8080_v43, 16  ;;  %v3479_v6 = vsel %vm3478_vm7, 1, %v8659_v35  ;;  %v3480_v49 = vadd.s32 %v3474_v60, %v3470_v2  ;;  %v8092_v52 = vmul.u32 %v3490_v30, %v8862_v12 }
 0x4f8   : > { %v3859_v22 = vadd.f32 -0.4999988, %v3858_v0  ;;  %v3866_v31 = vadd.f32 -0.16666654, %v3865_v24  ;;  %v8094_v16 = vshrl.u32 %v3981_v9, 30  ;;  %v3433_v27 = vshrl.u32 %v8660_v50, %v8864_v28 }
 0x4f9   : > { %v3481_v39 = vadd.s32 %v3479_v6, %v3473_v11  ;;  %vm3482_vm4 = vc.u32 %v3480_v49, %v3476_v42  ;;  %v3492_v3 = vmul.u32 %v3490_v30, %v8861_v41  ;;  %v3496_v47 = vshll.u32 %v3493_v29, 16  ;;  %v8867_v41 = vld [vmem:[#allocation36_spill] sm:$0xff] }
 0x4fa   : > { %v3860_v61 = vmul.f32 %v3859_v22, %v3855_v48  ;;  %v3867_v34 = vmul.f32 %v3866_v31, %v3855_v48  ;;  %v3983_v37 = vshll.u32 %v8094_v16, 30  ;;  %v3454_v40 = vsel %vm3452_vm2, %v8865_v26, 2102212464  ;;  %v8870_v6 = vld [vmem:[#allocation64_spill] sm:$0xff]  ;;  %v8872_v31 = vld [vmem:[#allocation15_spill] sm:$0xff] }
 0x4fb   : > { %v3483_v44 = vsel %vm3482_vm4, 1, %v8659_v35  ;;  %v3498_v62 = vshll.u32 %v8092_v52, 16  ;;  %vm3500_vm5 = vc.u32 %v3492_v3, %v3496_v47  ;;  %v3502_v53 = vadd.s32 %v3496_v47, %v3492_v3  ;;  %v8874_v26 = vld [vmem:[#allocation48_spill] sm:$0xff] }
 0x4fc   : > { %v3861_v38 = vadd.f32 1.0, %v3860_v61  ;;  %v3868_v58 = vadd.f32 1.0, %v3867_v34  ;;  %v8105_v13 = vsub.s32 %v3980_v8, %v3983_v37  ;;  %v3475_v55 = vshrl.u32 %v3471_v14, 16  ;;  %v8868_v14 = vld [vmem:[#allocation32_spill] sm:$0xff] }
 0x4fd   : > { %v3485_v5 = vadd.s32 %v3483_v44, %v3481_v39  ;;  %v3495_v48 = vmul.u32 %v3491_v21, %v8862_v12  ;;  %v3501_v56 = vsel %vm3500_vm5, 1, %v8659_v35  ;;  %vm3504_vm8 = vc.u32 %v3502_v53, %v3498_v62 }
 0x4fe   : > { %v3869_v46 = vmul.f32 %v3868_v58, %v3853_v23  ;;  %v3878_v36 = vxor.u32 2147483648, %v3861_v38  ;;  %vm3985_vm2 = vcmp.lt.s32.totalorder %v8105_v13, 0  ;;  %v3986_v4 = vsub.s32 0, %v8105_v13  ;;  %v8876_v58 = vld [vmem:[#allocation43_spill] sm:$0xff] }
 0x4ff   : > { %vm3874_vm13 = vcmp.eq.s32.totalorder %v3872_v17, 0  ;;  %v3486_v54 = vadd.s32 %v3485_v5, %v3475_v55  ;;  %v3503_v1 = vadd.s32 %v3501_v56, %v3495_v48  ;;  %v3505_v57 = vsel %vm3504_vm8, 1, %v8659_v35  ;;  %v8878_v55 = vld [vmem:[#allocation39_spill] sm:$0xff] }
 0x500   : > { %v3875_v19 = vxor.u32 2147483648, %v3869_v46  ;;  %vm3877_vm15 = vcmp.eq.s32.totalorder %v3872_v17, 2  ;;  %v3987_v7 = vsel %vm3985_vm2, %v3986_v4, %v8105_v13  ;;  %v3453_v21 = vsel %vm3449_vm9, %v3433_v27, %v8866_v32  ;;  %v8873_v27 = vld [vmem:[#allocation65_spill] sm:$0xff]  ;;  %v8883_v4 = vld [vmem:[#allocation54_spill] sm:$0xff] }
 0x501   : > { %vm3884_vm6 = vcmp.lt.s32.totalorder %v8867_v41, 0  ;;  %v3988_v23 = vclz %v3987_v7  ;;  %vm8869_vm12 = vcmp.lt.s32.totalorder %v8851_v15, 3  ;;  %v3477_v2 = vshrl.u32 %v8080_v43, 16  ;;  %v8871_v15 = vld [vmem:[#allocation63_spill] sm:$0xff] }
 0x502   : > { %v3455_v33 = vsel %vm8869_vm12, %v8868_v14, %v3454_v40  ;;  %v3507_v12 = vadd.s32 %v3505_v57, %v3503_v1  ;;  %vm3873_vm1 = vcmp.lt.s32.totalorder %v3872_v17, 2  ;;  %v3876_v30 = vsel %vm3874_vm13, %v3861_v38, %v3875_v19  ;;  %v8875_v38 = vld [vmem:[#allocation44_spill] sm:$0xff] }
 0x503   : > { %v3879_v51 = vsel %vm3877_vm15, %v3878_v36, %v3869_v46  ;;  %v3497_v18 = vshrl.u32 %v3493_v29, 16  ;;  %vm3870_vm3 = vweird.f32 %v8847_v10  ;;  %v4649_v60 = vadd.s32 4294967294, %v3988_v23 }
 0x504   : > { %v3880_v8 = vsel %vm3873_vm1, %v3876_v30, %v3879_v51  ;;  %v8122_v45 = vadd.s32 %v3486_v54, %v3477_v2  ;;  %v3456_v0 = vsel %vm3450_vm14, %v3453_v21, %v3455_v33  ;;  %v3499_v24 = vshrl.u32 %v8092_v52, 16  ;;  %v8884_v21 = vld [vmem:[#allocation49_spill] sm:$0xff] }
 0x505   : > { %v3881_v11 = vsel %vm3870_vm3, nan, %v3880_v8  ;;  %v3508_v9 = vadd.s32 %v3507_v12, %v3497_v18  ;;  %v3976_v43 = vadd.s32 %v8046_v25, %v8038_v59  ;;  %vm4650_vm9 = vcmp.lt.s32.totalorder %v4649_v60, 0 }
 0x506   : > { %4351 = vst [vmem:[%s8029_s22 + $0x20] sm:$0xff] %v3881_v11  ;;  %4378 = vmatpush.msra.mxu2 %v3881_v11  ;;  %v8130_v17 = vadd.s32 %v3502_v53, %v3498_v62  ;;  %vm3605_vm11 = vcmp.lt.s32.totalorder %v8859_v63, 2  ;;  %v3991_v10 = vsel %vm4650_vm9, 0, %v4649_v60  ;;  %v4006_v29 = vsub.s32 4, %v8094_v16 }
 0x507   : > { %v3509_v42 = vadd.s32 %v3508_v9, %v3499_v24  ;;  %v3615_v49 = vsel %vm3605_vm11, %v8871_v15, %v8870_v6  ;;  %v3992_v52 = vsub.s32 32, %v3991_v10  ;;  %v3996_v22 = vsub.s32 4294967266, %v3991_v10 }
 0x508   : > { %v3510_v28 = vmul.u32 %v8872_v31, %v3456_v0  ;;  %vm3512_vm14 = vc.u32 %v8122_v45, %v8130_v17  ;;  %v3993_v59 = vshll.u32 %v8105_v13, %v3991_v10  ;;  %v3619_v39 = vsel %vm3605_vm11, %v8873_v27, %v8085_v20 }
 0x509   : > { %v3513_v25 = vadd.s32 1, %v3509_v42  ;;  %v3645_v3 = vand.u32 65535, %v3615_v49  ;;  %v3994_v47 = vshrl.u32 %v3976_v43, %v3992_v52  ;;  %v3997_v61 = vadd.s32 127, %v3996_v22 }
 0x50a   : > { %v3623_v34 = vand.u32 65535, %v3619_v39  ;;  %v3624_v37 = vshrl.u32 %v3619_v39, 16  ;;  %v3622_v40 = vshrl.u32 %v8874_v26, 16  ;;  %v4007_v44 = vsel %vm3884_vm6, %v4006_v29, %v8094_v16  ;;  %v8886_v39 = vld [vmem:[#allocation19_spill] sm:$0xff] }
 0x50b   : > { %v3514_v62 = vsel %vm3512_vm14, %v3513_v25, %v3509_v42  ;;  %v3646_v53 = vshrl.u32 %v3615_v49, 16  ;;  %v8877_v13 = vor.u32 %v8875_v38, %v8876_v58  ;;  %vm8879_vm7 = vcmp.lt.s32.totalorder %v8878_v55, 4  ;;  %v8885_v25 = vld [vmem:[#allocation60_spill] sm:$0xff]  ;;  %v8887_v38 = vld [vmem:[#allocation58_spill] sm:$0xff] }
 0x50c   : > { %v3995_v20 = vor.u32 %v3994_v47, %v3993_v59  ;;  %v3998_v48 = vshll.u32 %v3997_v61, 23  ;;  %v3515_v56 = vadd.s32 %v3514_v62, %v3510_v28  ;;  %v8880_v46 = vand.u32 2147483647, %v8867_v41 }
 0x50d   : > { %v3307_v5 = vsel %vm8879_vm7, %v8877_v13, 1326507024  ;;  %v3626_v54 = vmul.u32 %v3624_v37, %v8883_v4  ;;  %v3627_v16 = vmul.u32 %v3623_v34, %v3622_v40  ;;  %v3648_v1 = vmul.u32 %v3646_v53, %v8883_v4 }
 0x50e   : > { %vm8157_vm4 = vcmp.le.f32.partialorder %v8880_v46, 0.7853982  ;;  %v3999_v57 = vor.u32 4788187, %v3998_v48  ;;  %v3516_v7 = vadd.s32 536870912, %v3515_v56  ;;  %v3649_v32 = vmul.u32 %v3645_v3, %v3622_v40  ;;  %v8889_v46 = vld [vmem:[#allocation59_spill] sm:$0xff] }
 0x50f   : > { %v4009_v19 = vsel %vm8157_vm4, 0, %v4007_v44  ;;  %v3588_v23 = vshrl.u32 %v8660_v50, %v8884_v21  ;;  %v3625_v14 = vmul.u32 %v3623_v34, %v8883_v4  ;;  %v3629_v33 = vshll.u32 %v3626_v54, 16 }
 0x510   : > { %v3647_v2 = vmul.u32 %v3645_v3, %v8883_v4  ;;  %v4000_v12 = vand.u32 2147483647, %v3999_v57  ;;  %v4002_v30 = vcvt.s32.f32 %v3995_v20  ;;  %v8169_v51 = vshrl.u32 %v3516_v7, 30 }
 0x511   : > { %v3651_v18 = vshll.u32 %v3648_v1, 16  ;;  %v3628_v8 = vmul.u32 %v3624_v37, %v3622_v40  ;;  %v3631_v60 = vshll.u32 %v3627_v16, 16  ;;  %vm3633_vm5 = vc.u32 %v3625_v14, %v3629_v33 }
 0x512   : > { %v3635_v11 = vadd.s32 %v3629_v33, %v3625_v14  ;;  %v4003_v0 = vmul.f32 %v4002_v30, %v4000_v12  ;;  %v3518_v24 = vshll.u32 %v8169_v51, 30  ;;  %v3634_v9 = vsel %vm3633_vm5, 1, %v8659_v35 }
 0x513   : > { %v3653_v43 = vshll.u32 %v3649_v32, 16  ;;  %v3636_v10 = vadd.s32 %v3634_v9, %v3628_v8  ;;  %vm3655_vm2 = vc.u32 %v3647_v2, %v3651_v18  ;;  %v3657_v29 = vadd.s32 %v3651_v18, %v3647_v2 }
 0x514   : > { %vm3637_vm8 = vc.u32 %v3635_v11, %v3631_v60  ;;  %v4004_v42 = vxor.u32 2147483648, %v4003_v0  ;;  %v8173_v6 = vsub.s32 %v3515_v56, %v3518_v24  ;;  %v3650_v49 = vmul.u32 %v3646_v53, %v3622_v40 }
 0x515   : > { %v3638_v15 = vsel %vm3637_vm8, 1, %v8659_v35  ;;  %v3630_v52 = vshrl.u32 %v3626_v54, 16  ;;  %v3656_v31 = vsel %vm3655_vm2, 1, %v8659_v35  ;;  %vm3659_vm13 = vc.u32 %v3657_v29, %v3653_v43  ;;  %v8890_v54 = vld [vmem:[#allocation42_spill] sm:$0xff] }
 0x516   : > { %v3640_v22 = vadd.s32 %v3638_v15, %v3636_v10  ;;  %v4005_v28 = vsel %vm3884_vm6, %v4004_v42, %v4003_v0  ;;  %vm3520_vm15 = vcmp.lt.s32.totalorder %v8173_v6, 0  ;;  %v3521_v59 = vsub.s32 0, %v8173_v6 }
 0x517   : > { %v3609_v27 = vsel %vm3607_vm0, %v8885_v25, 2102212464  ;;  %vm3419_vm12 = vcmp.lt.s32.totalorder %v8886_v39, 0  ;;  %v4008_v3 = vsel %vm8157_vm4, %v8867_v41, %v4005_v28  ;;  %v3658_v61 = vadd.s32 %v3656_v31, %v3650_v49  ;;  %v8896_v31 = vld [vmem:[#allocation16_spill] sm:$0xff] }
 0x518   : > { %v3641_v47 = vadd.s32 %v3640_v22, %v3630_v52  ;;  %v3660_v34 = vsel %vm3659_vm13, 1, %v8659_v35  ;;  %v4010_v37 = vmul.f32 %v4008_v3, %v4008_v3  ;;  %v4026_v40 = vadd.s32 3, %v4009_v19 }
 0x519   : > { %v3522_v44 = vsel %vm3520_vm15, %v3521_v59, %v8173_v6  ;;  %v3632_v62 = vshrl.u32 %v3627_v16, 16  ;;  %vm8888_vm6 = vcmp.lt.s32.totalorder %v8859_v63, 1  ;;  %v3652_v13 = vshrl.u32 %v3648_v1, 16 }
 0x51a   : > { %v3523_v53 = vclz %v3522_v44  ;;  %v3608_v58 = vsel %vm8888_vm6, %v3588_v23, %v8887_v38  ;;  %v3662_v20 = vadd.s32 %v3660_v34, %v3658_v61  ;;  %v4011_v48 = vmul.f32 -0.001358992, %v4010_v37 }
 0x51b   : > { %v4018_v56 = vmul.f32 -0.00019511016, %v4010_v37  ;;  %v3610_v36 = vsel %vm3606_vm10, %v8889_v46, %v3609_v27  ;;  %v8196_v4 = vadd.s32 %v3641_v47, %v3632_v62  ;;  %vm8891_vm0 = vcmp.lt.s32.totalorder %v8878_v55, 3 }
 0x51c   : > { %v8201_v57 = vsel %vm8891_vm0, %v8890_v54, %v3307_v5  ;;  %v4640_v16 = vadd.s32 4294967294, %v3523_v53  ;;  %v3654_v19 = vshrl.u32 %v3649_v32, 16  ;;  %v3663_v7 = vadd.s32 %v3662_v20, %v3652_v13  ;;  %v8899_v20 = vld [vmem:[#allocation26_spill] sm:$0xff] }
 0x51d   : > { %v4012_v21 = vadd.f32 0.041655596, %v4011_v48  ;;  %v4019_v23 = vadd.f32 0.008332121, %v4018_v56  ;;  %v3541_v1 = vsub.s32 4, %v8169_v51  ;;  %v8204_v14 = vadd.s32 %v3657_v29, %v3653_v43 }
 0x51e   : > { %v4027_v33 = vand.u32 3, %v4026_v40  ;;  %vm4641_vm1 = vcmp.lt.s32.totalorder %v4640_v16, 0  ;;  %v3611_v2 = vsel %vm3605_vm11, %v3608_v58, %v3610_v36  ;;  %v3664_v12 = vadd.s32 %v3663_v7, %v3654_v19  ;;  %v8898_v58 = vld [vmem:[#allocation13_spill] sm:$0xff]  ;;  %v8901_v19 = vld [vmem:[#allocation23_spill] sm:$0xff] }
 0x51f   : > { %v4013_v30 = vmul.f32 %v4012_v21, %v4010_v37  ;;  %v4020_v18 = vmul.f32 %v4019_v23, %v4010_v37  ;;  %v3526_v8 = vsel %vm4641_vm1, 0, %v4640_v16  ;;  %vm3667_vm10 = vc.u32 %v8196_v4, %v8204_v14  ;;  %v8900_v16 = vld [vmem:[#allocation27_spill] sm:$0xff] }
 0x520   : > { %v3511_v5 = vadd.s32 %v8130_v17, %v8122_v45  ;;  %v3527_v32 = vsub.s32 32, %v3526_v8  ;;  %v3531_v60 = vsub.s32 4294967266, %v3526_v8  ;;  %v3668_v11 = vadd.s32 1, %v3664_v12  ;;  %v8892_v45 = vld [vmem:[#allocation29_spill] sm:$0xff] }
 0x521   : > { %v4014_v0 = vadd.f32 -0.4999988, %v4013_v30  ;;  %v4021_v24 = vadd.f32 -0.16666654, %v4020_v18  ;;  %v3542_v63 = vsel %vm3419_vm12, %v3541_v1, %v8169_v51  ;;  %v3665_v9 = vmul.u32 %v8874_v26, %v3611_v2 }
 0x522   : > { %v3528_v43 = vshll.u32 %v8173_v6, %v3526_v8  ;;  %v3529_v10 = vshrl.u32 %v3511_v5, %v3527_v32  ;;  %v3532_v29 = vadd.s32 127, %v3531_v60  ;;  %v3669_v42 = vsel %vm3667_vm10, %v3668_v11, %v3664_v12  ;;  %v8897_v6 = vld [vmem:[#allocation17_spill] sm:$0xff] }
 0x523   : > { %v4015_v15 = vmul.f32 %v4014_v0, %v4010_v37  ;;  %v4022_v49 = vmul.f32 %v4021_v24, %v4010_v37  ;;  %v3670_v52 = vadd.s32 %v3669_v42, %v3665_v9  ;;  %vm3140_vm3 = vcmp.lt.s32.totalorder %v8892_v45, 2  ;;  %v8902_v9 = vld [vmem:[#allocation21_spill] sm:$0xff] }
 0x524   : > { %vm4025_vm9 = vweird.f32 %v8867_v41  ;;  %v8893_v17 = vand.u32 2147483647, %v8886_v39  ;;  %v3530_v51 = vor.u32 %v3529_v10, %v3528_v43  ;;  %v3533_v26 = vshll.u32 %v3532_v29, 23 }
 0x525   : > { %v3154_v28 = vsel %vm3140_vm3, %v8897_v6, %v8896_v31  ;;  %v4016_v59 = vadd.f32 1.0, %v4015_v15  ;;  %v4023_v25 = vadd.f32 1.0, %v4022_v49  ;;  %v3671_v27 = vadd.s32 536870912, %v3670_v52 }
 0x526   : > { %vm8221_vm11 = vcmp.le.f32.partialorder %v8893_v17, 0.7853982  ;;  %v3158_v47 = vand.u32 65535, %v3154_v28  ;;  %vm4028_vm14 = vcmp.lt.s32.totalorder %v4027_v33, 2  ;;  %v3534_v61 = vor.u32 4788187, %v3533_v26 }
 0x527   : > { %v3544_v34 = vsel %vm8221_vm11, 0, %v3542_v63  ;;  %v3159_v37 = vshrl.u32 %v3154_v28, 16  ;;  %v4024_v40 = vmul.f32 %v4023_v25, %v4008_v3  ;;  %vm4029_vm7 = vcmp.eq.s32.totalorder %v4027_v33, 0  ;;  %v8904_v17 = vld [vmem:[#allocation9_spill] sm:$0xff] }
 0x528   : > { %v4033_v44 = vxor.u32 2147483648, %v4016_v59  ;;  %v8231_v62 = vshrl.u32 %v3671_v27, 30  ;;  %v3535_v53 = vand.u32 2147483647, %v3534_v61  ;;  %v3537_v38 = vcvt.s32.f32 %v3530_v51  ;;  %v8907_v27 = vld [vmem:[#allocation20_spill] sm:$0xff] }
 0x529   : > { %v3161_v13 = vmul.u32 %v3159_v37, %v8898_v58  ;;  %v8235_v48 = vmul.u32 %v3158_v47, %v8899_v20  ;;  %v4030_v56 = vxor.u32 2147483648, %v4024_v40  ;;  %vm4032_vm4 = vcmp.eq.s32.totalorder %v4027_v33, 2 }
 0x52a   : > { %v3561_v46 = vadd.s32 3, %v3544_v34  ;;  %v3673_v36 = vshll.u32 %v8231_v62, 30  ;;  %v3538_v54 = vmul.f32 %v3537_v38, %v3535_v53  ;;  %v3150_v3 = vsel %vm3140_vm3, %v8901_v19, %v8900_v16 }
 0x52b   : > { %v3160_v7 = vmul.u32 %v3158_v47, %v8898_v58  ;;  %v3164_v21 = vshll.u32 %v3161_v13, 16  ;;  %v4031_v23 = vsel %vm4029_vm7, %v4016_v59, %v4030_v56  ;;  %v4034_v1 = vsel %vm4032_vm4, %v4033_v44, %v4024_v40  ;;  %v8905_v59 = vld [vmem:[#allocation18_spill] sm:$0xff]  ;;  %v8909_v56 = vld [vmem:[#allocation24_spill] sm:$0xff] }
 0x52c   : > { %v8243_v2 = vsub.s32 %v3670_v52, %v3673_v36  ;;  %v3163_v12 = vmul.u32 %v3159_v37, %v8899_v20  ;;  %v4035_v30 = vsel %vm4028_vm14, %v4031_v23, %v4034_v1  ;;  %v3539_v18 = vxor.u32 2147483648, %v3538_v54 }
 0x52d   : > { %v3166_v8 = vshll.u32 %v8235_v48, 16  ;;  %vm3168_vm5 = vc.u32 %v3160_v7, %v3164_v21  ;;  %v4036_v5 = vsel %vm4025_vm9, nan, %v4035_v30  ;;  %v3170_v33 = vadd.s32 %v3164_v21, %v3160_v7 }
 0x52e   : > { %vm3675_vm8 = vcmp.lt.s32.totalorder %v8243_v2, 0  ;;  %v3676_v32 = vsub.s32 0, %v8243_v2  ;;  %v3169_v60 = vsel %vm3168_vm5, 1, %v8659_v35  ;;  %4352 = vst [vmem:[%s8029_s22 + $0x28] sm:$0xff] %v4036_v5  ;;  %4398 = vmatpush.msra.mxu3 %v4036_v5  ;;  %v3540_v11 = vsel %vm3419_vm12, %v3539_v18, %v3538_v54 }
 0x52f   : > { %v3171_v0 = vadd.s32 %v3169_v60, %v3163_v12  ;;  %v3181_v24 = vshrl.u32 %v3150_v3, 16  ;;  %v8259_v63 = vsel %vm8221_vm11, %v8886_v39, %v3540_v11  ;;  %vm8903_vm2 = vcmp.lt.s32.totalorder %v8892_v45, 4 }
 0x530   : > { %v3677_v41 = vsel %vm3675_vm8, %v3676_v32, %v8243_v2  ;;  %v3144_v43 = vsel %vm8903_vm2, %v8902_v9, 2102212464  ;;  %v3180_v10 = vand.u32 65535, %v3150_v3  ;;  %v3545_v29 = vmul.f32 %v8259_v63, %v8259_v63 }
 0x531   : > { %v3678_v42 = vclz %v3677_v41  ;;  %vm3172_vm13 = vc.u32 %v3170_v33, %v3166_v8  ;;  %v3183_v15 = vmul.u32 %v3181_v24, %v8898_v58  ;;  %v8268_v49 = vand.u32 3, %v3561_v46 }
 0x532   : > { %v3666_v52 = vadd.s32 %v8204_v14, %v8196_v4  ;;  %v3123_v22 = vshrl.u32 %v8660_v50, %v8904_v17  ;;  %v3173_v51 = vsel %vm3172_vm13, 1, %v8659_v35  ;;  %v3546_v26 = vmul.f32 -0.001358992, %v3545_v29 }
 0x533   : > { %v3553_v31 = vmul.f32 -0.00019511016, %v3545_v29  ;;  %v4643_v6 = vadd.s32 4294967294, %v3678_v42  ;;  %v3175_v28 = vadd.s32 %v3173_v51, %v3171_v0  ;;  %vm8906_vm15 = vcmp.lt.s32.totalorder %v8892_v45, 1 }
 0x534   : > { %v3143_v25 = vsel %vm8906_vm15, %v3123_v22, %v8905_v59  ;;  %vm8908_vm12 = vcmp.lt.s32.totalorder %v8892_v45, 3  ;;  %v3184_v61 = vmul.u32 %v3180_v10, %v8899_v20  ;;  %v3186_v4 = vshll.u32 %v3183_v15, 16  ;;  %v8914_v59 = vld [vmem:[#allocation53_spill] sm:$0xff] }
 0x535   : > { %v3145_v47 = vsel %vm8908_vm12, %v8907_v27, %v3144_v43  ;;  %v3547_v14 = vadd.f32 0.041655596, %v3546_v26  ;;  %v3554_v34 = vadd.f32 0.008332121, %v3553_v31  ;;  %vm4644_vm6 = vcmp.lt.s32.totalorder %v4643_v6, 0 }
 0x536   : > { %v3165_v37 = vshrl.u32 %v3161_v13, 16  ;;  %v3681_v40 = vsel %vm4644_vm6, 0, %v4643_v6  ;;  %v3696_v44 = vsub.s32 4, %v8231_v62  ;;  %v3182_v53 = vmul.u32 %v3180_v10, %v8898_v58  ;;  %v8913_v6 = vld [vmem:[#allocation8_spill] sm:$0xff] }
 0x537   : > { %v3185_v38 = vmul.u32 %v3181_v24, %v8899_v20  ;;  %vm3574_vm0 = vcmp.lt.s32.totalorder %v8909_v56, 0  ;;  %v3548_v46 = vmul.f32 %v3547_v14, %v3545_v29  ;;  %v3555_v36 = vmul.f32 %v3554_v34, %v3545_v29 }
 0x538   : > { %v3682_v54 = vsub.s32 32, %v3681_v40  ;;  %v3176_v16 = vadd.s32 %v3175_v28, %v3165_v37  ;;  %v3686_v19 = vsub.s32 4294967266, %v3681_v40  ;;  %v3188_v3 = vshll.u32 %v3184_v61, 16 }
 0x539   : > { %vm3190_vm1 = vc.u32 %v3182_v53, %v3186_v4  ;;  %v3192_v7 = vadd.s32 %v3186_v4, %v3182_v53  ;;  %v3549_v21 = vadd.f32 -0.4999988, %v3548_v46  ;;  %v3556_v23 = vadd.f32 -0.16666654, %v3555_v36  ;;  %v8917_v46 = vld [vmem:[#allocation35_spill] sm:$0xff] }
 0x53a   : > { %v3684_v13 = vshrl.u32 %v3666_v52, %v3682_v54  ;;  %v3191_v1 = vsel %vm3190_vm1, 1, %v8659_v35  ;;  %v3683_v12 = vshll.u32 %v8243_v2, %v3681_v40  ;;  %v3687_v58 = vadd.s32 127, %v3686_v19 }
 0x53b   : > { %v3193_v30 = vadd.s32 %v3191_v1, %v3185_v38  ;;  %vm3194_vm10 = vc.u32 %v3192_v7, %v3188_v3  ;;  %v3550_v20 = vmul.f32 %v3549_v21, %v3545_v29  ;;  %v3557_v18 = vmul.f32 %v3556_v23, %v3545_v29 }
 0x53c   : > { %vm3563_vm9 = vcmp.lt.s32.totalorder %v8268_v49, 2  ;;  %v8910_v8 = vand.u32 2147483647, %v8909_v56  ;;  %v3167_v32 = vshrl.u32 %v8235_v48, 16  ;;  %v3195_v60 = vsel %vm3194_vm10, 1, %v8659_v35 }
 0x53d   : > { %vm3560_vm14 = vweird.f32 %v8886_v39  ;;  %v3685_v2 = vor.u32 %v3684_v13, %v3683_v12  ;;  %v3688_v11 = vshll.u32 %v3687_v58, 23  ;;  %v3187_v33 = vshrl.u32 %v3183_v15, 16 }
 0x53e   : > { %vm8291_vm11 = vcmp.le.f32.partialorder %v8910_v8, 0.7853982  ;;  %v3197_v0 = vadd.s32 %v3195_v60, %v3193_v30  ;;  %v3551_v24 = vadd.f32 1.0, %v3550_v20  ;;  %v3558_v41 = vadd.f32 1.0, %v3557_v18 }
 0x53f   : > { %vm3564_vm7 = vcmp.eq.s32.totalorder %v8268_v49, 0  ;;  %v8299_v9 = vadd.s32 %v3176_v16, %v3167_v32  ;;  %v3689_v43 = vor.u32 4788187, %v3688_v11  ;;  %v3146_v10 = vsel %vm3140_vm3, %v3143_v25, %v3145_v47  ;;  %v8915_v25 = vld [vmem:[#allocation51_spill] sm:$0xff] }
 0x540   : > { %v3189_v29 = vshrl.u32 %v3184_v61, 16  ;;  %v3198_v48 = vadd.s32 %v3197_v0, %v3187_v33  ;;  %v3559_v42 = vmul.f32 %v3558_v41, %v8259_v63  ;;  %vm3567_vm4 = vcmp.eq.s32.totalorder %v8268_v49, 2  ;;  %v8918_v49 = vld [vmem:[#allocation37_spill] sm:$0xff] }
 0x541   : > { %v3568_v52 = vxor.u32 2147483648, %v3551_v24  ;;  %v8305_v17 = vadd.s32 %v3192_v7, %v3188_v3  ;;  %v3690_v15 = vand.u32 2147483647, %v3689_v43  ;;  %v3692_v22 = vcvt.s32.f32 %v3685_v2 }
 0x542   : > { %v3697_v51 = vsel %vm3574_vm0, %v3696_v44, %v8231_v62  ;;  %v3199_v26 = vadd.s32 %v3198_v48, %v3189_v29  ;;  %v3565_v31 = vxor.u32 2147483648, %v3559_v42  ;;  %v3200_v45 = vmul.u32 %v8913_v6, %v3146_v10  ;;  %v8916_v62 = vld [vmem:[#allocation52_spill] sm:$0xff] }
 0x543   : > { %vm3202_vm3 = vc.u32 %v8299_v9, %v8305_v17  ;;  %vm3295_vm5 = vcmp.lt.s32.totalorder %v8878_v55, 2  ;;  %v3693_v63 = vmul.f32 %v3692_v22, %v3690_v15  ;;  %v3569_v4 = vsel %vm3567_vm4, %v3568_v52, %v3559_v42 }
 0x544   : > { %v3203_v28 = vadd.s32 1, %v3199_v26  ;;  %v8318_v27 = vsel %vm3295_vm5, %v8915_v25, %v8914_v59  ;;  %v3309_v47 = vsel %vm3295_vm5, %v8916_v62, %v8201_v57  ;;  %v3566_v61 = vsel %vm3564_vm7, %v3551_v24, %v3565_v31  ;;  %v8921_v62 = vld [vmem:[#allocation34_spill] sm:$0xff] }
 0x545   : > { %v3313_v14 = vand.u32 65535, %v3309_v47  ;;  %v3314_v34 = vshrl.u32 %v3309_v47, 16  ;;  %v3570_v37 = vsel %vm3563_vm9, %v3566_v61, %v3569_v4  ;;  %v3694_v40 = vxor.u32 2147483648, %v3693_v63 }
 0x546   : > { %v3699_v44 = vsel %vm8291_vm11, 0, %v3697_v51  ;;  %v3204_v53 = vsel %vm3202_vm3, %v3203_v28, %v3199_v26  ;;  %v3571_v38 = vsel %vm3560_vm14, nan, %v3570_v37  ;;  %v3336_v54 = vshrl.u32 %v8318_v27, 16  ;;  %v8919_v51 = vld [vmem:[#allocation47_spill] sm:$0xff] }
 0x547   : > { %v3205_v57 = vadd.s32 %v3204_v53, %v3200_v45  ;;  %v3316_v36 = vmul.u32 %v3314_v34, %v8917_v46  ;;  %4349 = vst [vmem:[%s8029_s22 + $0x10] sm:$0xff] %v3571_v38  ;;  %4379 = vmatpush.msra.mxu2 %v3571_v38  ;;  %v3695_v16 = vsel %vm3574_vm0, %v3694_v40, %v3693_v63  ;;  %v3716_v13 = vadd.s32 3, %v3699_v44  ;;  %v8922_v44 = vld [vmem:[#allocation45_spill] sm:$0xff]  ;;  %v8924_v38 = vld [vmem:[#allocation46_spill] sm:$0xff] }
 0x548   : > { %v8340_v19 = vmul.u32 %v3313_v14, %v8918_v49  ;;  %v3698_v3 = vsel %vm8291_vm11, %v8909_v56, %v3695_v16  ;;  %v3315_v39 = vmul.u32 %v3313_v14, %v8917_v46  ;;  %v3335_v12 = vand.u32 65535, %v8318_v27 }
 0x549   : > { %v3206_v7 = vadd.s32 536870912, %v3205_v57  ;;  %v3319_v21 = vshll.u32 %v3316_v36, 16  ;;  %v3700_v23 = vmul.f32 %v3698_v3, %v3698_v3  ;;  %v8351_v20 = vmul.u32 %v3336_v54, %v8917_v46 }
 0x54a   : > { %v3321_v1 = vshll.u32 %v8340_v19, 16  ;;  %v3318_v5 = vmul.u32 %v3314_v34, %v8918_v49  ;;  %v3717_v33 = vand.u32 3, %v3716_v13  ;;  %v3339_v43 = vmul.u32 %v3335_v12, %v8918_v49 }
 0x54b   : > { %v8348_v58 = vshrl.u32 %v3206_v7, 30  ;;  %vm3323_vm8 = vc.u32 %v3315_v39, %v3319_v21  ;;  %v3325_v30 = vadd.s32 %v3319_v21, %v3315_v39  ;;  %v3701_v18 = vmul.f32 -0.001358992, %v3700_v23 }
 0x54c   : > { %v3708_v8 = vmul.f32 -0.00019511016, %v3700_v23  ;;  %v3324_v32 = vsel %vm3323_vm8, 1, %v8659_v35  ;;  %v3341_v10 = vshll.u32 %v8351_v20, 16  ;;  %v3337_v52 = vmul.u32 %v3335_v12, %v8917_v46 }
 0x54d   : > { %v3208_v60 = vshll.u32 %v8348_v58, 30  ;;  %vm3327_vm2 = vc.u32 %v3325_v30, %v3321_v1  ;;  %v3702_v2 = vadd.f32 0.041655596, %v3701_v18  ;;  %v3326_v0 = vadd.s32 %v3324_v32, %v3318_v5 }
 0x54e   : > { %v3709_v11 = vadd.f32 0.008332121, %v3708_v8  ;;  %v3328_v41 = vsel %vm3327_vm2, 1, %v8659_v35  ;;  %vm8920_vm15 = vcmp.lt.s32.totalorder %v8878_v55, 4  ;;  %vm3719_vm12 = vcmp.eq.s32.totalorder %v3717_v33, 0 }
 0x54f   : > { %v8356_v24 = vsub.s32 %v3205_v57, %v3208_v60  ;;  %v3703_v29 = vmul.f32 %v3702_v2, %v3700_v23  ;;  %v3299_v26 = vsel %vm8920_vm15, %v8919_v51, 2102212464  ;;  %v3330_v31 = vadd.s32 %v3328_v41, %v3326_v0  ;;  %v8926_v0 = vld [vmem:[#allocation30_spill] sm:$0xff] }
 0x550   : > { %v3710_v48 = vmul.f32 %v3709_v11, %v3700_v23  ;;  %v3343_v45 = vshll.u32 %v3339_v43, 16  ;;  %vm3345_vm6 = vc.u32 %v3337_v52, %v3341_v10  ;;  %v3347_v63 = vadd.s32 %v3341_v10, %v3337_v52 }
 0x551   : > { %vm3210_vm13 = vcmp.lt.s32.totalorder %v8356_v24, 0  ;;  %v3211_v42 = vsub.s32 0, %v8356_v24  ;;  %v3704_v15 = vadd.f32 -0.4999988, %v3703_v29  ;;  %vm3718_vm0 = vcmp.lt.s32.totalorder %v3717_v33, 2 }
 0x552   : > { %v3711_v22 = vadd.f32 -0.16666654, %v3710_v48  ;;  %v3320_v27 = vshrl.u32 %v3316_v36, 16  ;;  %vm3715_vm1 = vweird.f32 %v8909_v56  ;;  %v3278_v47 = vshrl.u32 %v8660_v50, %v8921_v62  ;;  %v8927_v56 = vld [vmem:[#allocation11_spill] sm:$0xff] }
 0x553   : > { %v3212_v6 = vsel %vm3210_vm13, %v3211_v42, %v8356_v24  ;;  %v3705_v28 = vmul.f32 %v3704_v15, %v3700_v23  ;;  %v3340_v61 = vmul.u32 %v3336_v54, %v8918_v49  ;;  %v3346_v4 = vsel %vm3345_vm6, 1, %v8659_v35 }
 0x554   : > { %v3712_v59 = vmul.f32 %v3711_v22, %v3700_v23  ;;  %v3213_v25 = vclz %v3212_v6  ;;  %vm3349_vm10 = vc.u32 %v3347_v63, %v3343_v45  ;;  %v3331_v40 = vadd.s32 %v3330_v31, %v3320_v27 }
 0x555   : > { %v3706_v14 = vadd.f32 1.0, %v3705_v28  ;;  %vm8923_vm9 = vcmp.lt.s32.totalorder %v8878_v55, 1  ;;  %vm8925_vm11 = vcmp.lt.s32.totalorder %v8878_v55, 3  ;;  %v3348_v46 = vadd.s32 %v3346_v4, %v3340_v61 }
 0x556   : > { %v3713_v34 = vadd.f32 1.0, %v3712_v59  ;;  %v4634_v37 = vadd.s32 4294967294, %v3213_v25  ;;  %v3298_v53 = vsel %vm8923_vm9, %v3278_v47, %v8922_v44  ;;  %v3300_v57 = vsel %vm8925_vm11, %v8924_v38, %v3299_v26 }
 0x557   : > { %v3350_v50 = vsel %vm3349_vm10, 1, %v8659_v35  ;;  %v3723_v54 = vxor.u32 2147483648, %v3706_v14  ;;  %v3322_v16 = vshrl.u32 %v8340_v19, 16  ;;  %vm3722_vm7 = vcmp.eq.s32.totalorder %v3717_v33, 2 }
 0x558   : > { %v3714_v36 = vmul.f32 %v3713_v34, %v3698_v3  ;;  %vm4635_vm14 = vcmp.lt.s32.totalorder %v4634_v37, 0  ;;  %v3342_v7 = vshrl.u32 %v8351_v20, 16  ;;  %v3352_v39 = vadd.s32 %v3350_v50, %v3348_v46 }
 0x559   : > { %v3216_v49 = vsel %vm4635_vm14, 0, %v4634_v37  ;;  %v3201_v23 = vadd.s32 %v8305_v17, %v8299_v9  ;;  %v3332_v1 = vadd.s32 %v3331_v40, %v3322_v16  ;;  %v3301_v35 = vsel %vm3295_vm5, %v3298_v53, %v3300_v57 }
 0x55a   : > { %v3720_v21 = vxor.u32 2147483648, %v3714_v36  ;;  %v3217_v13 = vsub.s32 32, %v3216_v49  ;;  %v3221_v12 = vsub.s32 4294967266, %v3216_v49  ;;  %v3344_v3 = vshrl.u32 %v3339_v43, 16 }
 0x55b   : > { %v3353_v30 = vadd.s32 %v3352_v39, %v3342_v7  ;;  %v3724_v18 = vsel %vm3722_vm7, %v3723_v54, %v3714_v36  ;;  %v3351_v5 = vadd.s32 %v3347_v63, %v3343_v45  ;;  %v3218_v32 = vshll.u32 %v8356_v24, %v3216_v49 }
 0x55c   : > { %v3721_v19 = vsel %vm3719_vm12, %v3706_v14, %v3720_v21  ;;  %v3219_v8 = vshrl.u32 %v3201_v23, %v3217_v13  ;;  %v3222_v60 = vadd.s32 127, %v3221_v12  ;;  %v3355_v41 = vmul.u32 %v8926_v0, %v3301_v35 }
 0x55d   : > { %v3725_v20 = vsel %vm3718_vm0, %v3721_v19, %v3724_v18  ;;  %v3354_v9 = vadd.s32 %v3353_v30, %v3344_v3  ;;  %vm3357_vm4 = vc.u32 %v3332_v1, %v3351_v5  ;;  %vm3109_vm3 = vcmp.lt.s32.totalorder %v8927_v56, 0 }
 0x55e   : > { %v3726_v17 = vsel %vm3715_vm1, nan, %v3725_v20  ;;  %v3220_v55 = vor.u32 %v3219_v8, %v3218_v32  ;;  %v3223_v2 = vshll.u32 %v3222_v60, 23  ;;  %v8928_v51 = vand.u32 2147483647, %v8927_v56  ;;  %v4355_v60 = vld [vmem:[%s8479_s5] sm:$0x7] }
 0x55f   : > { %4350 = vst [vmem:[%s8029_s22 + $0x18] sm:$0xff] %v3726_v17  ;;  %4399 = vmatpush.msra.mxu3 %v3726_v17  ;;  %v3358_v11 = vadd.s32 1, %v3354_v9  ;;  %v3231_v6 = vsub.s32 4, %v8348_v58  ;;  %v3356_v54 = vadd.s32 %v3351_v5, %v3332_v1  ;;  %vm3250_vm6 = vweird.f32 %v8927_v56 }
 0x560   : > { %v3224_v43 = vor.u32 4788187, %v3223_v2  ;;  %v3227_v48 = vcvt.s32.f32 %v3220_v55  ;;  %vm8399_vm5 = vcmp.le.f32.partialorder %v8928_v51, 0.7853982  ;;  %vm8931_vm0 = vcmask 261120   ;;  %v8932_v2 = vld [vmem:[#allocation28_spill] sm:$0xff] }
 0x561   : > { %v3359_v10 = vsel %vm3357_vm4, %v3358_v11, %v3354_v9  ;;  %v3232_v62 = vsel %vm3109_vm3, %v3231_v6, %v8348_v58  ;;  %vm3264_vm1 = vcmp.lt.s32.totalorder %v8932_v2, 0  ;;  %v8933_v11 = vand.u32 2147483647, %v8932_v2  ;;  %vm8934_vm4 = vmmov %vm8931_vm0 }
 0x562   : > { %v3360_v29 = vadd.s32 %v3359_v10, %v3355_v41  ;;  %v3225_v33 = vand.u32 2147483647, %v3224_v43  ;;  %v3234_v34 = vsel %vm8399_vm5, 0, %v3232_v62  ;;  %vm3405_vm7 = vweird.f32 %v8932_v2 }
 0x563   : > { %v3251_v57 = vadd.s32 3, %v3234_v34  ;;  %vm3263_vm10 = vcmp.le.f32.partialorder %v8933_v11, 0.7853982 }
 0x564   : > { %v3361_v42 = vadd.s32 536870912, %v3360_v29  ;;  %v3228_v24 = vmul.f32 %v3227_v48, %v3225_v33 }
 0x565   : > { %v3252_v21 = vand.u32 3, %v3251_v57 }
 0x566   : > { %v8393_v52 = vshrl.u32 %v3361_v42, 30  ;;  %v3229_v15 = vxor.u32 2147483648, %v3228_v24 }
 0x567   : > { %vm3254_vm13 = vcmp.eq.s32.totalorder %v3252_v21, 0  ;;  %vm3257_vm15 = vcmp.eq.s32.totalorder %v3252_v21, 2  ;;  %vm3253_vm12 = vcmp.lt.s32.totalorder %v3252_v21, 2 }
 0x568   : > { %v3363_v22 = vshll.u32 %v8393_v52, 30  ;;  %v3230_v31 = vsel %vm3109_vm3, %v3229_v15, %v3228_v24  ;;  %v3386_v41 = vsub.s32 4, %v8393_v52 }
 0x569   : > { %v3233_v45 = vsel %vm8399_vm5, %v8927_v56, %v3230_v31 }
 0x56a   : > { %v3364_v63 = vsub.s32 %v3360_v29, %v3363_v22  ;;  %v3235_v28 = vmul.f32 %v3233_v45, %v3233_v45  ;;  %v3387_v48 = vsel %vm3264_vm1, %v3386_v41, %v8393_v52 }
 0x56b   : > { %v3389_v15 = vsel %vm3263_vm10, 0, %v3387_v48 }
 0x56c   : > { %vm3365_vm8 = vcmp.lt.s32.totalorder %v3364_v63, 0  ;;  %v3366_v59 = vsub.s32 0, %v3364_v63  ;;  %v3236_v25 = vmul.f32 -0.001358992, %v3235_v28  ;;  %v3243_v27 = vmul.f32 -0.00019511016, %v3235_v28 }
 0x56d   : > { %v3406_v31 = vadd.s32 3, %v3389_v15 }
 0x56e   : > { %v3367_v47 = vsel %vm3365_vm8, %v3366_v59, %v3364_v63  ;;  %v3237_v61 = vadd.f32 0.041655596, %v3236_v25  ;;  %v3244_v4 = vadd.f32 0.008332121, %v3243_v27 }
 0x56f   : > { %v3368_v14 = vclz %v3367_v47  ;;  %v3407_v59 = vand.u32 3, %v3406_v31 }
 0x570   : > { %v3238_v37 = vmul.f32 %v3237_v61, %v3235_v28  ;;  %v3245_v40 = vmul.f32 %v3244_v4, %v3235_v28 }
 0x571   : > { %v4637_v44 = vadd.s32 4294967294, %v3368_v14  ;;  %vm3409_vm9 = vcmp.eq.s32.totalorder %v3407_v59, 0  ;;  %vm3412_vm11 = vcmp.eq.s32.totalorder %v3407_v59, 2  ;;  %vm3408_vm14 = vcmp.lt.s32.totalorder %v3407_v59, 2 }
 0x572   : > { %v3239_v53 = vadd.f32 -0.4999988, %v3238_v37  ;;  %v3246_v38 = vadd.f32 -0.16666654, %v3245_v40 }
 0x573   : > { %vm4638_vm2 = vcmp.lt.s32.totalorder %v4637_v44, 0 }
 0x574   : > { %v3371_v46 = vsel %vm4638_vm2, 0, %v4637_v44  ;;  %v3240_v50 = vmul.f32 %v3239_v53, %v3235_v28  ;;  %v3247_v36 = vmul.f32 %v3246_v38, %v3235_v28 }
 0x575   : > { %v3372_v16 = vsub.s32 32, %v3371_v46  ;;  %v3376_v58 = vsub.s32 4294967266, %v3371_v46  ;;  %v3373_v23 = vshll.u32 %v3364_v63, %v3371_v46 }
 0x576   : > { %v3241_v49 = vadd.f32 1.0, %v3240_v50  ;;  %v3248_v7 = vadd.f32 1.0, %v3247_v36 }
 0x577   : > { %v3374_v39 = vshrl.u32 %v3356_v54, %v3372_v16  ;;  %v3377_v13 = vadd.s32 127, %v3376_v58 }
 0x578   : > { %v3249_v12 = vmul.f32 %v3248_v7, %v3233_v45  ;;  %v3258_v35 = vxor.u32 2147483648, %v3241_v49 }
 0x579   : > { %v3375_v3 = vor.u32 %v3374_v39, %v3373_v23  ;;  %v3378_v30 = vshll.u32 %v3377_v13, 23 }
 0x57a   : > { %v3255_v19 = vxor.u32 2147483648, %v3249_v12  ;;  %v3259_v1 = vsel %vm3257_vm15, %v3258_v35, %v3249_v12 }
 0x57b   : > { %v3379_v18 = vor.u32 4788187, %v3378_v30  ;;  %v3382_v32 = vcvt.s32.f32 %v3375_v3 }
 0x57c   : > { %v3256_v8 = vsel %vm3254_vm13, %v3241_v49, %v3255_v19 }
 0x57d   : > { %v3260_v5 = vsel %vm3253_vm12, %v3256_v8, %v3259_v1  ;;  %v3380_v20 = vand.u32 2147483647, %v3379_v18 }
 0x57e   : > { %v3261_v9 = vsel %vm3250_vm6, nan, %v3260_v5 }
 0x57f   : > { %4347 = vst [vmem:[%s8029_s22] sm:$0xff] %v3261_v9  ;;  %4380 = vmatpush.msra.mxu2 %v3261_v9  ;;  %v3383_v17 = vmul.f32 %v3382_v32, %v3380_v20 }
 0x580   : > { %4657 = vmatmul.msk.f32.vlgmr.msra.gmra.mxu2 %vm8931_vm0, %v4355_v60 }
 0x581   : > { %v3384_v55 = vxor.u32 2147483648, %v3383_v17 }
 0x583   : > { %v3385_v0 = vsel %vm3264_vm1, %v3384_v55, %v3383_v17 }
 0x584   : > { %v3388_v43 = vsel %vm3263_vm10, %v8932_v2, %v3385_v0 }
 0x585   : > { %v3390_v10 = vmul.f32 %v3388_v43, %v3388_v43 }
 0x587   : > { %v3391_v29 = vmul.f32 -0.001358992, %v3390_v10  ;;  %v3398_v33 = vmul.f32 -0.00019511016, %v3390_v10 }
 0x589   : > { %v3392_v42 = vadd.f32 0.041655596, %v3391_v29  ;;  %v3399_v24 = vadd.f32 0.008332121, %v3398_v33 }
 0x58b   : > { %v3393_v56 = vmul.f32 %v3392_v42, %v3390_v10  ;;  %v3400_v22 = vmul.f32 %v3399_v24, %v3390_v10 }
 0x58d   : > { %v3394_v51 = vadd.f32 -0.4999988, %v3393_v56  ;;  %v3401_v26 = vadd.f32 -0.16666654, %v3400_v22 }
 0x58f   : > { %v3395_v6 = vmul.f32 %v3394_v51, %v3390_v10  ;;  %v3402_v45 = vmul.f32 %v3401_v26, %v3390_v10 }
 0x591   : > { %v3396_v63 = vadd.f32 1.0, %v3395_v6  ;;  %v3403_v28 = vadd.f32 1.0, %v3402_v45 }
 0x593   : > { %v3404_v25 = vmul.f32 %v3403_v28, %v3388_v43  ;;  %v3413_v27 = vxor.u32 2147483648, %v3396_v63 }
 0x595   : > { %v3410_v62 = vxor.u32 2147483648, %v3404_v25  ;;  %v3414_v47 = vsel %vm3412_vm11, %v3413_v27, %v3404_v25 }
 0x597   : > { %v3411_v52 = vsel %vm3409_vm9, %v3396_v63, %v3410_v62 }
 0x598   : > { %v3415_v61 = vsel %vm3408_vm14, %v3411_v52, %v3414_v47 }
 0x599   : > { %v3416_v4 = vsel %vm3405_vm7, nan, %v3415_v61 }
 0x59a   : > { %4348 = vst [vmem:[%s8029_s22 + $0x8] sm:$0xff] %v3416_v4  ;;  %4400 = vmatpush.msra.mxu3 %v3416_v4  ;;  %s4748_s22 = scalar_lea.hbm %s8481_s7, 128 }
 0x59b   : > { %4658 = vmatmul.msk.f32.vlgmr.msra.gmra.mxu3 %vm8934_vm4, %v4355_v60  ;;  %p4750_p1 = scmp.lt.s32.totalorder %s4748_s22, %s4744_s21 }
 0x59d   : > { %p4751_p2 = por %p4750_p1, %p4749_p0 }
 0x59f   : > { %p4752_p3 = pnand %p4751_p2, %p4747_p13 }
 0x5a1   : > { %4755 = shalt.err (!%p4752_p3)
}
 0x5a2   : > { %s4831_s26 = smov 256   ;;  %s4832_s10 = smov 512   ;;  %v4360_v14 = vpop.permute.xlu0 %4359  ;;  %vm4408_vm3 = vcmask 1043456  }
 0x5a3   : > { %s4833_s12 = smov 16   ;;  %s4548_s13 = sshll.u32 %s8000_s20, 3 }
 0x5a4   : > { %4671 = dma.vmem_to_hbm [thread:$0]  (%p4917_p5), %s4431_s25, 1024, %s4433_s17, %s4413_s18, %s4831_s26, %s4832_s10, %s4833_s12  }
 0x5a5   : > { %s4668_s2 = sshll.u32 %s4900_s9, 3  ;;  %s310_s1 = scalar_lea.vmem [#allocation4], %s4548_s13 }
 0x5a6   : > { %s4446_s0 = scalar_lea.hbm %s8482_s8, %s4668_s2  ;;  %s4448_s19 = sshll.u32 %s310_s1, 4  ;;  %s4449_s19 = int_to_ptr.vmem [resolvable:$true] %s4448_s19 }
 0x5a7   : > { %s4450_s21 = sshll.u32 %s4446_s0, 4  ;;  %s4418_s9 = scalar_lea.sflag [#allocation5], %s8000_s20  ;;  %s4451_s21 = int_to_ptr.hbm [resolvable:$true] %s4450_s21 }
 0x5a8   : > { %s4770_s25 = sshra.s32 %s4451_s21, 4  ;;  %s4776_s22 = scalar_lea.hbm %s8482_s8, 16  ;;  %s4771_s25 = int_to_ptr.hbm [resolvable:$true] %s4770_s25 }
 0x5a9   : > { %s4772_s17 = scalar_lea.hbm %s4771_s25, 8  ;;  %p4777_p9 = scmp.lt.s32.totalorder %s4771_s25, %s8482_s8 }
 0x5aa   : > { %p4773_p4 = scmp.ne.s32.totalorder %s4771_s25, %s4772_s17  ;;  %p4778_p10 = scmp.lt.s32.totalorder %s4776_s22, %s4772_s17 }
 0x5ac   : > { %p4774_p7 = pnand %p4773_p4, %p4917_p5  ;;  %p4779_p11 = por %p4778_p10, %p4777_p9 }
 0x5ae   : > { %p4775_p8 = pneg %p4774_p7 }
 0x5b0   : > { %p4780_p12 = pnand %p4779_p11, %p4775_p8 }
 0x603   : > { %v4382_v34 = vpop.f32.mrf.mxu2 }
 0x604   : > { %v4383_v44 = vadd.f32 %v4382_v34, %v4360_v14 }
 0x61e   : > { %v4402_v37 = vpop.f32.mrf.mxu3 }
 0x61f   : > { %v4403_v40 = vadd.f32 %v4402_v37, %v4360_v14 }
 0x621   : > { %v4407_v53 = vrot.slane %v4403_v40, 4 }
 0x623   : > { %v4409_v38 = vsel %vm4408_vm3, %v4383_v44, %v4407_v53 }
 0x624   : > { %4411 = vst [vmem:[%s310_s1] sm:$0x77] %v4409_v38 }
 0x625   : > { %4783 = shalt.err (!%p4780_p12)
}
 0x626   : > { %4672 = dma.vmem_to_hbm [thread:$0]  (%p4917_p5), %s4449_s19, 128, %s4451_s21, %s4418_s9  }
 0x627 PF: > { %p4682_p13 = scmp.ge.s32.totalorder %s4822_s30, 2  ;;  %s4462_s20 = sand.u32 1, %s4810_s27  }
 0x628   : > { %s4463_s12 = scalar_lea.sflag [#allocation3], %s4462_s20 }
 0x629   : > { %p4676_p0 = pnand %p4682_p13, %p4921_p6 }
 0x62b   : > { %p4677_p1 = pneg %p4676_p0 }
 0x62d   : > { %4801 = dma.done.wait (%p4677_p1), %s4463_s12, 1024  }
 0x62e   : > { %4803 = vsyncadd (%p4677_p1), %s4463_s12, 4294966272  ;;  %s4473_s13 = scalar_lea.sflag [#allocation5], %s4462_s20 }
 0x62f   : > { %4805 = dma.done.wait (%p4677_p1), %s4473_s13, 128  }
 0x630   : > { %4807 = vsyncadd (%p4677_p1), %s4473_s13, 4294967168  ;;  %p22_p5 = scmp.ge.s32.totalorder %s4904_s11, 4   ;;  %s8935_s27 = smov %s4814_s28 }
 0x631   : > { %s8936_s28 = smov %s4818_s29  ;;  %s8937_s29 = smov %s4915_s14 }
 0x632   : > { %s8938_s30 = smov %s4904_s11  ;;  %24 = sbr.rel (!%p22_p5) target bundleno = 9 (0x9), region = 102 }
 0x637   :  { %4479 = vsyncpa [#allocation3], 1 }
 0x638   :  { %4481 = vsyncpa [#allocation3 + $0x1], 1 }
 0x639   :  { %4482 = vsyncpa [#allocation5], 1 }
 0x63a   :  { %4484 = vsyncpa [#allocation5 + $0x1], 1 }

</bundles_post_ra>
